<compile_context>
chip_gen: v6e
topology: v6e:2x2x1
jax: 0.10.0
libtpu: 0.0.40
codegen_flags: <defaults>
</compile_context>

<pallas_src>
import jax
import jax.numpy as jnp
from jax.experimental import pallas as pl
from jax.experimental.pallas import tpu as pltpu

LRELU_SLOPE = 0.1


# ----------------------------------------------------------------------------------- #
# Fused Pallas kernel
# ----------------------------------------------------------------------------------- #
def _make_fused_kernel(cfg):
    """Ref order: x_slab, [gather, weight, shift] * n_layers, fc_w_full, sel_b, fc_b,
    out, patch_scratch * n_layers."""
    n_layers = cfg["n_layers"]
    kk = cfg["kernel_size"] ** 2
    B = cfg["batch_size"]
    hw_in = cfg["hw_in"]       # per-image input spatial size per layer
    hw_out = cfg["hw_out"]     # per-image output spatial size per layer
    c_in = cfg["c_in_pad"]     # (padded) input channels per layer

    def kernel(*refs):
        idx = 0
        x_ref = refs[idx]; idx += 1
        layer_refs = []
        for _ in range(n_layers):
            layer_refs.append(refs[idx:idx + 3]); idx += 3
        fcw_ref, selb_ref, fcb_ref = refs[idx:idx + 3]; idx += 3
        o_ref = refs[idx]; idx += 1
        patch_refs = refs[idx:idx + n_layers]

        act = x_ref[...]                                    # (B*hw_in[0], c_in[0]) bf16
        y = None
        for l in range(n_layers):
            g_ref, w_ref, t_ref = layer_refs[l]
            p_ref = patch_refs[l]
            ci, hi, ho = c_in[l], hw_in[l], hw_out[l]
            gmat = g_ref[...]                               # (kk*ho, hi) bf16, taps stacked
            # In-kernel im2col: one stacked-gather matmul per image, then scatter the
            # kk tap blocks into lane blocks of the patch scratch (static offsets).
            for b in range(B):
                src_b = act[b * hi:(b + 1) * hi, :]         # (hi, ci) bf16
                gat = jnp.dot(gmat, src_b,                   # (kk*ho, ci) f32, exact
                              preferred_element_type=jnp.float32)
                for blk in range(kk):
                    p_ref[b * ho:(b + 1) * ho, blk * ci:(blk + 1) * ci] = (
                        gat[blk * ho:(blk + 1) * ho, :])
            # Single big-K MXU matmul per layer (scale already folded into bf16 weight),
            # then f32 shift + LeakyReLU(0.1) on the VPU.
            y = jnp.dot(p_ref[...].astype(jnp.bfloat16), w_ref[...],
                        preferred_element_type=jnp.float32)  # (B*ho, c_out)
            y = y + t_ref[...]
            y = jnp.where(y >= 0.0, y, LRELU_SLOPE * y)
            if l + 1 < n_layers:
                act = y.astype(jnp.bfloat16)

        # Fused fully-connected head (fc weight pre-permuted to activation row order).
        prod = y * fcw_ref[...]                              # (B*hw_out[-1], C_last) f32
        per_b = jnp.dot(selb_ref[...], prod.astype(jnp.bfloat16),
                        preferred_element_type=jnp.float32)  # (B, C_last)
        o_ref[...] = jnp.sum(per_b, axis=1, keepdims=True) + fcb_ref[...]

    return kernel


def _zero_map(ndim):
    def index_map(i):
        return (0,) * ndim
    return index_map


# ----------------------------------------------------------------------------------- #
# Init-time constants
# ----------------------------------------------------------------------------------- #
def _round_up(n, m):
    return ((n + m - 1) // m) * m


def _build_gather_stacked(h_in, w_in, h_out, w_out, k, stride=2, pad=1):
    """Batch-free stacked 0/1 gather: (k*k*h_out*w_out, h_in*w_in) bf16.

    Block blk = kh*k + kw, row (oh, ow) selects input (stride*oh+kh-pad, stride*ow+kw-pad);
    rows that fall in the zero padding are all-zero.
    """
    m_in = h_in * w_in
    m_out = h_out * w_out
    ro = jnp.arange(m_out)
    oh = ro // w_out
    ow = ro % w_out
    ri = jnp.arange(m_in)
    ih = ri // w_in
    iw = ri % w_in
    blocks = []
    for kh in range(k):
        for kw in range(k):
            cond = ((ih[None, :] == stride * oh[:, None] + kh - pad)
                    & (iw[None, :] == stride * ow[:, None] + kw - pad))
            blocks.append(cond)
    return jnp.concatenate(blocks, axis=0).astype(jnp.bfloat16)


def kaiming_normal(key, shape, fan_in, a=LRELU_SLOPE):
    gain = (2.0 / (1.0 + a * a)) ** 0.5
    std = gain / (fan_in ** 0.5)
    return std * jax.random.normal(key, shape, dtype=jnp.float32)


def init_params(key, input_h, input_w, batch_size, n_layers=3, kernel_size=4,
                conv_dim=32, padding=1, is_rgb=True):
    eps = 1e-5
    keys = jax.random.split(key, 4 * n_layers + 2)
    c_in = 3 if is_rgb else 1
    c_in0 = c_in
    c_out = conv_dim
    h, w = input_h, input_w
    conv_layers = []
    hw_in, hw_out, c_in_pad = [], [], []
    ki = 0
    for i in range(n_layers):
        fan_in = c_in * kernel_size * kernel_size
        w_conv = kaiming_normal(keys[ki], (kernel_size, kernel_size, c_in, c_out), fan_in)
        ki += 1
        bound = 1.0 / fan_in ** 0.5
        b = jax.random.uniform(keys[ki], (c_out,), minval=-bound, maxval=bound,
                               dtype=jnp.float32)
        ki += 1
        if i > 0:  # BatchNormConv uses BatchNorm2d for layers > 0 (eval mode, folded)
            gamma = 1.0 + 0.1 * jax.random.normal(keys[ki], (c_out,), dtype=jnp.float32)
            ki += 1
            beta = 0.1 * jax.random.normal(keys[ki], (c_out,), dtype=jnp.float32)
            ki += 1
            s = gamma / jnp.sqrt(1.0 + eps)        # running_mean=0, running_var=1
            t = beta
        else:
            ki += 2
            s = jnp.ones((c_out,), jnp.float32)
            t = jnp.zeros((c_out,), jnp.float32)

        # Pad input channels up to a multiple of 8 (only layer 0: 3 -> 8) so the in-kernel
        # patch scatter uses clean 8-lane-aligned blocks.  Padded weight rows are zero.
        ci_pad = _round_up(c_in, 8)
        if ci_pad > c_in:
            w_conv = jnp.pad(w_conv, ((0, 0), (0, 0), (0, ci_pad - c_in), (0, 0)))
        # Fold conv bias + eval-mode BN: y = (X@W + b)*s + t  ==  X@(W*s) + (b*s + t).
        w_folded = (w_conv * s[None, None, None, :]).reshape(
            kernel_size * kernel_size * ci_pad, c_out).astype(jnp.bfloat16)
        shift = (b * s + t).reshape(1, c_out)      # stays f32

        oh, ow = h // 2, w // 2
        gather = _build_gather_stacked(h, w, oh, ow, kernel_size, stride=2, pad=padding)
        conv_layers.append(dict(g=gather, w=w_folded, shift=shift))
        hw_in.append(h * w)
        hw_out.append(oh * ow)
        c_in_pad.append(ci_pad)

        c_in = c_out
        c_out *= 2
        h, w = oh, ow

    out_h, out_w, c_last = h, w, c_in
    fc_in = c_last * out_h * out_w
    bound = 1.0 / fc_in ** 0.5
    fc_w = jax.random.uniform(keys[ki], (fc_in,), minval=-bound, maxval=bound,
                              dtype=jnp.float32)
    ki += 1
    fc_b = jax.random.uniform(keys[ki], (1, 1), minval=-bound, maxval=bound,
                              dtype=jnp.float32)
    # PyTorch flattens NCHW as (C, H, W); pre-permute the FC weight so the kernel can
    # consume the (B*OH*OW, C) activation matrix directly (no runtime transpose).
    fc_w_hw_c = fc_w.reshape(c_last, out_h, out_w).transpose(1, 2, 0).reshape(
        out_h * out_w, c_last)
    fc_w_full = jnp.tile(fc_w_hw_c, (batch_size, 1))              # (B*OH*OW, C) f32
    m_last = batch_size * out_h * out_w
    sel_b = (jnp.arange(m_last)[None, :] // (out_h * out_w)
             == jnp.arange(batch_size)[:, None]).astype(jnp.bfloat16)  # (B, B*OH*OW)

    params = dict(conv_layers=conv_layers, fc_w_full=fc_w_full, fc_w_flat=fc_w,
                  sel_b=sel_b, fc_b=fc_b)
    config = dict(n_layers=n_layers, kernel_size=kernel_size, padding=padding,
                  batch_size=batch_size, input_h=input_h, input_w=input_w,
                  c_in0=c_in0, hw_in=tuple(hw_in), hw_out=tuple(hw_out),
                  c_in_pad=tuple(c_in_pad))
    return params, config


# ----------------------------------------------------------------------------------- #
# Forward wrapper
# ----------------------------------------------------------------------------------- #
def build_forward(config):
    n_layers = config["n_layers"]
    bsz = config["batch_size"]
    H, W = config["input_h"], config["input_w"]
    c0, c0p = config["c_in0"], config["c_in_pad"][0]
    kk = config["kernel_size"] ** 2
    hw_out = config["hw_out"]
    c_in_pad = config["c_in_pad"]
    kernel = _make_fused_kernel(config)

    def forward(x_nchw, params):
        # The only pre-kernel XLA work: NCHW -> NHWC slab, channel pad to 8, bf16 cast.
        # All im2col (every layer) now happens inside the kernel.
        x = jnp.transpose(x_nchw, (0, 2, 3, 1))
        if c0p > c0:
            x = jnp.pad(x, ((0, 0), (0, 0), (0, 0), (0, c0p - c0)))
        x_slab = x.reshape(bsz * H * W, c0p).astype(jnp.bfloat16)

        inputs = [x_slab]
        for l in range(n_layers):
            layer = params["conv_layers"][l]
            inputs += [layer["g"], layer["w"], layer["shift"]]
        inputs += [params["fc_w_full"], params["sel_b"], params["fc_b"]]

        in_specs = [pl.BlockSpec(tuple(a.shape), _zero_map(a.ndim)) for a in inputs]
        scratch_shapes = [
            pltpu.VMEM((bsz * hw_out[l], kk * c_in_pad[l]), jnp.float32)
            for l in range(n_layers)
        ]

        # grid=(1,) is optimal at this size; for large batch/resolution split the patch M
        # (or batch) dimension over a leading "parallel" grid axis (2 TCs on v7x) and
        # budget VMEM against 64 MiB.
        return pl.pallas_call(
            kernel,
            out_shape=jax.ShapeDtypeStruct((bsz, 1), jnp.float32),
            grid=(1,),
            in_specs=in_specs,
            out_specs=pl.BlockSpec((bsz, 1), _zero_map(2)),
            scratch_shapes=scratch_shapes,
            compiler_params=pltpu.CompilerParams(
                dimension_semantics=("arbitrary",)),
        )(*inputs)

    return jax.jit(forward)


# ----------------------------------------------------------------------------------- #
# Pure-JAX reference (mirrors the kernel's bf16 rounding points)
# ----------------------------------------------------------------------------------- #
def reference_forward(x_nchw, params, config):
    k = config["kernel_size"]
    pad = config["padding"]
    n_layers = config["n_layers"]
    c0, c0p = config["c_in0"], config["c_in_pad"][0]
    act = jnp.transpose(x_nchw, (0, 2, 3, 1))
    if c0p > c0:
        act = jnp.pad(act, ((0, 0), (0, 0), (0, 0), (0, c0p - c0)))
    act = act.astype(jnp.bfloat16).astype(jnp.float32)
    for l in range(n_layers):
        layer = params["conv_layers"][l]
        ci = act.shape[-1]
        w = layer["w"].astype(jnp.float32).reshape(k, k, ci, -1)     # HWIO
        y = jax.lax.conv_general_dilated(
            act, w, window_strides=(2, 2), padding=[(pad, pad), (pad, pad)],
            dimension_numbers=("NHWC", "HWIO", "NHWC"))
        y = y + layer["shift"].reshape(1, 1, 1, -1)
        y = jnp.where(y >= 0.0, y, LRELU_SLOPE * y)
        act = y.astype(jnp.bfloat16).astype(jnp.float32) if l + 1 < n_layers else y
    B = act.shape[0]
    flat = jnp.transpose(act, (0, 3, 1, 2)).reshape(B, -1)           # PyTorch NCHW flatten
    prod = (flat * params["fc_w_flat"][None, :]).astype(jnp.bfloat16).astype(jnp.float32)
    return jnp.sum(prod, axis=1, keepdims=True) + params["fc_b"]


# ----------------------------------------------------------------------------------- #
if __name__ == "__main__":
    key = jax.random.PRNGKey(0)
    k_param, k_x = jax.random.split(key)

    B, C, H, W = 2, 3, 16, 16                      # small, consistent with is_rgb=True
    x = jax.random.normal(k_x, (B, C, H, W), dtype=jnp.float32)

    params, config = init_params(k_param, input_h=H, input_w=W, batch_size=B,
                                 n_layers=3, kernel_size=4, conv_dim=32,
                                 padding=1, is_rgb=True)
    forward = build_forward(config)

    logits = jax.block_until_ready(forward(x, params))
    assert logits.shape == (B, 1) and logits.dtype == jnp.float32

    ref = jax.block_until_ready(reference_forward(x, params, config))
    max_err = float(jnp.max(jnp.abs(logits - ref)))
    assert max_err < 5e-2, f"kernel vs reference mismatch: max |diff| = {max_err}"

    print("KERNEL_OK")
</pallas_src>

<mosaic_0001>
module attributes {stable_mosaic.version = 11 : i64} {
  func.func @kernel(%arg0: i32, %arg1: memref<512x8xbf16, #tpu.memory_space<vmem>>, %arg2: memref<1024x256xbf16, #tpu.memory_space<vmem>>, %arg3: memref<128x32xbf16, #tpu.memory_space<vmem>>, %arg4: memref<1x32xf32, #tpu.memory_space<vmem>>, %arg5: memref<256x64xbf16, #tpu.memory_space<vmem>>, %arg6: memref<512x64xbf16, #tpu.memory_space<vmem>>, %arg7: memref<1x64xf32, #tpu.memory_space<vmem>>, %arg8: memref<64x16xbf16, #tpu.memory_space<vmem>>, %arg9: memref<1024x128xbf16, #tpu.memory_space<vmem>>, %arg10: memref<1x128xf32, #tpu.memory_space<vmem>>, %arg11: memref<8x128xf32, #tpu.memory_space<vmem>>, %arg12: memref<2x8xbf16, #tpu.memory_space<vmem>>, %arg13: memref<1x1xf32, #tpu.memory_space<vmem>>, %arg14: memref<2x1xf32, #tpu.memory_space<vmem>>, %arg15: memref<128x128xf32, #tpu.memory_space<vmem>>, %arg16: memref<32x512xf32, #tpu.memory_space<vmem>>, %arg17: memref<8x1024xf32, #tpu.memory_space<vmem>>) attributes {dimension_semantics = [#tpu.dimension_semantics<arbitrary>], iteration_bounds = array<i64: 1>, scalar_prefetch = 0 : i64, scratch_operands = 3 : i64, tpu.core_type = #tpu.core_type<tc>, window_params = [{pipeline_mode = #tpu.pipeline_mode<synchronous>, transform_indices = @transform_0, window_bounds = array<i64: 512, 8>}, {pipeline_mode = #tpu.pipeline_mode<synchronous>, transform_indices = @transform_1, window_bounds = array<i64: 1024, 256>}, {pipeline_mode = #tpu.pipeline_mode<synchronous>, transform_indices = @transform_2, window_bounds = array<i64: 128, 32>}, {pipeline_mode = #tpu.pipeline_mode<synchronous>, transform_indices = @transform_3, window_bounds = array<i64: 1, 32>}, {pipeline_mode = #tpu.pipeline_mode<synchronous>, transform_indices = @transform_4, window_bounds = array<i64: 256, 64>}, {pipeline_mode = #tpu.pipeline_mode<synchronous>, transform_indices = @transform_5, window_bounds = array<i64: 512, 64>}, {pipeline_mode = #tpu.pipeline_mode<synchronous>, transform_indices = @transform_6, window_bounds = array<i64: 1, 64>}, {pipeline_mode = #tpu.pipeline_mode<synchronous>, transform_indices = @transform_7, window_bounds = array<i64: 64, 16>}, {pipeline_mode = #tpu.pipeline_mode<synchronous>, transform_indices = @transform_8, window_bounds = array<i64: 1024, 128>}, {pipeline_mode = #tpu.pipeline_mode<synchronous>, transform_indices = @transform_9, window_bounds = array<i64: 1, 128>}, {pipeline_mode = #tpu.pipeline_mode<synchronous>, transform_indices = @transform_10, window_bounds = array<i64: 8, 128>}, {pipeline_mode = #tpu.pipeline_mode<synchronous>, transform_indices = @transform_11, window_bounds = array<i64: 2, 8>}, {pipeline_mode = #tpu.pipeline_mode<synchronous>, transform_indices = @transform_12, window_bounds = array<i64: 1, 1>}, {pipeline_mode = #tpu.pipeline_mode<synchronous>, transform_indices = @transform_13, window_bounds = array<i64: 2, 1>}]} {
    %c0 = arith.constant 0 : index
    %c0_0 = arith.constant 0 : index
    %0 = vector.load %arg1[%c0, %c0_0] : memref<512x8xbf16, #tpu.memory_space<vmem>>, vector<512x8xbf16>
    %c0_1 = arith.constant 0 : index
    %c0_2 = arith.constant 0 : index
    %1 = vector.load %arg2[%c0_1, %c0_2] : memref<1024x256xbf16, #tpu.memory_space<vmem>>, vector<1024x256xbf16>
    %2 = vector.extract_strided_slice %0 {offsets = [0, 0], sizes = [256, 8], strides = [1, 1]} : vector<512x8xbf16> to vector<256x8xbf16>
    %cst = arith.constant dense<0.000000e+00> : vector<1024x8xf32>
    %3 = tpu.matmul %1, %2, %cst {dimension_numbers = #tpu.dot_dimension_numbers<[1], [0], [0], [1], [0, 0, 1, 1], [], []>} : vector<1024x256xbf16>, vector<256x8xbf16>, vector<1024x8xf32> -> vector<1024x8xf32>
    %4 = vector.extract_strided_slice %3 {offsets = [0, 0], sizes = [64, 8], strides = [1, 1]} : vector<1024x8xf32> to vector<64x8xf32>
    %c0_3 = arith.constant 0 : index
    %c0_4 = arith.constant 0 : index
    %5 = vector.load %arg15[%c0_3, %c0_4] : memref<128x128xf32, #tpu.memory_space<vmem>>, vector<64x8xf32>
    tpu.vector_store %arg15[%c0_3, %c0_4], %4 {strides = array<i32>} : memref<128x128xf32, #tpu.memory_space<vmem>>, vector<64x8xf32>,
    %6 = vector.extract_strided_slice %3 {offsets = [64, 0], sizes = [64, 8], strides = [1, 1]} : vector<1024x8xf32> to vector<64x8xf32>
    %c0_5 = arith.constant 0 : index
    %c8 = arith.constant 8 : index
    %7 = vector.load %arg15[%c0_5, %c8] : memref<128x128xf32, #tpu.memory_space<vmem>>, vector<64x8xf32>
    tpu.vector_store %arg15[%c0_5, %c8], %6 {strides = array<i32>} : memref<128x128xf32, #tpu.memory_space<vmem>>, vector<64x8xf32>,
    %8 = vector.extract_strided_slice %3 {offsets = [128, 0], sizes = [64, 8], strides = [1, 1]} : vector<1024x8xf32> to vector<64x8xf32>
    %c0_6 = arith.constant 0 : index
    %c16 = arith.constant 16 : index
    %9 = vector.load %arg15[%c0_6, %c16] : memref<128x128xf32, #tpu.memory_space<vmem>>, vector<64x8xf32>
    tpu.vector_store %arg15[%c0_6, %c16], %8 {strides = array<i32>} : memref<128x128xf32, #tpu.memory_space<vmem>>, vector<64x8xf32>,
    %10 = vector.extract_strided_slice %3 {offsets = [192, 0], sizes = [64, 8], strides = [1, 1]} : vector<1024x8xf32> to vector<64x8xf32>
    %c0_7 = arith.constant 0 : index
    %c24 = arith.constant 24 : index
    %11 = vector.load %arg15[%c0_7, %c24] : memref<128x128xf32, #tpu.memory_space<vmem>>, vector<64x8xf32>
    tpu.vector_store %arg15[%c0_7, %c24], %10 {strides = array<i32>} : memref<128x128xf32, #tpu.memory_space<vmem>>, vector<64x8xf32>,
    %12 = vector.extract_strided_slice %3 {offsets = [256, 0], sizes = [64, 8], strides = [1, 1]} : vector<1024x8xf32> to vector<64x8xf32>
    %c0_8 = arith.constant 0 : index
    %c32 = arith.constant 32 : index
    %13 = vector.load %arg15[%c0_8, %c32] : memref<128x128xf32, #tpu.memory_space<vmem>>, vector<64x8xf32>
    tpu.vector_store %arg15[%c0_8, %c32], %12 {strides = array<i32>} : memref<128x128xf32, #tpu.memory_space<vmem>>, vector<64x8xf32>,
    %14 = vector.extract_strided_slice %3 {offsets = [320, 0], sizes = [64, 8], strides = [1, 1]} : vector<1024x8xf32> to vector<64x8xf32>
    %c0_9 = arith.constant 0 : index
    %c40 = arith.constant 40 : index
    %15 = vector.load %arg15[%c0_9, %c40] : memref<128x128xf32, #tpu.memory_space<vmem>>, vector<64x8xf32>
    tpu.vector_store %arg15[%c0_9, %c40], %14 {strides = array<i32>} : memref<128x128xf32, #tpu.memory_space<vmem>>, vector<64x8xf32>,
    %16 = vector.extract_strided_slice %3 {offsets = [384, 0], sizes = [64, 8], strides = [1, 1]} : vector<1024x8xf32> to vector<64x8xf32>
    %c0_10 = arith.constant 0 : index
    %c48 = arith.constant 48 : index
    %17 = vector.load %arg15[%c0_10, %c48] : memref<128x128xf32, #tpu.memory_space<vmem>>, vector<64x8xf32>
    tpu.vector_store %arg15[%c0_10, %c48], %16 {strides = array<i32>} : memref<128x128xf32, #tpu.memory_space<vmem>>, vector<64x8xf32>,
    %18 = vector.extract_strided_slice %3 {offsets = [448, 0], sizes = [64, 8], strides = [1, 1]} : vector<1024x8xf32> to vector<64x8xf32>
    %c0_11 = arith.constant 0 : index
    %c56 = arith.constant 56 : index
    %19 = vector.load %arg15[%c0_11, %c56] : memref<128x128xf32, #tpu.memory_space<vmem>>, vector<64x8xf32>
    tpu.vector_store %arg15[%c0_11, %c56], %18 {strides = array<i32>} : memref<128x128xf32, #tpu.memory_space<vmem>>, vector<64x8xf32>,
    %20 = vector.extract_strided_slice %3 {offsets = [512, 0], sizes = [64, 8], strides = [1, 1]} : vector<1024x8xf32> to vector<64x8xf32>
    %c0_12 = arith.constant 0 : index
    %c64 = arith.constant 64 : index
    %21 = vector.load %arg15[%c0_12, %c64] : memref<128x128xf32, #tpu.memory_space<vmem>>, vector<64x8xf32>
    tpu.vector_store %arg15[%c0_12, %c64], %20 {strides = array<i32>} : memref<128x128xf32, #tpu.memory_space<vmem>>, vector<64x8xf32>,
    %22 = vector.extract_strided_slice %3 {offsets = [576, 0], sizes = [64, 8], strides = [1, 1]} : vector<1024x8xf32> to vector<64x8xf32>
    %c0_13 = arith.constant 0 : index
    %c72 = arith.constant 72 : index
    %23 = vector.load %arg15[%c0_13, %c72] : memref<128x128xf32, #tpu.memory_space<vmem>>, vector<64x8xf32>
    tpu.vector_store %arg15[%c0_13, %c72], %22 {strides = array<i32>} : memref<128x128xf32, #tpu.memory_space<vmem>>, vector<64x8xf32>,
    %24 = vector.extract_strided_slice %3 {offsets = [640, 0], sizes = [64, 8], strides = [1, 1]} : vector<1024x8xf32> to vector<64x8xf32>
    %c0_14 = arith.constant 0 : index
    %c80 = arith.constant 80 : index
    %25 = vector.load %arg15[%c0_14, %c80] : memref<128x128xf32, #tpu.memory_space<vmem>>, vector<64x8xf32>
    tpu.vector_store %arg15[%c0_14, %c80], %24 {strides = array<i32>} : memref<128x128xf32, #tpu.memory_space<vmem>>, vector<64x8xf32>,
    %26 = vector.extract_strided_slice %3 {offsets = [704, 0], sizes = [64, 8], strides = [1, 1]} : vector<1024x8xf32> to vector<64x8xf32>
    %c0_15 = arith.constant 0 : index
    %c88 = arith.constant 88 : index
    %27 = vector.load %arg15[%c0_15, %c88] : memref<128x128xf32, #tpu.memory_space<vmem>>, vector<64x8xf32>
    tpu.vector_store %arg15[%c0_15, %c88], %26 {strides = array<i32>} : memref<128x128xf32, #tpu.memory_space<vmem>>, vector<64x8xf32>,
    %28 = vector.extract_strided_slice %3 {offsets = [768, 0], sizes = [64, 8], strides = [1, 1]} : vector<1024x8xf32> to vector<64x8xf32>
    %c0_16 = arith.constant 0 : index
    %c96 = arith.constant 96 : index
    %29 = vector.load %arg15[%c0_16, %c96] : memref<128x128xf32, #tpu.memory_space<vmem>>, vector<64x8xf32>
    tpu.vector_store %arg15[%c0_16, %c96], %28 {strides = array<i32>} : memref<128x128xf32, #tpu.memory_space<vmem>>, vector<64x8xf32>,
    %30 = vector.extract_strided_slice %3 {offsets = [832, 0], sizes = [64, 8], strides = [1, 1]} : vector<1024x8xf32> to vector<64x8xf32>
    %c0_17 = arith.constant 0 : index
    %c104 = arith.constant 104 : index
    %31 = vector.load %arg15[%c0_17, %c104] : memref<128x128xf32, #tpu.memory_space<vmem>>, vector<64x8xf32>
    tpu.vector_store %arg15[%c0_17, %c104], %30 {strides = array<i32>} : memref<128x128xf32, #tpu.memory_space<vmem>>, vector<64x8xf32>,
    %32 = vector.extract_strided_slice %3 {offsets = [896, 0], sizes = [64, 8], strides = [1, 1]} : vector<1024x8xf32> to vector<64x8xf32>
    %c0_18 = arith.constant 0 : index
    %c112 = arith.constant 112 : index
    %33 = vector.load %arg15[%c0_18, %c112] : memref<128x128xf32, #tpu.memory_space<vmem>>, vector<64x8xf32>
    tpu.vector_store %arg15[%c0_18, %c112], %32 {strides = array<i32>} : memref<128x128xf32, #tpu.memory_space<vmem>>, vector<64x8xf32>,
    %34 = vector.extract_strided_slice %3 {offsets = [960, 0], sizes = [64, 8], strides = [1, 1]} : vector<1024x8xf32> to vector<64x8xf32>
    %c0_19 = arith.constant 0 : index
    %c120 = arith.constant 120 : index
    %35 = vector.load %arg15[%c0_19, %c120] : memref<128x128xf32, #tpu.memory_space<vmem>>, vector<64x8xf32>
    tpu.vector_store %arg15[%c0_19, %c120], %34 {strides = array<i32>} : memref<128x128xf32, #tpu.memory_space<vmem>>, vector<64x8xf32>,
    %36 = vector.extract_strided_slice %0 {offsets = [256, 0], sizes = [256, 8], strides = [1, 1]} : vector<512x8xbf16> to vector<256x8xbf16>
    %cst_20 = arith.constant dense<0.000000e+00> : vector<1024x8xf32>
    %37 = tpu.matmul %1, %36, %cst_20 {dimension_numbers = #tpu.dot_dimension_numbers<[1], [0], [0], [1], [0, 0, 1, 1], [], []>} : vector<1024x256xbf16>, vector<256x8xbf16>, vector<1024x8xf32> -> vector<1024x8xf32>
    %38 = vector.extract_strided_slice %37 {offsets = [0, 0], sizes = [64, 8], strides = [1, 1]} : vector<1024x8xf32> to vector<64x8xf32>
    %c64_21 = arith.constant 64 : index
    %c0_22 = arith.constant 0 : index
    %39 = vector.load %arg15[%c64_21, %c0_22] : memref<128x128xf32, #tpu.memory_space<vmem>>, vector<64x8xf32>
    tpu.vector_store %arg15[%c64_21, %c0_22], %38 {strides = array<i32>} : memref<128x128xf32, #tpu.memory_space<vmem>>, vector<64x8xf32>,
    %40 = vector.extract_strided_slice %37 {offsets = [64, 0], sizes = [64, 8], strides = [1, 1]} : vector<1024x8xf32> to vector<64x8xf32>
    %c64_23 = arith.constant 64 : index
    %c8_24 = arith.constant 8 : index
    %41 = vector.load %arg15[%c64_23, %c8_24] : memref<128x128xf32, #tpu.memory_space<vmem>>, vector<64x8xf32>
    tpu.vector_store %arg15[%c64_23, %c8_24], %40 {strides = array<i32>} : memref<128x128xf32, #tpu.memory_space<vmem>>, vector<64x8xf32>,
    %42 = vector.extract_strided_slice %37 {offsets = [128, 0], sizes = [64, 8], strides = [1, 1]} : vector<1024x8xf32> to vector<64x8xf32>
    %c64_25 = arith.constant 64 : index
    %c16_26 = arith.constant 16 : index
    %43 = vector.load %arg15[%c64_25, %c16_26] : memref<128x128xf32, #tpu.memory_space<vmem>>, vector<64x8xf32>
    tpu.vector_store %arg15[%c64_25, %c16_26], %42 {strides = array<i32>} : memref<128x128xf32, #tpu.memory_space<vmem>>, vector<64x8xf32>,
    %44 = vector.extract_strided_slice %37 {offsets = [192, 0], sizes = [64, 8], strides = [1, 1]} : vector<1024x8xf32> to vector<64x8xf32>
    %c64_27 = arith.constant 64 : index
    %c24_28 = arith.constant 24 : index
    %45 = vector.load %arg15[%c64_27, %c24_28] : memref<128x128xf32, #tpu.memory_space<vmem>>, vector<64x8xf32>
    tpu.vector_store %arg15[%c64_27, %c24_28], %44 {strides = array<i32>} : memref<128x128xf32, #tpu.memory_space<vmem>>, vector<64x8xf32>,
    %46 = vector.extract_strided_slice %37 {offsets = [256, 0], sizes = [64, 8], strides = [1, 1]} : vector<1024x8xf32> to vector<64x8xf32>
    %c64_29 = arith.constant 64 : index
    %c32_30 = arith.constant 32 : index
    %47 = vector.load %arg15[%c64_29, %c32_30] : memref<128x128xf32, #tpu.memory_space<vmem>>, vector<64x8xf32>
    tpu.vector_store %arg15[%c64_29, %c32_30], %46 {strides = array<i32>} : memref<128x128xf32, #tpu.memory_space<vmem>>, vector<64x8xf32>,
    %48 = vector.extract_strided_slice %37 {offsets = [320, 0], sizes = [64, 8], strides = [1, 1]} : vector<1024x8xf32> to vector<64x8xf32>
    %c64_31 = arith.constant 64 : index
    %c40_32 = arith.constant 40 : index
    %49 = vector.load %arg15[%c64_31, %c40_32] : memref<128x128xf32, #tpu.memory_space<vmem>>, vector<64x8xf32>
    tpu.vector_store %arg15[%c64_31, %c40_32], %48 {strides = array<i32>} : memref<128x128xf32, #tpu.memory_space<vmem>>, vector<64x8xf32>,
    %50 = vector.extract_strided_slice %37 {offsets = [384, 0], sizes = [64, 8], strides = [1, 1]} : vector<1024x8xf32> to vector<64x8xf32>
    %c64_33 = arith.constant 64 : index
    %c48_34 = arith.constant 48 : index
    %51 = vector.load %arg15[%c64_33, %c48_34] : memref<128x128xf32, #tpu.memory_space<vmem>>, vector<64x8xf32>
    tpu.vector_store %arg15[%c64_33, %c48_34], %50 {strides = array<i32>} : memref<128x128xf32, #tpu.memory_space<vmem>>, vector<64x8xf32>,
    %52 = vector.extract_strided_slice %37 {offsets = [448, 0], sizes = [64, 8], strides = [1, 1]} : vector<1024x8xf32> to vector<64x8xf32>
    %c64_35 = arith.constant 64 : index
    %c56_36 = arith.constant 56 : index
    %53 = vector.load %arg15[%c64_35, %c56_36] : memref<128x128xf32, #tpu.memory_space<vmem>>, vector<64x8xf32>
    tpu.vector_store %arg15[%c64_35, %c56_36], %52 {strides = array<i32>} : memref<128x128xf32, #tpu.memory_space<vmem>>, vector<64x8xf32>,
    %54 = vector.extract_strided_slice %37 {offsets = [512, 0], sizes = [64, 8], strides = [1, 1]} : vector<1024x8xf32> to vector<64x8xf32>
    %c64_37 = arith.constant 64 : index
    %c64_38 = arith.constant 64 : index
    %55 = vector.load %arg15[%c64_37, %c64_38] : memref<128x128xf32, #tpu.memory_space<vmem>>, vector<64x8xf32>
    tpu.vector_store %arg15[%c64_37, %c64_38], %54 {strides = array<i32>} : memref<128x128xf32, #tpu.memory_space<vmem>>, vector<64x8xf32>,
    %56 = vector.extract_strided_slice %37 {offsets = [576, 0], sizes = [64, 8], strides = [1, 1]} : vector<1024x8xf32> to vector<64x8xf32>
    %c64_39 = arith.constant 64 : index
    %c72_40 = arith.constant 72 : index
    %57 = vector.load %arg15[%c64_39, %c72_40] : memref<128x128xf32, #tpu.memory_space<vmem>>, vector<64x8xf32>
    tpu.vector_store %arg15[%c64_39, %c72_40], %56 {strides = array<i32>} : memref<128x128xf32, #tpu.memory_space<vmem>>, vector<64x8xf32>,
    %58 = vector.extract_strided_slice %37 {offsets = [640, 0], sizes = [64, 8], strides = [1, 1]} : vector<1024x8xf32> to vector<64x8xf32>
    %c64_41 = arith.constant 64 : index
    %c80_42 = arith.constant 80 : index
    %59 = vector.load %arg15[%c64_41, %c80_42] : memref<128x128xf32, #tpu.memory_space<vmem>>, vector<64x8xf32>
    tpu.vector_store %arg15[%c64_41, %c80_42], %58 {strides = array<i32>} : memref<128x128xf32, #tpu.memory_space<vmem>>, vector<64x8xf32>,
    %60 = vector.extract_strided_slice %37 {offsets = [704, 0], sizes = [64, 8], strides = [1, 1]} : vector<1024x8xf32> to vector<64x8xf32>
    %c64_43 = arith.constant 64 : index
    %c88_44 = arith.constant 88 : index
    %61 = vector.load %arg15[%c64_43, %c88_44] : memref<128x128xf32, #tpu.memory_space<vmem>>, vector<64x8xf32>
    tpu.vector_store %arg15[%c64_43, %c88_44], %60 {strides = array<i32>} : memref<128x128xf32, #tpu.memory_space<vmem>>, vector<64x8xf32>,
    %62 = vector.extract_strided_slice %37 {offsets = [768, 0], sizes = [64, 8], strides = [1, 1]} : vector<1024x8xf32> to vector<64x8xf32>
    %c64_45 = arith.constant 64 : index
    %c96_46 = arith.constant 96 : index
    %63 = vector.load %arg15[%c64_45, %c96_46] : memref<128x128xf32, #tpu.memory_space<vmem>>, vector<64x8xf32>
    tpu.vector_store %arg15[%c64_45, %c96_46], %62 {strides = array<i32>} : memref<128x128xf32, #tpu.memory_space<vmem>>, vector<64x8xf32>,
    %64 = vector.extract_strided_slice %37 {offsets = [832, 0], sizes = [64, 8], strides = [1, 1]} : vector<1024x8xf32> to vector<64x8xf32>
    %c64_47 = arith.constant 64 : index
    %c104_48 = arith.constant 104 : index
    %65 = vector.load %arg15[%c64_47, %c104_48] : memref<128x128xf32, #tpu.memory_space<vmem>>, vector<64x8xf32>
    tpu.vector_store %arg15[%c64_47, %c104_48], %64 {strides = array<i32>} : memref<128x128xf32, #tpu.memory_space<vmem>>, vector<64x8xf32>,
    %66 = vector.extract_strided_slice %37 {offsets = [896, 0], sizes = [64, 8], strides = [1, 1]} : vector<1024x8xf32> to vector<64x8xf32>
    %c64_49 = arith.constant 64 : index
    %c112_50 = arith.constant 112 : index
    %67 = vector.load %arg15[%c64_49, %c112_50] : memref<128x128xf32, #tpu.memory_space<vmem>>, vector<64x8xf32>
    tpu.vector_store %arg15[%c64_49, %c112_50], %66 {strides = array<i32>} : memref<128x128xf32, #tpu.memory_space<vmem>>, vector<64x8xf32>,
    %68 = vector.extract_strided_slice %37 {offsets = [960, 0], sizes = [64, 8], strides = [1, 1]} : vector<1024x8xf32> to vector<64x8xf32>
    %c64_51 = arith.constant 64 : index
    %c120_52 = arith.constant 120 : index
    %69 = vector.load %arg15[%c64_51, %c120_52] : memref<128x128xf32, #tpu.memory_space<vmem>>, vector<64x8xf32>
    tpu.vector_store %arg15[%c64_51, %c120_52], %68 {strides = array<i32>} : memref<128x128xf32, #tpu.memory_space<vmem>>, vector<64x8xf32>,
    %c0_53 = arith.constant 0 : index
    %c0_54 = arith.constant 0 : index
    %70 = vector.load %arg15[%c0_53, %c0_54] : memref<128x128xf32, #tpu.memory_space<vmem>>, vector<128x128xf32>
    %71 = arith.truncf %70 : vector<128x128xf32> to vector<128x128xbf16>
    %c0_55 = arith.constant 0 : index
    %c0_56 = arith.constant 0 : index
    %72 = vector.load %arg3[%c0_55, %c0_56] : memref<128x32xbf16, #tpu.memory_space<vmem>>, vector<128x32xbf16>
    %cst_57 = arith.constant dense<0.000000e+00> : vector<128x32xf32>
    %73 = tpu.matmul %71, %72, %cst_57 {dimension_numbers = #tpu.dot_dimension_numbers<[1], [0], [0], [1], [0, 0, 1, 1], [], []>} : vector<128x128xbf16>, vector<128x32xbf16>, vector<128x32xf32> -> vector<128x32xf32>
    %c0_58 = arith.constant 0 : index
    %c0_59 = arith.constant 0 : index
    %74 = vector.load %arg4[%c0_58, %c0_59] : memref<1x32xf32, #tpu.memory_space<vmem>>, vector<1x32xf32>
    %75 = vector.broadcast %74 : vector<1x32xf32> to vector<128x32xf32>
    %76 = arith.addf %73, %75 : vector<128x32xf32>
    %cst_60 = arith.constant 0.000000e+00 : f32
    %77 = vector.broadcast %cst_60 : f32 to vector<128x32xf32>
    %78 = arith.cmpf oge, %76, %77 : vector<128x32xf32>
    %cst_61 = arith.constant 1.000000e-01 : f32
    %79 = vector.broadcast %cst_61 : f32 to vector<128x32xf32>
    %80 = arith.mulf %79, %76 : vector<128x32xf32>
    %81 = arith.select %78, %76, %80 : vector<128x32xi1>, vector<128x32xf32>
    %82 = arith.truncf %81 : vector<128x32xf32> to vector<128x32xbf16>
    %c0_62 = arith.constant 0 : index
    %c0_63 = arith.constant 0 : index
    %83 = vector.load %arg5[%c0_62, %c0_63] : memref<256x64xbf16, #tpu.memory_space<vmem>>, vector<256x64xbf16>
    %84 = vector.extract_strided_slice %82 {offsets = [0, 0], sizes = [64, 32], strides = [1, 1]} : vector<128x32xbf16> to vector<64x32xbf16>
    %cst_64 = arith.constant dense<0.000000e+00> : vector<256x32xf32>
    %85 = tpu.matmul %83, %84, %cst_64 {dimension_numbers = #tpu.dot_dimension_numbers<[1], [0], [0], [1], [0, 0, 1, 1], [], []>} : vector<256x64xbf16>, vector<64x32xbf16>, vector<256x32xf32> -> vector<256x32xf32>
    %86 = vector.extract_strided_slice %85 {offsets = [0, 0], sizes = [16, 32], strides = [1, 1]} : vector<256x32xf32> to vector<16x32xf32>
    %c0_65 = arith.constant 0 : index
    %c0_66 = arith.constant 0 : index
    %87 = vector.load %arg16[%c0_65, %c0_66] : memref<32x512xf32, #tpu.memory_space<vmem>>, vector<16x32xf32>
    tpu.vector_store %arg16[%c0_65, %c0_66], %86 {strides = array<i32>} : memref<32x512xf32, #tpu.memory_space<vmem>>, vector<16x32xf32>,
    %88 = vector.extract_strided_slice %85 {offsets = [16, 0], sizes = [16, 32], strides = [1, 1]} : vector<256x32xf32> to vector<16x32xf32>
    %c0_67 = arith.constant 0 : index
    %c32_68 = arith.constant 32 : index
    %89 = vector.load %arg16[%c0_67, %c32_68] : memref<32x512xf32, #tpu.memory_space<vmem>>, vector<16x32xf32>
    tpu.vector_store %arg16[%c0_67, %c32_68], %88 {strides = array<i32>} : memref<32x512xf32, #tpu.memory_space<vmem>>, vector<16x32xf32>,
    %90 = vector.extract_strided_slice %85 {offsets = [32, 0], sizes = [16, 32], strides = [1, 1]} : vector<256x32xf32> to vector<16x32xf32>
    %c0_69 = arith.constant 0 : index
    %c64_70 = arith.constant 64 : index
    %91 = vector.load %arg16[%c0_69, %c64_70] : memref<32x512xf32, #tpu.memory_space<vmem>>, vector<16x32xf32>
    tpu.vector_store %arg16[%c0_69, %c64_70], %90 {strides = array<i32>} : memref<32x512xf32, #tpu.memory_space<vmem>>, vector<16x32xf32>,
    %92 = vector.extract_strided_slice %85 {offsets = [48, 0], sizes = [16, 32], strides = [1, 1]} : vector<256x32xf32> to vector<16x32xf32>
    %c0_71 = arith.constant 0 : index
    %c96_72 = arith.constant 96 : index
    %93 = vector.load %arg16[%c0_71, %c96_72] : memref<32x512xf32, #tpu.memory_space<vmem>>, vector<16x32xf32>
    tpu.vector_store %arg16[%c0_71, %c96_72], %92 {strides = array<i32>} : memref<32x512xf32, #tpu.memory_space<vmem>>, vector<16x32xf32>,
    %94 = vector.extract_strided_slice %85 {offsets = [64, 0], sizes = [16, 32], strides = [1, 1]} : vector<256x32xf32> to vector<16x32xf32>
    %c0_73 = arith.constant 0 : index
    %c128 = arith.constant 128 : index
    %95 = vector.load %arg16[%c0_73, %c128] : memref<32x512xf32, #tpu.memory_space<vmem>>, vector<16x32xf32>
    tpu.vector_store %arg16[%c0_73, %c128], %94 {strides = array<i32>} : memref<32x512xf32, #tpu.memory_space<vmem>>, vector<16x32xf32>,
    %96 = vector.extract_strided_slice %85 {offsets = [80, 0], sizes = [16, 32], strides = [1, 1]} : vector<256x32xf32> to vector<16x32xf32>
    %c0_74 = arith.constant 0 : index
    %c160 = arith.constant 160 : index
    %97 = vector.load %arg16[%c0_74, %c160] : memref<32x512xf32, #tpu.memory_space<vmem>>, vector<16x32xf32>
    tpu.vector_store %arg16[%c0_74, %c160], %96 {strides = array<i32>} : memref<32x512xf32, #tpu.memory_space<vmem>>, vector<16x32xf32>,
    %98 = vector.extract_strided_slice %85 {offsets = [96, 0], sizes = [16, 32], strides = [1, 1]} : vector<256x32xf32> to vector<16x32xf32>
    %c0_75 = arith.constant 0 : index
    %c192 = arith.constant 192 : index
    %99 = vector.load %arg16[%c0_75, %c192] : memref<32x512xf32, #tpu.memory_space<vmem>>, vector<16x32xf32>
    tpu.vector_store %arg16[%c0_75, %c192], %98 {strides = array<i32>} : memref<32x512xf32, #tpu.memory_space<vmem>>, vector<16x32xf32>,
    %100 = vector.extract_strided_slice %85 {offsets = [112, 0], sizes = [16, 32], strides = [1, 1]} : vector<256x32xf32> to vector<16x32xf32>
    %c0_76 = arith.constant 0 : index
    %c224 = arith.constant 224 : index
    %101 = vector.load %arg16[%c0_76, %c224] : memref<32x512xf32, #tpu.memory_space<vmem>>, vector<16x32xf32>
    tpu.vector_store %arg16[%c0_76, %c224], %100 {strides = array<i32>} : memref<32x512xf32, #tpu.memory_space<vmem>>, vector<16x32xf32>,
    %102 = vector.extract_strided_slice %85 {offsets = [128, 0], sizes = [16, 32], strides = [1, 1]} : vector<256x32xf32> to vector<16x32xf32>
    %c0_77 = arith.constant 0 : index
    %c256 = arith.constant 256 : index
    %103 = vector.load %arg16[%c0_77, %c256] : memref<32x512xf32, #tpu.memory_space<vmem>>, vector<16x32xf32>
    tpu.vector_store %arg16[%c0_77, %c256], %102 {strides = array<i32>} : memref<32x512xf32, #tpu.memory_space<vmem>>, vector<16x32xf32>,
    %104 = vector.extract_strided_slice %85 {offsets = [144, 0], sizes = [16, 32], strides = [1, 1]} : vector<256x32xf32> to vector<16x32xf32>
    %c0_78 = arith.constant 0 : index
    %c288 = arith.constant 288 : index
    %105 = vector.load %arg16[%c0_78, %c288] : memref<32x512xf32, #tpu.memory_space<vmem>>, vector<16x32xf32>
    tpu.vector_store %arg16[%c0_78, %c288], %104 {strides = array<i32>} : memref<32x512xf32, #tpu.memory_space<vmem>>, vector<16x32xf32>,
    %106 = vector.extract_strided_slice %85 {offsets = [160, 0], sizes = [16, 32], strides = [1, 1]} : vector<256x32xf32> to vector<16x32xf32>
    %c0_79 = arith.constant 0 : index
    %c320 = arith.constant 320 : index
    %107 = vector.load %arg16[%c0_79, %c320] : memref<32x512xf32, #tpu.memory_space<vmem>>, vector<16x32xf32>
    tpu.vector_store %arg16[%c0_79, %c320], %106 {strides = array<i32>} : memref<32x512xf32, #tpu.memory_space<vmem>>, vector<16x32xf32>,
    %108 = vector.extract_strided_slice %85 {offsets = [176, 0], sizes = [16, 32], strides = [1, 1]} : vector<256x32xf32> to vector<16x32xf32>
    %c0_80 = arith.constant 0 : index
    %c352 = arith.constant 352 : index
    %109 = vector.load %arg16[%c0_80, %c352] : memref<32x512xf32, #tpu.memory_space<vmem>>, vector<16x32xf32>
    tpu.vector_store %arg16[%c0_80, %c352], %108 {strides = array<i32>} : memref<32x512xf32, #tpu.memory_space<vmem>>, vector<16x32xf32>,
    %110 = vector.extract_strided_slice %85 {offsets = [192, 0], sizes = [16, 32], strides = [1, 1]} : vector<256x32xf32> to vector<16x32xf32>
    %c0_81 = arith.constant 0 : index
    %c384 = arith.constant 384 : index
    %111 = vector.load %arg16[%c0_81, %c384] : memref<32x512xf32, #tpu.memory_space<vmem>>, vector<16x32xf32>
    tpu.vector_store %arg16[%c0_81, %c384], %110 {strides = array<i32>} : memref<32x512xf32, #tpu.memory_space<vmem>>, vector<16x32xf32>,
    %112 = vector.extract_strided_slice %85 {offsets = [208, 0], sizes = [16, 32], strides = [1, 1]} : vector<256x32xf32> to vector<16x32xf32>
    %c0_82 = arith.constant 0 : index
    %c416 = arith.constant 416 : index
    %113 = vector.load %arg16[%c0_82, %c416] : memref<32x512xf32, #tpu.memory_space<vmem>>, vector<16x32xf32>
    tpu.vector_store %arg16[%c0_82, %c416], %112 {strides = array<i32>} : memref<32x512xf32, #tpu.memory_space<vmem>>, vector<16x32xf32>,
    %114 = vector.extract_strided_slice %85 {offsets = [224, 0], sizes = [16, 32], strides = [1, 1]} : vector<256x32xf32> to vector<16x32xf32>
    %c0_83 = arith.constant 0 : index
    %c448 = arith.constant 448 : index
    %115 = vector.load %arg16[%c0_83, %c448] : memref<32x512xf32, #tpu.memory_space<vmem>>, vector<16x32xf32>
    tpu.vector_store %arg16[%c0_83, %c448], %114 {strides = array<i32>} : memref<32x512xf32, #tpu.memory_space<vmem>>, vector<16x32xf32>,
    %116 = vector.extract_strided_slice %85 {offsets = [240, 0], sizes = [16, 32], strides = [1, 1]} : vector<256x32xf32> to vector<16x32xf32>
    %c0_84 = arith.constant 0 : index
    %c480 = arith.constant 480 : index
    %117 = vector.load %arg16[%c0_84, %c480] : memref<32x512xf32, #tpu.memory_space<vmem>>, vector<16x32xf32>
    tpu.vector_store %arg16[%c0_84, %c480], %116 {strides = array<i32>} : memref<32x512xf32, #tpu.memory_space<vmem>>, vector<16x32xf32>,
    %118 = vector.extract_strided_slice %82 {offsets = [64, 0], sizes = [64, 32], strides = [1, 1]} : vector<128x32xbf16> to vector<64x32xbf16>
    %cst_85 = arith.constant dense<0.000000e+00> : vector<256x32xf32>
    %119 = tpu.matmul %83, %118, %cst_85 {dimension_numbers = #tpu.dot_dimension_numbers<[1], [0], [0], [1], [0, 0, 1, 1], [], []>} : vector<256x64xbf16>, vector<64x32xbf16>, vector<256x32xf32> -> vector<256x32xf32>
    %120 = vector.extract_strided_slice %119 {offsets = [0, 0], sizes = [16, 32], strides = [1, 1]} : vector<256x32xf32> to vector<16x32xf32>
    %c16_86 = arith.constant 16 : index
    %c0_87 = arith.constant 0 : index
    %121 = vector.load %arg16[%c16_86, %c0_87] : memref<32x512xf32, #tpu.memory_space<vmem>>, vector<16x32xf32>
    tpu.vector_store %arg16[%c16_86, %c0_87], %120 {strides = array<i32>} : memref<32x512xf32, #tpu.memory_space<vmem>>, vector<16x32xf32>,
    %122 = vector.extract_strided_slice %119 {offsets = [16, 0], sizes = [16, 32], strides = [1, 1]} : vector<256x32xf32> to vector<16x32xf32>
    %c16_88 = arith.constant 16 : index
    %c32_89 = arith.constant 32 : index
    %123 = vector.load %arg16[%c16_88, %c32_89] : memref<32x512xf32, #tpu.memory_space<vmem>>, vector<16x32xf32>
    tpu.vector_store %arg16[%c16_88, %c32_89], %122 {strides = array<i32>} : memref<32x512xf32, #tpu.memory_space<vmem>>, vector<16x32xf32>,
    %124 = vector.extract_strided_slice %119 {offsets = [32, 0], sizes = [16, 32], strides = [1, 1]} : vector<256x32xf32> to vector<16x32xf32>
    %c16_90 = arith.constant 16 : index
    %c64_91 = arith.constant 64 : index
    %125 = vector.load %arg16[%c16_90, %c64_91] : memref<32x512xf32, #tpu.memory_space<vmem>>, vector<16x32xf32>
    tpu.vector_store %arg16[%c16_90, %c64_91], %124 {strides = array<i32>} : memref<32x512xf32, #tpu.memory_space<vmem>>, vector<16x32xf32>,
    %126 = vector.extract_strided_slice %119 {offsets = [48, 0], sizes = [16, 32], strides = [1, 1]} : vector<256x32xf32> to vector<16x32xf32>
    %c16_92 = arith.constant 16 : index
    %c96_93 = arith.constant 96 : index
    %127 = vector.load %arg16[%c16_92, %c96_93] : memref<32x512xf32, #tpu.memory_space<vmem>>, vector<16x32xf32>
    tpu.vector_store %arg16[%c16_92, %c96_93], %126 {strides = array<i32>} : memref<32x512xf32, #tpu.memory_space<vmem>>, vector<16x32xf32>,
    %128 = vector.extract_strided_slice %119 {offsets = [64, 0], sizes = [16, 32], strides = [1, 1]} : vector<256x32xf32> to vector<16x32xf32>
    %c16_94 = arith.constant 16 : index
    %c128_95 = arith.constant 128 : index
    %129 = vector.load %arg16[%c16_94, %c128_95] : memref<32x512xf32, #tpu.memory_space<vmem>>, vector<16x32xf32>
    tpu.vector_store %arg16[%c16_94, %c128_95], %128 {strides = array<i32>} : memref<32x512xf32, #tpu.memory_space<vmem>>, vector<16x32xf32>,
    %130 = vector.extract_strided_slice %119 {offsets = [80, 0], sizes = [16, 32], strides = [1, 1]} : vector<256x32xf32> to vector<16x32xf32>
    %c16_96 = arith.constant 16 : index
    %c160_97 = arith.constant 160 : index
    %131 = vector.load %arg16[%c16_96, %c160_97] : memref<32x512xf32, #tpu.memory_space<vmem>>, vector<16x32xf32>
    tpu.vector_store %arg16[%c16_96, %c160_97], %130 {strides = array<i32>} : memref<32x512xf32, #tpu.memory_space<vmem>>, vector<16x32xf32>,
    %132 = vector.extract_strided_slice %119 {offsets = [96, 0], sizes = [16, 32], strides = [1, 1]} : vector<256x32xf32> to vector<16x32xf32>
    %c16_98 = arith.constant 16 : index
    %c192_99 = arith.constant 192 : index
    %133 = vector.load %arg16[%c16_98, %c192_99] : memref<32x512xf32, #tpu.memory_space<vmem>>, vector<16x32xf32>
    tpu.vector_store %arg16[%c16_98, %c192_99], %132 {strides = array<i32>} : memref<32x512xf32, #tpu.memory_space<vmem>>, vector<16x32xf32>,
    %134 = vector.extract_strided_slice %119 {offsets = [112, 0], sizes = [16, 32], strides = [1, 1]} : vector<256x32xf32> to vector<16x32xf32>
    %c16_100 = arith.constant 16 : index
    %c224_101 = arith.constant 224 : index
    %135 = vector.load %arg16[%c16_100, %c224_101] : memref<32x512xf32, #tpu.memory_space<vmem>>, vector<16x32xf32>
    tpu.vector_store %arg16[%c16_100, %c224_101], %134 {strides = array<i32>} : memref<32x512xf32, #tpu.memory_space<vmem>>, vector<16x32xf32>,
    %136 = vector.extract_strided_slice %119 {offsets = [128, 0], sizes = [16, 32], strides = [1, 1]} : vector<256x32xf32> to vector<16x32xf32>
    %c16_102 = arith.constant 16 : index
    %c256_103 = arith.constant 256 : index
    %137 = vector.load %arg16[%c16_102, %c256_103] : memref<32x512xf32, #tpu.memory_space<vmem>>, vector<16x32xf32>
    tpu.vector_store %arg16[%c16_102, %c256_103], %136 {strides = array<i32>} : memref<32x512xf32, #tpu.memory_space<vmem>>, vector<16x32xf32>,
    %138 = vector.extract_strided_slice %119 {offsets = [144, 0], sizes = [16, 32], strides = [1, 1]} : vector<256x32xf32> to vector<16x32xf32>
    %c16_104 = arith.constant 16 : index
    %c288_105 = arith.constant 288 : index
    %139 = vector.load %arg16[%c16_104, %c288_105] : memref<32x512xf32, #tpu.memory_space<vmem>>, vector<16x32xf32>
    tpu.vector_store %arg16[%c16_104, %c288_105], %138 {strides = array<i32>} : memref<32x512xf32, #tpu.memory_space<vmem>>, vector<16x32xf32>,
    %140 = vector.extract_strided_slice %119 {offsets = [160, 0], sizes = [16, 32], strides = [1, 1]} : vector<256x32xf32> to vector<16x32xf32>
    %c16_106 = arith.constant 16 : index
    %c320_107 = arith.constant 320 : index
    %141 = vector.load %arg16[%c16_106, %c320_107] : memref<32x512xf32, #tpu.memory_space<vmem>>, vector<16x32xf32>
    tpu.vector_store %arg16[%c16_106, %c320_107], %140 {strides = array<i32>} : memref<32x512xf32, #tpu.memory_space<vmem>>, vector<16x32xf32>,
    %142 = vector.extract_strided_slice %119 {offsets = [176, 0], sizes = [16, 32], strides = [1, 1]} : vector<256x32xf32> to vector<16x32xf32>
    %c16_108 = arith.constant 16 : index
    %c352_109 = arith.constant 352 : index
    %143 = vector.load %arg16[%c16_108, %c352_109] : memref<32x512xf32, #tpu.memory_space<vmem>>, vector<16x32xf32>
    tpu.vector_store %arg16[%c16_108, %c352_109], %142 {strides = array<i32>} : memref<32x512xf32, #tpu.memory_space<vmem>>, vector<16x32xf32>,
    %144 = vector.extract_strided_slice %119 {offsets = [192, 0], sizes = [16, 32], strides = [1, 1]} : vector<256x32xf32> to vector<16x32xf32>
    %c16_110 = arith.constant 16 : index
    %c384_111 = arith.constant 384 : index
    %145 = vector.load %arg16[%c16_110, %c384_111] : memref<32x512xf32, #tpu.memory_space<vmem>>, vector<16x32xf32>
    tpu.vector_store %arg16[%c16_110, %c384_111], %144 {strides = array<i32>} : memref<32x512xf32, #tpu.memory_space<vmem>>, vector<16x32xf32>,
    %146 = vector.extract_strided_slice %119 {offsets = [208, 0], sizes = [16, 32], strides = [1, 1]} : vector<256x32xf32> to vector<16x32xf32>
    %c16_112 = arith.constant 16 : index
    %c416_113 = arith.constant 416 : index
    %147 = vector.load %arg16[%c16_112, %c416_113] : memref<32x512xf32, #tpu.memory_space<vmem>>, vector<16x32xf32>
    tpu.vector_store %arg16[%c16_112, %c416_113], %146 {strides = array<i32>} : memref<32x512xf32, #tpu.memory_space<vmem>>, vector<16x32xf32>,
    %148 = vector.extract_strided_slice %119 {offsets = [224, 0], sizes = [16, 32], strides = [1, 1]} : vector<256x32xf32> to vector<16x32xf32>
    %c16_114 = arith.constant 16 : index
    %c448_115 = arith.constant 448 : index
    %149 = vector.load %arg16[%c16_114, %c448_115] : memref<32x512xf32, #tpu.memory_space<vmem>>, vector<16x32xf32>
    tpu.vector_store %arg16[%c16_114, %c448_115], %148 {strides = array<i32>} : memref<32x512xf32, #tpu.memory_space<vmem>>, vector<16x32xf32>,
    %150 = vector.extract_strided_slice %119 {offsets = [240, 0], sizes = [16, 32], strides = [1, 1]} : vector<256x32xf32> to vector<16x32xf32>
    %c16_116 = arith.constant 16 : index
    %c480_117 = arith.constant 480 : index
    %151 = vector.load %arg16[%c16_116, %c480_117] : memref<32x512xf32, #tpu.memory_space<vmem>>, vector<16x32xf32>
    tpu.vector_store %arg16[%c16_116, %c480_117], %150 {strides = array<i32>} : memref<32x512xf32, #tpu.memory_space<vmem>>, vector<16x32xf32>,
    %c0_118 = arith.constant 0 : index
    %c0_119 = arith.constant 0 : index
    %152 = vector.load %arg16[%c0_118, %c0_119] : memref<32x512xf32, #tpu.memory_space<vmem>>, vector<32x512xf32>
    %153 = arith.truncf %152 : vector<32x512xf32> to vector<32x512xbf16>
    %c0_120 = arith.constant 0 : index
    %c0_121 = arith.constant 0 : index
    %154 = vector.load %arg6[%c0_120, %c0_121] : memref<512x64xbf16, #tpu.memory_space<vmem>>, vector<512x64xbf16>
    %cst_122 = arith.constant dense<0.000000e+00> : vector<32x64xf32>
    %155 = tpu.matmul %153, %154, %cst_122 {dimension_numbers = #tpu.dot_dimension_numbers<[1], [0], [0], [1], [0, 0, 1, 1], [], []>} : vector<32x512xbf16>, vector<512x64xbf16>, vector<32x64xf32> -> vector<32x64xf32>
    %c0_123 = arith.constant 0 : index
    %c0_124 = arith.constant 0 : index
    %156 = vector.load %arg7[%c0_123, %c0_124] : memref<1x64xf32, #tpu.memory_space<vmem>>, vector<1x64xf32>
    %157 = vector.broadcast %156 : vector<1x64xf32> to vector<32x64xf32>
    %158 = arith.addf %155, %157 : vector<32x64xf32>
    %cst_125 = arith.constant 0.000000e+00 : f32
    %159 = vector.broadcast %cst_125 : f32 to vector<32x64xf32>
    %160 = arith.cmpf oge, %158, %159 : vector<32x64xf32>
    %cst_126 = arith.constant 1.000000e-01 : f32
    %161 = vector.broadcast %cst_126 : f32 to vector<32x64xf32>
    %162 = arith.mulf %161, %158 : vector<32x64xf32>
    %163 = arith.select %160, %158, %162 : vector<32x64xi1>, vector<32x64xf32>
    %164 = arith.truncf %163 : vector<32x64xf32> to vector<32x64xbf16>
    %c0_127 = arith.constant 0 : index
    %c0_128 = arith.constant 0 : index
    %165 = vector.load %arg8[%c0_127, %c0_128] : memref<64x16xbf16, #tpu.memory_space<vmem>>, vector<64x16xbf16>
    %166 = vector.extract_strided_slice %164 {offsets = [0, 0], sizes = [16, 64], strides = [1, 1]} : vector<32x64xbf16> to vector<16x64xbf16>
    %cst_129 = arith.constant dense<0.000000e+00> : vector<64x64xf32>
    %167 = tpu.matmul %165, %166, %cst_129 {dimension_numbers = #tpu.dot_dimension_numbers<[1], [0], [0], [1], [0, 0, 1, 1], [], []>} : vector<64x16xbf16>, vector<16x64xbf16>, vector<64x64xf32> -> vector<64x64xf32>
    %168 = vector.extract_strided_slice %167 {offsets = [0, 0], sizes = [4, 64], strides = [1, 1]} : vector<64x64xf32> to vector<4x64xf32>
    %c0_130 = arith.constant 0 : index
    %c0_131 = arith.constant 0 : index
    %169 = vector.load %arg17[%c0_130, %c0_131] : memref<8x1024xf32, #tpu.memory_space<vmem>>, vector<4x64xf32>
    tpu.vector_store %arg17[%c0_130, %c0_131], %168 {strides = array<i32>} : memref<8x1024xf32, #tpu.memory_space<vmem>>, vector<4x64xf32>,
    %170 = vector.extract_strided_slice %167 {offsets = [4, 0], sizes = [4, 64], strides = [1, 1]} : vector<64x64xf32> to vector<4x64xf32>
    %c0_132 = arith.constant 0 : index
    %c64_133 = arith.constant 64 : index
    %171 = vector.load %arg17[%c0_132, %c64_133] : memref<8x1024xf32, #tpu.memory_space<vmem>>, vector<4x64xf32>
    tpu.vector_store %arg17[%c0_132, %c64_133], %170 {strides = array<i32>} : memref<8x1024xf32, #tpu.memory_space<vmem>>, vector<4x64xf32>,
    %172 = vector.extract_strided_slice %167 {offsets = [8, 0], sizes = [4, 64], strides = [1, 1]} : vector<64x64xf32> to vector<4x64xf32>
    %c0_134 = arith.constant 0 : index
    %c128_135 = arith.constant 128 : index
    %173 = vector.load %arg17[%c0_134, %c128_135] : memref<8x1024xf32, #tpu.memory_space<vmem>>, vector<4x64xf32>
    tpu.vector_store %arg17[%c0_134, %c128_135], %172 {strides = array<i32>} : memref<8x1024xf32, #tpu.memory_space<vmem>>, vector<4x64xf32>,
    %174 = vector.extract_strided_slice %167 {offsets = [12, 0], sizes = [4, 64], strides = [1, 1]} : vector<64x64xf32> to vector<4x64xf32>
    %c0_136 = arith.constant 0 : index
    %c192_137 = arith.constant 192 : index
    %175 = vector.load %arg17[%c0_136, %c192_137] : memref<8x1024xf32, #tpu.memory_space<vmem>>, vector<4x64xf32>
    tpu.vector_store %arg17[%c0_136, %c192_137], %174 {strides = array<i32>} : memref<8x1024xf32, #tpu.memory_space<vmem>>, vector<4x64xf32>,
    %176 = vector.extract_strided_slice %167 {offsets = [16, 0], sizes = [4, 64], strides = [1, 1]} : vector<64x64xf32> to vector<4x64xf32>
    %c0_138 = arith.constant 0 : index
    %c256_139 = arith.constant 256 : index
    %177 = vector.load %arg17[%c0_138, %c256_139] : memref<8x1024xf32, #tpu.memory_space<vmem>>, vector<4x64xf32>
    tpu.vector_store %arg17[%c0_138, %c256_139], %176 {strides = array<i32>} : memref<8x1024xf32, #tpu.memory_space<vmem>>, vector<4x64xf32>,
    %178 = vector.extract_strided_slice %167 {offsets = [20, 0], sizes = [4, 64], strides = [1, 1]} : vector<64x64xf32> to vector<4x64xf32>
    %c0_140 = arith.constant 0 : index
    %c320_141 = arith.constant 320 : index
    %179 = vector.load %arg17[%c0_140, %c320_141] : memref<8x1024xf32, #tpu.memory_space<vmem>>, vector<4x64xf32>
    tpu.vector_store %arg17[%c0_140, %c320_141], %178 {strides = array<i32>} : memref<8x1024xf32, #tpu.memory_space<vmem>>, vector<4x64xf32>,
    %180 = vector.extract_strided_slice %167 {offsets = [24, 0], sizes = [4, 64], strides = [1, 1]} : vector<64x64xf32> to vector<4x64xf32>
    %c0_142 = arith.constant 0 : index
    %c384_143 = arith.constant 384 : index
    %181 = vector.load %arg17[%c0_142, %c384_143] : memref<8x1024xf32, #tpu.memory_space<vmem>>, vector<4x64xf32>
    tpu.vector_store %arg17[%c0_142, %c384_143], %180 {strides = array<i32>} : memref<8x1024xf32, #tpu.memory_space<vmem>>, vector<4x64xf32>,
    %182 = vector.extract_strided_slice %167 {offsets = [28, 0], sizes = [4, 64], strides = [1, 1]} : vector<64x64xf32> to vector<4x64xf32>
    %c0_144 = arith.constant 0 : index
    %c448_145 = arith.constant 448 : index
    %183 = vector.load %arg17[%c0_144, %c448_145] : memref<8x1024xf32, #tpu.memory_space<vmem>>, vector<4x64xf32>
    tpu.vector_store %arg17[%c0_144, %c448_145], %182 {strides = array<i32>} : memref<8x1024xf32, #tpu.memory_space<vmem>>, vector<4x64xf32>,
    %184 = vector.extract_strided_slice %167 {offsets = [32, 0], sizes = [4, 64], strides = [1, 1]} : vector<64x64xf32> to vector<4x64xf32>
    %c0_146 = arith.constant 0 : index
    %c512 = arith.constant 512 : index
    %185 = vector.load %arg17[%c0_146, %c512] : memref<8x1024xf32, #tpu.memory_space<vmem>>, vector<4x64xf32>
    tpu.vector_store %arg17[%c0_146, %c512], %184 {strides = array<i32>} : memref<8x1024xf32, #tpu.memory_space<vmem>>, vector<4x64xf32>,
    %186 = vector.extract_strided_slice %167 {offsets = [36, 0], sizes = [4, 64], strides = [1, 1]} : vector<64x64xf32> to vector<4x64xf32>
    %c0_147 = arith.constant 0 : index
    %c576 = arith.constant 576 : index
    %187 = vector.load %arg17[%c0_147, %c576] : memref<8x1024xf32, #tpu.memory_space<vmem>>, vector<4x64xf32>
    tpu.vector_store %arg17[%c0_147, %c576], %186 {strides = array<i32>} : memref<8x1024xf32, #tpu.memory_space<vmem>>, vector<4x64xf32>,
    %188 = vector.extract_strided_slice %167 {offsets = [40, 0], sizes = [4, 64], strides = [1, 1]} : vector<64x64xf32> to vector<4x64xf32>
    %c0_148 = arith.constant 0 : index
    %c640 = arith.constant 640 : index
    %189 = vector.load %arg17[%c0_148, %c640] : memref<8x1024xf32, #tpu.memory_space<vmem>>, vector<4x64xf32>
    tpu.vector_store %arg17[%c0_148, %c640], %188 {strides = array<i32>} : memref<8x1024xf32, #tpu.memory_space<vmem>>, vector<4x64xf32>,
    %190 = vector.extract_strided_slice %167 {offsets = [44, 0], sizes = [4, 64], strides = [1, 1]} : vector<64x64xf32> to vector<4x64xf32>
    %c0_149 = arith.constant 0 : index
    %c704 = arith.constant 704 : index
    %191 = vector.load %arg17[%c0_149, %c704] : memref<8x1024xf32, #tpu.memory_space<vmem>>, vector<4x64xf32>
    tpu.vector_store %arg17[%c0_149, %c704], %190 {strides = array<i32>} : memref<8x1024xf32, #tpu.memory_space<vmem>>, vector<4x64xf32>,
    %192 = vector.extract_strided_slice %167 {offsets = [48, 0], sizes = [4, 64], strides = [1, 1]} : vector<64x64xf32> to vector<4x64xf32>
    %c0_150 = arith.constant 0 : index
    %c768 = arith.constant 768 : index
    %193 = vector.load %arg17[%c0_150, %c768] : memref<8x1024xf32, #tpu.memory_space<vmem>>, vector<4x64xf32>
    tpu.vector_store %arg17[%c0_150, %c768], %192 {strides = array<i32>} : memref<8x1024xf32, #tpu.memory_space<vmem>>, vector<4x64xf32>,
    %194 = vector.extract_strided_slice %167 {offsets = [52, 0], sizes = [4, 64], strides = [1, 1]} : vector<64x64xf32> to vector<4x64xf32>
    %c0_151 = arith.constant 0 : index
    %c832 = arith.constant 832 : index
    %195 = vector.load %arg17[%c0_151, %c832] : memref<8x1024xf32, #tpu.memory_space<vmem>>, vector<4x64xf32>
    tpu.vector_store %arg17[%c0_151, %c832], %194 {strides = array<i32>} : memref<8x1024xf32, #tpu.memory_space<vmem>>, vector<4x64xf32>,
    %196 = vector.extract_strided_slice %167 {offsets = [56, 0], sizes = [4, 64], strides = [1, 1]} : vector<64x64xf32> to vector<4x64xf32>
    %c0_152 = arith.constant 0 : index
    %c896 = arith.constant 896 : index
    %197 = vector.load %arg17[%c0_152, %c896] : memref<8x1024xf32, #tpu.memory_space<vmem>>, vector<4x64xf32>
    tpu.vector_store %arg17[%c0_152, %c896], %196 {strides = array<i32>} : memref<8x1024xf32, #tpu.memory_space<vmem>>, vector<4x64xf32>,
    %198 = vector.extract_strided_slice %167 {offsets = [60, 0], sizes = [4, 64], strides = [1, 1]} : vector<64x64xf32> to vector<4x64xf32>
    %c0_153 = arith.constant 0 : index
    %c960 = arith.constant 960 : index
    %199 = vector.load %arg17[%c0_153, %c960] : memref<8x1024xf32, #tpu.memory_space<vmem>>, vector<4x64xf32>
    tpu.vector_store %arg17[%c0_153, %c960], %198 {strides = array<i32>} : memref<8x1024xf32, #tpu.memory_space<vmem>>, vector<4x64xf32>,
    %200 = vector.extract_strided_slice %164 {offsets = [16, 0], sizes = [16, 64], strides = [1, 1]} : vector<32x64xbf16> to vector<16x64xbf16>
    %cst_154 = arith.constant dense<0.000000e+00> : vector<64x64xf32>
    %201 = tpu.matmul %165, %200, %cst_154 {dimension_numbers = #tpu.dot_dimension_numbers<[1], [0], [0], [1], [0, 0, 1, 1], [], []>} : vector<64x16xbf16>, vector<16x64xbf16>, vector<64x64xf32> -> vector<64x64xf32>
    %202 = vector.extract_strided_slice %201 {offsets = [0, 0], sizes = [4, 64], strides = [1, 1]} : vector<64x64xf32> to vector<4x64xf32>
    %c4 = arith.constant 4 : index
    %c0_155 = arith.constant 0 : index
    %203 = vector.load %arg17[%c4, %c0_155] : memref<8x1024xf32, #tpu.memory_space<vmem>>, vector<4x64xf32>
    tpu.vector_store %arg17[%c4, %c0_155], %202 {strides = array<i32>} : memref<8x1024xf32, #tpu.memory_space<vmem>>, vector<4x64xf32>,
    %204 = vector.extract_strided_slice %201 {offsets = [4, 0], sizes = [4, 64], strides = [1, 1]} : vector<64x64xf32> to vector<4x64xf32>
    %c4_156 = arith.constant 4 : index
    %c64_157 = arith.constant 64 : index
    %205 = vector.load %arg17[%c4_156, %c64_157] : memref<8x1024xf32, #tpu.memory_space<vmem>>, vector<4x64xf32>
    tpu.vector_store %arg17[%c4_156, %c64_157], %204 {strides = array<i32>} : memref<8x1024xf32, #tpu.memory_space<vmem>>, vector<4x64xf32>,
    %206 = vector.extract_strided_slice %201 {offsets = [8, 0], sizes = [4, 64], strides = [1, 1]} : vector<64x64xf32> to vector<4x64xf32>
    %c4_158 = arith.constant 4 : index
    %c128_159 = arith.constant 128 : index
    %207 = vector.load %arg17[%c4_158, %c128_159] : memref<8x1024xf32, #tpu.memory_space<vmem>>, vector<4x64xf32>
    tpu.vector_store %arg17[%c4_158, %c128_159], %206 {strides = array<i32>} : memref<8x1024xf32, #tpu.memory_space<vmem>>, vector<4x64xf32>,
    %208 = vector.extract_strided_slice %201 {offsets = [12, 0], sizes = [4, 64], strides = [1, 1]} : vector<64x64xf32> to vector<4x64xf32>
    %c4_160 = arith.constant 4 : index
    %c192_161 = arith.constant 192 : index
    %209 = vector.load %arg17[%c4_160, %c192_161] : memref<8x1024xf32, #tpu.memory_space<vmem>>, vector<4x64xf32>
    tpu.vector_store %arg17[%c4_160, %c192_161], %208 {strides = array<i32>} : memref<8x1024xf32, #tpu.memory_space<vmem>>, vector<4x64xf32>,
    %210 = vector.extract_strided_slice %201 {offsets = [16, 0], sizes = [4, 64], strides = [1, 1]} : vector<64x64xf32> to vector<4x64xf32>
    %c4_162 = arith.constant 4 : index
    %c256_163 = arith.constant 256 : index
    %211 = vector.load %arg17[%c4_162, %c256_163] : memref<8x1024xf32, #tpu.memory_space<vmem>>, vector<4x64xf32>
    tpu.vector_store %arg17[%c4_162, %c256_163], %210 {strides = array<i32>} : memref<8x1024xf32, #tpu.memory_space<vmem>>, vector<4x64xf32>,
    %212 = vector.extract_strided_slice %201 {offsets = [20, 0], sizes = [4, 64], strides = [1, 1]} : vector<64x64xf32> to vector<4x64xf32>
    %c4_164 = arith.constant 4 : index
    %c320_165 = arith.constant 320 : index
    %213 = vector.load %arg17[%c4_164, %c320_165] : memref<8x1024xf32, #tpu.memory_space<vmem>>, vector<4x64xf32>
    tpu.vector_store %arg17[%c4_164, %c320_165], %212 {strides = array<i32>} : memref<8x1024xf32, #tpu.memory_space<vmem>>, vector<4x64xf32>,
    %214 = vector.extract_strided_slice %201 {offsets = [24, 0], sizes = [4, 64], strides = [1, 1]} : vector<64x64xf32> to vector<4x64xf32>
    %c4_166 = arith.constant 4 : index
    %c384_167 = arith.constant 384 : index
    %215 = vector.load %arg17[%c4_166, %c384_167] : memref<8x1024xf32, #tpu.memory_space<vmem>>, vector<4x64xf32>
    tpu.vector_store %arg17[%c4_166, %c384_167], %214 {strides = array<i32>} : memref<8x1024xf32, #tpu.memory_space<vmem>>, vector<4x64xf32>,
    %216 = vector.extract_strided_slice %201 {offsets = [28, 0], sizes = [4, 64], strides = [1, 1]} : vector<64x64xf32> to vector<4x64xf32>
    %c4_168 = arith.constant 4 : index
    %c448_169 = arith.constant 448 : index
    %217 = vector.load %arg17[%c4_168, %c448_169] : memref<8x1024xf32, #tpu.memory_space<vmem>>, vector<4x64xf32>
    tpu.vector_store %arg17[%c4_168, %c448_169], %216 {strides = array<i32>} : memref<8x1024xf32, #tpu.memory_space<vmem>>, vector<4x64xf32>,
    %218 = vector.extract_strided_slice %201 {offsets = [32, 0], sizes = [4, 64], strides = [1, 1]} : vector<64x64xf32> to vector<4x64xf32>
    %c4_170 = arith.constant 4 : index
    %c512_171 = arith.constant 512 : index
    %219 = vector.load %arg17[%c4_170, %c512_171] : memref<8x1024xf32, #tpu.memory_space<vmem>>, vector<4x64xf32>
    tpu.vector_store %arg17[%c4_170, %c512_171], %218 {strides = array<i32>} : memref<8x1024xf32, #tpu.memory_space<vmem>>, vector<4x64xf32>,
    %220 = vector.extract_strided_slice %201 {offsets = [36, 0], sizes = [4, 64], strides = [1, 1]} : vector<64x64xf32> to vector<4x64xf32>
    %c4_172 = arith.constant 4 : index
    %c576_173 = arith.constant 576 : index
    %221 = vector.load %arg17[%c4_172, %c576_173] : memref<8x1024xf32, #tpu.memory_space<vmem>>, vector<4x64xf32>
    tpu.vector_store %arg17[%c4_172, %c576_173], %220 {strides = array<i32>} : memref<8x1024xf32, #tpu.memory_space<vmem>>, vector<4x64xf32>,
    %222 = vector.extract_strided_slice %201 {offsets = [40, 0], sizes = [4, 64], strides = [1, 1]} : vector<64x64xf32> to vector<4x64xf32>
    %c4_174 = arith.constant 4 : index
    %c640_175 = arith.constant 640 : index
    %223 = vector.load %arg17[%c4_174, %c640_175] : memref<8x1024xf32, #tpu.memory_space<vmem>>, vector<4x64xf32>
    tpu.vector_store %arg17[%c4_174, %c640_175], %222 {strides = array<i32>} : memref<8x1024xf32, #tpu.memory_space<vmem>>, vector<4x64xf32>,
    %224 = vector.extract_strided_slice %201 {offsets = [44, 0], sizes = [4, 64], strides = [1, 1]} : vector<64x64xf32> to vector<4x64xf32>
    %c4_176 = arith.constant 4 : index
    %c704_177 = arith.constant 704 : index
    %225 = vector.load %arg17[%c4_176, %c704_177] : memref<8x1024xf32, #tpu.memory_space<vmem>>, vector<4x64xf32>
    tpu.vector_store %arg17[%c4_176, %c704_177], %224 {strides = array<i32>} : memref<8x1024xf32, #tpu.memory_space<vmem>>, vector<4x64xf32>,
    %226 = vector.extract_strided_slice %201 {offsets = [48, 0], sizes = [4, 64], strides = [1, 1]} : vector<64x64xf32> to vector<4x64xf32>
    %c4_178 = arith.constant 4 : index
    %c768_179 = arith.constant 768 : index
    %227 = vector.load %arg17[%c4_178, %c768_179] : memref<8x1024xf32, #tpu.memory_space<vmem>>, vector<4x64xf32>
    tpu.vector_store %arg17[%c4_178, %c768_179], %226 {strides = array<i32>} : memref<8x1024xf32, #tpu.memory_space<vmem>>, vector<4x64xf32>,
    %228 = vector.extract_strided_slice %201 {offsets = [52, 0], sizes = [4, 64], strides = [1, 1]} : vector<64x64xf32> to vector<4x64xf32>
    %c4_180 = arith.constant 4 : index
    %c832_181 = arith.constant 832 : index
    %229 = vector.load %arg17[%c4_180, %c832_181] : memref<8x1024xf32, #tpu.memory_space<vmem>>, vector<4x64xf32>
    tpu.vector_store %arg17[%c4_180, %c832_181], %228 {strides = array<i32>} : memref<8x1024xf32, #tpu.memory_space<vmem>>, vector<4x64xf32>,
    %230 = vector.extract_strided_slice %201 {offsets = [56, 0], sizes = [4, 64], strides = [1, 1]} : vector<64x64xf32> to vector<4x64xf32>
    %c4_182 = arith.constant 4 : index
    %c896_183 = arith.constant 896 : index
    %231 = vector.load %arg17[%c4_182, %c896_183] : memref<8x1024xf32, #tpu.memory_space<vmem>>, vector<4x64xf32>
    tpu.vector_store %arg17[%c4_182, %c896_183], %230 {strides = array<i32>} : memref<8x1024xf32, #tpu.memory_space<vmem>>, vector<4x64xf32>,
    %232 = vector.extract_strided_slice %201 {offsets = [60, 0], sizes = [4, 64], strides = [1, 1]} : vector<64x64xf32> to vector<4x64xf32>
    %c4_184 = arith.constant 4 : index
    %c960_185 = arith.constant 960 : index
    %233 = vector.load %arg17[%c4_184, %c960_185] : memref<8x1024xf32, #tpu.memory_space<vmem>>, vector<4x64xf32>
    tpu.vector_store %arg17[%c4_184, %c960_185], %232 {strides = array<i32>} : memref<8x1024xf32, #tpu.memory_space<vmem>>, vector<4x64xf32>,
    %c0_186 = arith.constant 0 : index
    %c0_187 = arith.constant 0 : index
    %234 = vector.load %arg17[%c0_186, %c0_187] : memref<8x1024xf32, #tpu.memory_space<vmem>>, vector<8x1024xf32>
    %235 = arith.truncf %234 : vector<8x1024xf32> to vector<8x1024xbf16>
    %c0_188 = arith.constant 0 : index
    %c0_189 = arith.constant 0 : index
    %236 = vector.load %arg9[%c0_188, %c0_189] : memref<1024x128xbf16, #tpu.memory_space<vmem>>, vector<1024x128xbf16>
    %cst_190 = arith.constant dense<0.000000e+00> : vector<8x128xf32>
    %237 = tpu.matmul %235, %236, %cst_190 {dimension_numbers = #tpu.dot_dimension_numbers<[1], [0], [0], [1], [0, 0, 1, 1], [], []>} : vector<8x1024xbf16>, vector<1024x128xbf16>, vector<8x128xf32> -> vector<8x128xf32>
    %c0_191 = arith.constant 0 : index
    %c0_192 = arith.constant 0 : index
    %238 = vector.load %arg10[%c0_191, %c0_192] : memref<1x128xf32, #tpu.memory_space<vmem>>, vector<1x128xf32>
    %239 = vector.broadcast %238 : vector<1x128xf32> to vector<8x128xf32>
    %240 = arith.addf %237, %239 : vector<8x128xf32>
    %cst_193 = arith.constant 0.000000e+00 : f32
    %241 = vector.broadcast %cst_193 : f32 to vector<8x128xf32>
    %242 = arith.cmpf oge, %240, %241 : vector<8x128xf32>
    %cst_194 = arith.constant 1.000000e-01 : f32
    %243 = vector.broadcast %cst_194 : f32 to vector<8x128xf32>
    %244 = arith.mulf %243, %240 : vector<8x128xf32>
    %245 = arith.select %242, %240, %244 : vector<8x128xi1>, vector<8x128xf32>
    %c0_195 = arith.constant 0 : index
    %c0_196 = arith.constant 0 : index
    %246 = vector.load %arg11[%c0_195, %c0_196] : memref<8x128xf32, #tpu.memory_space<vmem>>, vector<8x128xf32>
    %247 = arith.mulf %245, %246 : vector<8x128xf32>
    %c0_197 = arith.constant 0 : index
    %c0_198 = arith.constant 0 : index
    %248 = vector.load %arg12[%c0_197, %c0_198] : memref<2x8xbf16, #tpu.memory_space<vmem>>, vector<2x8xbf16>
    %249 = arith.truncf %247 : vector<8x128xf32> to vector<8x128xbf16>
    %cst_199 = arith.constant dense<0.000000e+00> : vector<2x128xf32>
    %250 = tpu.matmul %248, %249, %cst_199 {dimension_numbers = #tpu.dot_dimension_numbers<[1], [0], [0], [1], [0, 0, 1, 1], [], []>} : vector<2x8xbf16>, vector<8x128xbf16>, vector<2x128xf32> -> vector<2x128xf32>
    %cst_200 = arith.constant dense<0.000000e+00> : vector<2xf32>
    %251 = vector.multi_reduction <add>, %250, %cst_200 [1] : vector<2x128xf32> to vector<2xf32>
    %252 = vector.shape_cast %251 : vector<2xf32> to vector<2x1xf32>
    %c0_201 = arith.constant 0 : index
    %c0_202 = arith.constant 0 : index
    %253 = vector.load %arg13[%c0_201, %c0_202] : memref<1x1xf32, #tpu.memory_space<vmem>>, vector<1x1xf32>
    %254 = vector.broadcast %253 : vector<1x1xf32> to vector<2x1xf32>
    %255 = arith.addf %252, %254 : vector<2x1xf32>
    %c0_203 = arith.constant 0 : index
    %c0_204 = arith.constant 0 : index
    %256 = vector.load %arg14[%c0_203, %c0_204] : memref<2x1xf32, #tpu.memory_space<vmem>>, vector<2x1xf32>
    tpu.vector_store %arg14[%c0_203, %c0_204], %255 {strides = array<i32>} : memref<2x1xf32, #tpu.memory_space<vmem>>, vector<2x1xf32>,
    return
  }
  func.func @transform_0(%arg0: i32) -> (i32, i32) {
    %c0_i32 = arith.constant 0 : i32
    %c0_i32_0 = arith.constant 0 : i32
    %c0_i32_1 = arith.constant 0 : i32
    return %c0_i32, %c0_i32_0 : i32, i32
  }
  func.func @transform_1(%arg0: i32) -> (i32, i32) {
    %c0_i32 = arith.constant 0 : i32
    %c0_i32_0 = arith.constant 0 : i32
    %c0_i32_1 = arith.constant 0 : i32
    return %c0_i32, %c0_i32_0 : i32, i32
  }
  func.func @transform_2(%arg0: i32) -> (i32, i32) {
    %c0_i32 = arith.constant 0 : i32
    %c0_i32_0 = arith.constant 0 : i32
    %c0_i32_1 = arith.constant 0 : i32
    return %c0_i32, %c0_i32_0 : i32, i32
  }
  func.func @transform_3(%arg0: i32) -> (i32, i32) {
    %c0_i32 = arith.constant 0 : i32
    %c0_i32_0 = arith.constant 0 : i32
    %c0_i32_1 = arith.constant 0 : i32
    return %c0_i32, %c0_i32_0 : i32, i32
  }
  func.func @transform_4(%arg0: i32) -> (i32, i32) {
    %c0_i32 = arith.constant 0 : i32
    %c0_i32_0 = arith.constant 0 : i32
    %c0_i32_1 = arith.constant 0 : i32
    return %c0_i32, %c0_i32_0 : i32, i32
  }
  func.func @transform_5(%arg0: i32) -> (i32, i32) {
    %c0_i32 = arith.constant 0 : i32
    %c0_i32_0 = arith.constant 0 : i32
    %c0_i32_1 = arith.constant 0 : i32
    return %c0_i32, %c0_i32_0 : i32, i32
  }
  func.func @transform_6(%arg0: i32) -> (i32, i32) {
    %c0_i32 = arith.constant 0 : i32
    %c0_i32_0 = arith.constant 0 : i32
    %c0_i32_1 = arith.constant 0 : i32
    return %c0_i32, %c0_i32_0 : i32, i32
  }
  func.func @transform_7(%arg0: i32) -> (i32, i32) {
    %c0_i32 = arith.constant 0 : i32
    %c0_i32_0 = arith.constant 0 : i32
    %c0_i32_1 = arith.constant 0 : i32
    return %c0_i32, %c0_i32_0 : i32, i32
  }
  func.func @transform_8(%arg0: i32) -> (i32, i32) {
    %c0_i32 = arith.constant 0 : i32
    %c0_i32_0 = arith.constant 0 : i32
    %c0_i32_1 = arith.constant 0 : i32
    return %c0_i32, %c0_i32_0 : i32, i32
  }
  func.func @transform_9(%arg0: i32) -> (i32, i32) {
    %c0_i32 = arith.constant 0 : i32
    %c0_i32_0 = arith.constant 0 : i32
    %c0_i32_1 = arith.constant 0 : i32
    return %c0_i32, %c0_i32_0 : i32, i32
  }
  func.func @transform_10(%arg0: i32) -> (i32, i32) {
    %c0_i32 = arith.constant 0 : i32
    %c0_i32_0 = arith.constant 0 : i32
    %c0_i32_1 = arith.constant 0 : i32
    return %c0_i32, %c0_i32_0 : i32, i32
  }
  func.func @transform_11(%arg0: i32) -> (i32, i32) {
    %c0_i32 = arith.constant 0 : i32
    %c0_i32_0 = arith.constant 0 : i32
    %c0_i32_1 = arith.constant 0 : i32
    return %c0_i32, %c0_i32_0 : i32, i32
  }
  func.func @transform_12(%arg0: i32) -> (i32, i32) {
    %c0_i32 = arith.constant 0 : i32
    %c0_i32_0 = arith.constant 0 : i32
    %c0_i32_1 = arith.constant 0 : i32
    return %c0_i32, %c0_i32_0 : i32, i32
  }
  func.func @transform_13(%arg0: i32) -> (i32, i32) {
    %c0_i32 = arith.constant 0 : i32
    %c0_i32_0 = arith.constant 0 : i32
    %c0_i32_1 = arith.constant 0 : i32
    return %c0_i32, %c0_i32_0 : i32, i32
  }
}

</mosaic_0001>

<bundles_post_ra>
// kernel: forward.1
= control target key start
LH: loop header
LB: loop body
LE: loop exit
PB: predicated region body
PF: predicated region fallthrough
CT: control target
= control target key end

     0   :  { %s8733_s0 = inlined_call_operand.vmem [shape: bf16[512,8], index: 0, kind: input, shape index: {}]   ;;  %s8734_s1 = inlined_call_operand.vmem [shape: bf16[1024,256], index: 1, kind: input, shape index: {}]   ;;  %s8735_s2 = inlined_call_operand.vmem [shape: bf16[128,32], index: 2, kind: input, shape index: {}]   ;;  %s8736_s3 = inlined_call_operand.vmem [shape: f32[1,32], index: 3, kind: input, shape index: {}]   ;;  %s8737_s4 = inlined_call_operand.vmem [shape: bf16[256,64], index: 4, kind: input, shape index: {}]   ;;  %s8738_s5 = inlined_call_operand.vmem [shape: bf16[512,64], index: 5, kind: input, shape index: {}]   ;;  %s8739_s6 = inlined_call_operand.hbm [shape: f32[1,64], index: 6, kind: input, shape index: {}]   ;;  %s8740_s7 = inlined_call_operand.vmem [shape: bf16[64,16], index: 7, kind: input, shape index: {}]   ;;  %s8741_s8 = inlined_call_operand.vmem [shape: bf16[1024,128], index: 8, kind: input, shape index: {}]   ;;  %s8742_s9 = inlined_call_operand.hbm [shape: f32[1,128], index: 9, kind: input, shape index: {}]   ;;  %s8743_s10 = inlined_call_operand.hbm [shape: f32[8,128], index: 10, kind: input, shape index: {}]   ;;  %s8744_s11 = inlined_call_operand.vmem [shape: bf16[2,8], index: 11, kind: input, shape index: {}]   ;;  %s8745_s12 = inlined_call_operand.<no memory space> [shape: f32[1,1], index: 12, kind: input, shape index: {}]   ;;  %s8746_s13 = inlined_call_operand.vmem [shape: f32[2,1], index: 13, kind: output, shape index: {}]  }
   0x1   :  { %v18_v0 = vstv %s8745_s12 }
   0x2   :  { %19 = vst [vmem:[#allocation5] sm:$0x1] %v18_v0 }
   0x3   :  { %20 = vsyncpa [#allocation7], 0 }
   0x4   :  { %21 = vsyncpa [#allocation9], 0  ;;  %s6990_s27 = smov [#allocation8]   ;;  %s6991_s29 = smov [#allocation6]  }
   0x5   :  { %s54_s28 = sshll.u32 %s6990_s27, 4  ;;  %s40_s30 = sshll.u32 %s6991_s29, 4  ;;  %s55_s28 = int_to_ptr.vmem [resolvable:$true] %s54_s28  ;;  %s41_s30 = int_to_ptr.vmem [resolvable:$true] %s40_s30 }
   0x6   :  { %s6934_s14 = scalar_lea.vmem %s55_s28, 16  ;;  %s6938_s15 = scalar_lea.vmem %s55_s28, 32 }
   0x7   :  { %p6935_p0 = scmp.ne.s32.totalorder %s55_s28, %s6934_s14  ;;  %p6939_p1 = scmp.lt.s32.totalorder %s55_s28, %s55_s28 }
   0x8   :  { %p6940_p2 = scmp.lt.s32.totalorder %s6938_s15, %s6934_s14 }
   0xa   :  { %p6941_p3 = por %p6940_p2, %p6939_p1 }
   0xc   :  { %p6942_p4 = pnand %p6941_p3, %p6935_p0 }
   0xe   :  { %6945 = shalt.err (!%p6942_p4)
}
   0xf   :  { %57 = dma.hbm_to_vmem [thread:$0]  %s8742_s9, 16, %s55_s28, [#allocation9]  }
  0x10   :  { %s6954_s12 = scalar_lea.vmem %s41_s30, 16  ;;  %s6958_s18 = scalar_lea.vmem %s41_s30, 32 }
  0x11   :  { %p6955_p5 = scmp.ne.s32.totalorder %s41_s30, %s6954_s12  ;;  %p6959_p6 = scmp.lt.s32.totalorder %s41_s30, %s41_s30 }
  0x12   :  { %p6960_p7 = scmp.lt.s32.totalorder %s6958_s18, %s6954_s12 }
  0x14   :  { %p6961_p8 = por %p6960_p7, %p6959_p6 }
  0x16   :  { %p6962_p9 = pnand %p6961_p8, %p6955_p5 }
  0x18   :  { %6965 = shalt.err (!%p6962_p9)
}
  0x19   :  { %43 = dma.hbm_to_vmem [thread:$0]  %s8739_s6, 16, %s41_s30, [#allocation7]  }
  0x1a   :  { %s6992_s21 = smov [#allocation10]  }
  0x1b   :  { %s64_s22 = sshll.u32 %s6992_s21, 4  ;;  %s65_s22 = int_to_ptr.vmem [resolvable:$true] %s64_s22 }
  0x1c   :  { %s6974_s23 = scalar_lea.vmem %s65_s22, 128  ;;  %p6979_p11 = scmp.lt.s32.totalorder %s65_s22, %s65_s22 }
  0x1d   :  { %p6975_p10 = scmp.ne.s32.totalorder %s65_s22, %s6974_s23  ;;  %p6980_p12 = scmp.lt.s32.totalorder %s6974_s23, %s6974_s23 }
  0x1f   :  { %p6981_p13 = por %p6980_p12, %p6979_p11 }
  0x21   :  { %p6982_p0 = pnand %p6981_p13, %p6975_p10 }
  0x23   :  { %6985 = shalt.err (!%p6982_p0)
}
  0x24   :  { %67 = dma.hbm_to_vmem [thread:$0]  %s8743_s10, 128, %s65_s22, [#allocation9]  }
  0x25   :  { %6986 = dma.done.wait [#allocation7], 16  }
  0x26   :  { %6987 = vsyncadd [#allocation7], 4294967280 }
  0x27   :  { %6988 = dma.done.wait [#allocation9], 144  }
  0x28   :  { %6989 = vsyncadd [#allocation9], 4294967152  ;;  %v6993_v1 = vmov 0   ;;  %v6582_v2 = vld [vmem:[%s8733_s0 + $0x38] sm:$0xff]   ;;  %v6584_v4 = vld [vmem:[%s8733_s0 + $0x30] sm:$0xff]   ;;  %vm1555_vm0 = vcmask 64512  }
  0x29   :  { %1010 = vmatprep.subr.bf16.mxu0 %v6993_v1  ;;  %2275 = vmatprep.subr.bf16.mxu1 %v6993_v1  ;;  %v6583_v3 = vld [vmem:[%s8733_s0 + $0xb8] sm:$0xff]   ;;  %v6585_v5 = vld [vmem:[%s8733_s0 + $0xb0] sm:$0xff]   ;;  %v6586_v6 = vld [vmem:[%s8733_s0 + $0x28] sm:$0xff]   ;;  %s6994_s21 = smov 8   ;;  %s6995_s17 = smov 16   ;;  %vm1596_vm1 = vcmask 130112  }
  0x2a   :  { %1011 = vmatpush1.bf16.msra.mxu0 %v6582_v2  ;;  %2276 = vmatpush1.bf16.msra.mxu1 %v6583_v3  ;;  %v6587_v7 = vld [vmem:[%s8733_s0 + $0xa8] sm:$0xff]   ;;  %v6588_v8 = vld [vmem:[%s8733_s0 + $0x20] sm:$0xff]   ;;  %v6590_v10 = vld [vmem:[%s8733_s0 + $0x18] sm:$0xff]   ;;  %s6997_s26 = smov 32   ;;  %s6998_s23 = smov 40   ;;  %vm1637_vm2 = vcmask 195712  }
  0x2b   :  { %1012 = vmatprep.subr.bf16.mxu0 %v6993_v1  ;;  %2277 = vmatprep.subr.bf16.mxu1 %v6993_v1  ;;  %v6589_v9 = vld [vmem:[%s8733_s0 + $0xa0] sm:$0xff]   ;;  %v6591_v11 = vld [vmem:[%s8733_s0 + $0x98] sm:$0xff]   ;;  %v6592_v12 = vld [vmem:[%s8733_s0 + $0x10] sm:$0xff]   ;;  %s6999_s19 = smov 48   ;;  %vm1678_vm3 = vcmask 261312   ;;  %s7000_s16 = smov 56  }
  0x2c   :  { %v6593_v13 = vld [vmem:[%s8733_s0 + $0x90] sm:$0xff]   ;;  %v6594_v14 = vld [vmem:[%s8733_s0 + $0x8] sm:$0xff]   ;;  %v6596_v16 = vld [vmem:[%s8733_s0] sm:$0xff]   ;;  %vm1719_vm4 = vcmask 326912   ;;  %vm1760_vm5 = vcmask 392512   ;;  %s7002_s27 = smov 72  }
  0x2d   :  { %v6595_v15 = vld [vmem:[%s8733_s0 + $0x88] sm:$0xff]   ;;  %v6597_v17 = vld [vmem:[%s8733_s0 + $0x80] sm:$0xff]   ;;  %v6598_v18 = vld [vmem:[%s8733_s0 + $0x78] sm:$0xff]   ;;  %vm1801_vm6 = vcmask 458112   ;;  %vm1842_vm7 = vcmask 523712   ;;  %vm1883_vm8 = vcmask 589312  }
  0x2e   :  { %1013 = vmatpush1.bf16.msra.mxu0 %v6584_v4  ;;  %2278 = vmatpush1.bf16.msra.mxu1 %v6585_v5  ;;  %v6599_v19 = vld [vmem:[%s8733_s0 + $0xf8] sm:$0xff]   ;;  %v6616_v20 = vld [vmem:[%s8734_s1 + $0x4] ss:$8 sps:$4 sm:$0xff]   ;;  %v6600_v21 = vld [vmem:[%s8733_s0 + $0x70] sm:$0xff]   ;;  %s7005_s20 = smov 96   ;;  %vm1924_vm9 = vcmask 654912  }
  0x2f   :  { %1014 = vmatprep.subr.bf16.mxu0 %v6993_v1  ;;  %2279 = vmatprep.subr.bf16.mxu1 %v6993_v1  ;;  %v6601_v22 = vld [vmem:[%s8733_s0 + $0xf0] sm:$0xff]   ;;  %v6602_v23 = vld [vmem:[%s8733_s0 + $0x68] sm:$0xff]   ;;  %v6604_v25 = vld [vmem:[%s8733_s0 + $0x60] sm:$0xff]   ;;  %vm1965_vm10 = vcmask 720512   ;;  %s7007_s22 = smov 112   ;;  %vm2006_vm11 = vcmask 786112  }
  0x30   :  { %1042 = vmatprep.mubr.bf16.mxu0 %v6616_v20  ;;  %2307 = vmatprep.mubr.bf16.mxu1 %v6616_v20  ;;  %v6603_v24 = vld [vmem:[%s8733_s0 + $0xe8] sm:$0xff]   ;;  %v6605_v26 = vld [vmem:[%s8733_s0 + $0xe0] sm:$0xff]   ;;  %v6606_v27 = vld [vmem:[%s8733_s0 + $0x58] sm:$0xff]   ;;  %s7008_s12 = smov 120   ;;  %vm2047_vm12 = vcmask 851712   ;;  %vm2088_vm13 = vcmask 917312  }
  0x31   :  { %v6607_v28 = vld [vmem:[%s8733_s0 + $0xd8] sm:$0xff]   ;;  %v6608_v29 = vld [vmem:[%s8733_s0 + $0x50] sm:$0xff]   ;;  %v6610_v31 = vld [vmem:[%s8733_s0 + $0x48] sm:$0xff]   ;;  %vm2129_vm14 = vcmask 982912   ;;  %vm2170_vm15 = vcmask 1048512  }
  0x32   :  { %1015 = vmatpush1.bf16.msra.mxu0 %v6586_v6  ;;  %2280 = vmatpush1.bf16.msra.mxu1 %v6587_v7  ;;  %v6609_v30 = vld [vmem:[%s8733_s0 + $0xd0] sm:$0xff]   ;;  %v6611_v32 = vld [vmem:[%s8733_s0 + $0xc8] sm:$0xff]   ;;  %v6612_v33 = vld [vmem:[%s8733_s0 + $0x40] sm:$0xff]  }
  0x33   :  { %1016 = vmatprep.subr.bf16.mxu0 %v6993_v1  ;;  %2281 = vmatprep.subr.bf16.mxu1 %v6993_v1  ;;  %v6613_v34 = vld [vmem:[%s8733_s0 + $0xc0] sm:$0xff]   ;;  %v6617_v36 = vld [vmem:[%s8734_s1 + $0x14] ss:$8 sps:$4 sm:$0xff]   ;;  %v6619_v37 = vld [vmem:[%s8734_s1 + $0x10] ss:$8 sps:$4 sm:$0xff]   ;;  %s6996_s0 = smov 24  }
  0x34   :  { %v6614_v35 = vld [vmem:[%s8734_s1] ss:$8 sps:$4 sm:$0xff]   ;;  %v6620_v38 = vld [vmem:[%s8734_s1 + $0x24] ss:$8 sps:$4 sm:$0xff]   ;;  %v6623_v40 = vld [vmem:[%s8734_s1 + $0x34] ss:$8 sps:$4 sm:$0xff]  }
  0x35   :  { %v6622_v39 = vld [vmem:[%s8734_s1 + $0x20] ss:$8 sps:$4 sm:$0xff]   ;;  %v6625_v41 = vld [vmem:[%s8734_s1 + $0x30] ss:$8 sps:$4 sm:$0xff]   ;;  %v6626_v42 = vld [vmem:[%s8734_s1 + $0x44] ss:$8 sps:$4 sm:$0xff]  }
  0x36   :  { %1017 = vmatpush1.bf16.msra.mxu0 %v6588_v8  ;;  %2282 = vmatpush1.bf16.msra.mxu1 %v6589_v9  ;;  %v6628_v43 = vld [vmem:[%s8734_s1 + $0x40] ss:$8 sps:$4 sm:$0xff]   ;;  %v6629_v44 = vld [vmem:[%s8734_s1 + $0x54] ss:$8 sps:$4 sm:$0xff]   ;;  %v6631_v45 = vld [vmem:[%s8734_s1 + $0x50] ss:$8 sps:$4 sm:$0xff]  }
  0x37   :  { %1018 = vmatprep.subr.bf16.mxu0 %v6993_v1  ;;  %2283 = vmatprep.subr.bf16.mxu1 %v6993_v1  ;;  %v6632_v46 = vld [vmem:[%s8734_s1 + $0x64] ss:$8 sps:$4 sm:$0xff]   ;;  %v6634_v47 = vld [vmem:[%s8734_s1 + $0x60] ss:$8 sps:$4 sm:$0xff]   ;;  %v6635_v48 = vld [vmem:[%s8734_s1 + $0x74] ss:$8 sps:$4 sm:$0xff]  }
  0x38   :  { %v6637_v49 = vld [vmem:[%s8734_s1 + $0x70] ss:$8 sps:$4 sm:$0xff]   ;;  %v6638_v50 = vld [vmem:[%s8734_s1 + $0x84] ss:$8 sps:$4 sm:$0xff]   ;;  %v6640_v51 = vld [vmem:[%s8734_s1 + $0x80] ss:$8 sps:$4 sm:$0xff]  }
  0x39   :  { %v6641_v52 = vld [vmem:[%s8734_s1 + $0x94] ss:$8 sps:$4 sm:$0xff]   ;;  %v6643_v53 = vld [vmem:[%s8734_s1 + $0x90] ss:$8 sps:$4 sm:$0xff]   ;;  %v6644_v54 = vld [vmem:[%s8734_s1 + $0xa4] ss:$8 sps:$4 sm:$0xff]  }
  0x3a   :  { %1019 = vmatpush1.bf16.msra.mxu0 %v6590_v10  ;;  %2284 = vmatpush1.bf16.msra.mxu1 %v6591_v11  ;;  %v6646_v55 = vld [vmem:[%s8734_s1 + $0xa0] ss:$8 sps:$4 sm:$0xff]   ;;  %v6647_v56 = vld [vmem:[%s8734_s1 + $0xb4] ss:$8 sps:$4 sm:$0xff]   ;;  %v6649_v57 = vld [vmem:[%s8734_s1 + $0xb0] ss:$8 sps:$4 sm:$0xff]  }
  0x3b   :  { %1020 = vmatprep.subr.bf16.mxu0 %v6993_v1  ;;  %2285 = vmatprep.subr.bf16.mxu1 %v6993_v1  ;;  %v6650_v58 = vld [vmem:[%s8734_s1 + $0xc4] ss:$8 sps:$4 sm:$0xff]   ;;  %v6652_v59 = vld [vmem:[%s8734_s1 + $0xc0] ss:$8 sps:$4 sm:$0xff]   ;;  %v6653_v60 = vld [vmem:[%s8734_s1 + $0xd4] ss:$8 sps:$4 sm:$0xff]  }
  0x3c   :  { %v6655_v61 = vld [vmem:[%s8734_s1 + $0xd0] ss:$8 sps:$4 sm:$0xff]   ;;  %v6656_v62 = vld [vmem:[%s8734_s1 + $0xe4] ss:$8 sps:$4 sm:$0xff]   ;;  %v6658_v63 = vld [vmem:[%s8734_s1 + $0xe0] ss:$8 sps:$4 sm:$0xff]  }
  0x3d   :  { %v6659_v0 = vld [vmem:[%s8734_s1 + $0xf4] ss:$8 sps:$4 sm:$0xff]   ;;  %v6662_v2 = vld [vmem:[%s8734_s1 + $0x104] ss:$8 sps:$4 sm:$0xff]   ;;  %v6664_v3 = vld [vmem:[%s8734_s1 + $0x100] ss:$8 sps:$4 sm:$0xff]  }
  0x3e   :  { %1021 = vmatpush1.bf16.msra.mxu0 %v6592_v12  ;;  %2286 = vmatpush1.bf16.msra.mxu1 %v6593_v13  ;;  %v6665_v4 = vld [vmem:[%s8734_s1 + $0x114] ss:$8 sps:$4 sm:$0xff]   ;;  %v6667_v5 = vld [vmem:[%s8734_s1 + $0x110] ss:$8 sps:$4 sm:$0xff]   ;;  %v6668_v6 = vld [vmem:[%s8734_s1 + $0x124] ss:$8 sps:$4 sm:$0xff]  }
  0x3f   :  { %1022 = vmatprep.subr.bf16.mxu0 %v6993_v1  ;;  %2287 = vmatprep.subr.bf16.mxu1 %v6993_v1  ;;  %v6670_v7 = vld [vmem:[%s8734_s1 + $0x120] ss:$8 sps:$4 sm:$0xff]   ;;  %v6671_v8 = vld [vmem:[%s8734_s1 + $0x134] ss:$8 sps:$4 sm:$0xff]   ;;  %v6673_v9 = vld [vmem:[%s8734_s1 + $0x130] ss:$8 sps:$4 sm:$0xff]  }
  0x40   :  { %v6674_v10 = vld [vmem:[%s8734_s1 + $0x144] ss:$8 sps:$4 sm:$0xff]   ;;  %v6676_v11 = vld [vmem:[%s8734_s1 + $0x140] ss:$8 sps:$4 sm:$0xff]   ;;  %v6677_v12 = vld [vmem:[%s8734_s1 + $0x154] ss:$8 sps:$4 sm:$0xff]  }
  0x41   :  { %v6679_v13 = vld [vmem:[%s8734_s1 + $0x150] ss:$8 sps:$4 sm:$0xff]   ;;  %v195_v20 = vld [vmem:[%s8734_s1 + $0x188] sm:$0xff] }
  0x42   :  { %1023 = vmatpush1.bf16.msra.mxu0 %v6594_v14  ;;  %2288 = vmatpush1.bf16.msra.mxu1 %v6595_v15  ;;  %v6680_v14 = vld [vmem:[%s8734_s1 + $0x164] ss:$8 sps:$4 sm:$0xff]   ;;  %v6682_v15 = vld [vmem:[%s8734_s1 + $0x160] ss:$8 sps:$4 sm:$0xff]  }
  0x43   :  { %1024 = vmatprep.subr.bf16.mxu0 %v6993_v1  ;;  %2289 = vmatprep.subr.bf16.mxu1 %v6993_v1 }
  0x46   :  { %1025 = vmatpush1.bf16.msra.mxu0 %v6596_v16  ;;  %2290 = vmatpush1.bf16.msra.mxu1 %v6597_v17  ;;  %v6683_v16 = vld [vmem:[%s8734_s1 + $0x174] ss:$8 sps:$4 sm:$0xff]   ;;  %v6685_v17 = vld [vmem:[%s8734_s1 + $0x170] ss:$8 sps:$4 sm:$0xff]  }
  0x47   :  { %1026 = vmatprep.subr.bf16.mxu0 %v6993_v1  ;;  %2291 = vmatprep.subr.bf16.mxu1 %v6993_v1 }
  0x4a   :  { %1027 = vmatpush2.bf16.msra.mxu0 %v6598_v18  ;;  %2292 = vmatpush2.bf16.msra.mxu1 %v6599_v19  ;;  %v6686_v18 = vld [vmem:[%s8734_s1 + $0x184] ss:$8 sps:$4 sm:$0xff]  }
  0x4b   :  { %1028 = vmatprep.subr.bf16.mxu0 %v6993_v1  ;;  %2293 = vmatprep.subr.bf16.mxu1 %v6993_v1  ;;  %v194_v19 = vld [vmem:[%s8734_s1 + $0x180] sm:$0xff] }
  0x4e   :  { %1029 = vmatpush2.bf16.msra.mxu0 %v6600_v21  ;;  %2294 = vmatpush2.bf16.msra.mxu1 %v6601_v22  ;;  %v5930_v21 = vcombine.low %v194_v19, %v195_v20  ;;  %v6688_v22 = vld [vmem:[%s8734_s1 + $0x194] ss:$8 sps:$4 sm:$0xff]   ;;  %v6700_v20 = vld [vmem:[%s8734_s1 + $0x1e0] ss:$8 sps:$4 sm:$0xff]  }
  0x4f   :  { %1030 = vmatprep.subr.bf16.mxu0 %v6993_v1  ;;  %2295 = vmatprep.subr.bf16.mxu1 %v6993_v1 }
  0x52   :  { %1031 = vmatpush2.bf16.msra.mxu0 %v6602_v23  ;;  %2296 = vmatpush2.bf16.msra.mxu1 %v6603_v24 }
  0x53   :  { %1032 = vmatprep.subr.bf16.mxu0 %v6993_v1  ;;  %2297 = vmatprep.subr.bf16.mxu1 %v6993_v1 }
  0x56   :  { %1033 = vmatpush2.bf16.msra.mxu0 %v6604_v25  ;;  %2298 = vmatpush2.bf16.msra.mxu1 %v6605_v26  ;;  %v196_v25 = vld [vmem:[%s8734_s1 + $0x190] sm:$0xff]  ;;  %v197_v26 = vld [vmem:[%s8734_s1 + $0x198] sm:$0xff] }
  0x57   :  { %1034 = vmatprep.subr.bf16.mxu0 %v6993_v1  ;;  %2299 = vmatprep.subr.bf16.mxu1 %v6993_v1 }
  0x5a   :  { %1035 = vmatpush2.bf16.msra.mxu0 %v6606_v27  ;;  %2300 = vmatpush2.bf16.msra.mxu1 %v6607_v28 }
  0x5b   :  { %1036 = vmatprep.subr.bf16.mxu0 %v6993_v1  ;;  %2301 = vmatprep.subr.bf16.mxu1 %v6993_v1 }
  0x5e   :  { %1037 = vmatpush2.bf16.msra.mxu0 %v6608_v29  ;;  %2302 = vmatpush2.bf16.msra.mxu1 %v6609_v30  ;;  %v5932_v30 = vcombine.low %v196_v25, %v197_v26 }
  0x5f   :  { %1038 = vmatprep.subr.bf16.mxu0 %v6993_v1  ;;  %2303 = vmatprep.subr.bf16.mxu1 %v6993_v1 }
  0x62   :  { %1039 = vmatpush2.bf16.msra.mxu0 %v6610_v31  ;;  %2304 = vmatpush2.bf16.msra.mxu1 %v6611_v32  ;;  %v6690_v32 = vld [vmem:[%s8734_s1 + $0x1a4] ss:$8 sps:$4 sm:$0xff]  }
  0x63   :  { %1040 = vmatprep.subr.bf16.mxu0 %v6993_v1  ;;  %2305 = vmatprep.subr.bf16.mxu1 %v6993_v1  ;;  %v6661_v1 = vld [vmem:[%s8734_s1 + $0xf0] ss:$8 sps:$4 sm:$0xff]  }
  0x66   :  { %1041 = vmatpush2.bf16.msra.mxu0 %v6612_v33  ;;  %2306 = vmatpush2.bf16.msra.mxu1 %v6613_v34 }
  0x69   :  { %1043 = vmatmul.mubr.bf16.vlgmr.msra.gmra.mxu0 %v6614_v35  ;;  %2308 = vmatmul.mubr.bf16.vlgmr.msra.gmra.mxu1 %v6614_v35 }
  0x6a   :  { %1050 = vmatprep.mubr.bf16.mxu0 %v6617_v36  ;;  %2315 = vmatprep.mubr.bf16.mxu1 %v6617_v36 }
  0x71   :  { %1051 = vmatmul.mubr.bf16.gmra.mxu0 %v6619_v37  ;;  %2316 = vmatmul.mubr.bf16.gmra.mxu1 %v6619_v37  ;;  %v198_v37 = vld [vmem:[%s8734_s1 + $0x1a0] sm:$0xff] }
  0x72   :  { %1058 = vmatprep.mubr.bf16.mxu0 %v6620_v38  ;;  %2323 = vmatprep.mubr.bf16.mxu1 %v6620_v38  ;;  %v199_v38 = vld [vmem:[%s8734_s1 + $0x1a8] sm:$0xff] }
  0x79   :  { %1059 = vmatmul.mubr.bf16.gmra.mxu0 %v6622_v39  ;;  %2324 = vmatmul.mubr.bf16.gmra.mxu1 %v6622_v39 }
  0x7a   :  { %1066 = vmatprep.mubr.bf16.mxu0 %v6623_v40  ;;  %2331 = vmatprep.mubr.bf16.mxu1 %v6623_v40 }
  0x81   :  { %1067 = vmatmul.mubr.bf16.gmra.mxu0 %v6625_v41  ;;  %2332 = vmatmul.mubr.bf16.gmra.mxu1 %v6625_v41 }
  0x82   :  { %1074 = vmatprep.mubr.bf16.mxu0 %v6626_v42  ;;  %2339 = vmatprep.mubr.bf16.mxu1 %v6626_v42  ;;  %v5934_v42 = vcombine.low %v198_v37, %v199_v38 }
  0x89   :  { %1075 = vmatmul.mubr.bf16.gmra.mxu0 %v6628_v43  ;;  %2340 = vmatmul.mubr.bf16.gmra.mxu1 %v6628_v43 }
  0x8a   :  { %1082 = vmatprep.mubr.bf16.mxu0 %v6629_v44  ;;  %2347 = vmatprep.mubr.bf16.mxu1 %v6629_v44  ;;  %v6692_v44 = vld [vmem:[%s8734_s1 + $0x1b4] ss:$8 sps:$4 sm:$0xff]  }
  0x91   :  { %1083 = vmatmul.mubr.bf16.gmra.mxu0 %v6631_v45  ;;  %2348 = vmatmul.mubr.bf16.gmra.mxu1 %v6631_v45 }
  0x92   :  { %1090 = vmatprep.mubr.bf16.mxu0 %v6632_v46  ;;  %2355 = vmatprep.mubr.bf16.mxu1 %v6632_v46 }
  0x99   :  { %1091 = vmatmul.mubr.bf16.gmra.mxu0 %v6634_v47  ;;  %2356 = vmatmul.mubr.bf16.gmra.mxu1 %v6634_v47 }
  0x9a   :  { %1098 = vmatprep.mubr.bf16.mxu0 %v6635_v48  ;;  %2363 = vmatprep.mubr.bf16.mxu1 %v6635_v48 }
  0xa1   :  { %1099 = vmatmul.mubr.bf16.gmra.mxu0 %v6637_v49  ;;  %2364 = vmatmul.mubr.bf16.gmra.mxu1 %v6637_v49  ;;  %v200_v49 = vld [vmem:[%s8734_s1 + $0x1b0] sm:$0xff] }
  0xa2   :  { %1106 = vmatprep.mubr.bf16.mxu0 %v6638_v50  ;;  %2371 = vmatprep.mubr.bf16.mxu1 %v6638_v50  ;;  %v201_v50 = vld [vmem:[%s8734_s1 + $0x1b8] sm:$0xff] }
  0xa9   :  { %1107 = vmatmul.mubr.bf16.gmra.mxu0 %v6640_v51  ;;  %2372 = vmatmul.mubr.bf16.gmra.mxu1 %v6640_v51 }
  0xaa   :  { %1114 = vmatprep.mubr.bf16.mxu0 %v6641_v52  ;;  %2379 = vmatprep.mubr.bf16.mxu1 %v6641_v52 }
  0xb1   :  { %1115 = vmatmul.mubr.bf16.gmra.mxu0 %v6643_v53  ;;  %2380 = vmatmul.mubr.bf16.gmra.mxu1 %v6643_v53 }
  0xb2   :  { %1122 = vmatprep.mubr.bf16.mxu0 %v6644_v54  ;;  %2387 = vmatprep.mubr.bf16.mxu1 %v6644_v54  ;;  %v5936_v54 = vcombine.low %v200_v49, %v201_v50  ;;  %v6709_v50 = vld [vmem:[%s8734_s1 + $0x210] ss:$8 sps:$4 sm:$0xff]  }
  0xb9   :  { %1123 = vmatmul.mubr.bf16.gmra.mxu0 %v6646_v55  ;;  %2388 = vmatmul.mubr.bf16.gmra.mxu1 %v6646_v55 }
  0xba   :  { %1130 = vmatprep.mubr.bf16.mxu0 %v6647_v56  ;;  %2395 = vmatprep.mubr.bf16.mxu1 %v6647_v56  ;;  %v6696_v56 = vld [vmem:[%s8734_s1 + $0x1c4] ss:$8 sps:$4 sm:$0xff]  }
  0xc1   :  { %1131 = vmatmul.mubr.bf16.gmra.mxu0 %v6649_v57  ;;  %2396 = vmatmul.mubr.bf16.gmra.mxu1 %v6649_v57 }
  0xc2   :  { %1138 = vmatprep.mubr.bf16.mxu0 %v6650_v58  ;;  %2403 = vmatprep.mubr.bf16.mxu1 %v6650_v58 }
  0xc9   :  { %1139 = vmatmul.mubr.bf16.gmra.mxu0 %v6652_v59  ;;  %2404 = vmatmul.mubr.bf16.gmra.mxu1 %v6652_v59 }
  0xca   :  { %1146 = vmatprep.mubr.bf16.mxu0 %v6653_v60  ;;  %2411 = vmatprep.mubr.bf16.mxu1 %v6653_v60 }
  0xd1   :  { %1147 = vmatmul.mubr.bf16.gmra.mxu0 %v6655_v61  ;;  %2412 = vmatmul.mubr.bf16.gmra.mxu1 %v6655_v61 }
  0xd2   :  { %1154 = vmatprep.mubr.bf16.mxu0 %v6656_v62  ;;  %2419 = vmatprep.mubr.bf16.mxu1 %v6656_v62 }
  0xd9   :  { %1155 = vmatmul.mubr.bf16.gmra.mxu0 %v6658_v63  ;;  %2420 = vmatmul.mubr.bf16.gmra.mxu1 %v6658_v63 }
  0xda   :  { %1162 = vmatprep.mubr.bf16.mxu0 %v6659_v0  ;;  %2427 = vmatprep.mubr.bf16.mxu1 %v6659_v0  ;;  %v6694_v0 = vld [vmem:[%s8734_s1 + $0x1c0] ss:$8 sps:$4 sm:$0xff]  }
  0xe1   :  { %1163 = vmatmul.mubr.bf16.gmra.mxu0 %v6661_v1  ;;  %2428 = vmatmul.mubr.bf16.gmra.mxu1 %v6661_v1 }
  0xe2   :  { %1170 = vmatprep.mubr.bf16.mxu0 %v6662_v2  ;;  %2435 = vmatprep.mubr.bf16.mxu1 %v6662_v2 }
  0xe9   :  { %1171 = vmatmul.mubr.bf16.gmra.mxu0 %v6664_v3  ;;  %2436 = vmatmul.mubr.bf16.gmra.mxu1 %v6664_v3  ;;  %v6699_v3 = vld [vmem:[%s8734_s1 + $0x1d4] ss:$8 sps:$4 sm:$0xff]  }
  0xea   :  { %1178 = vmatprep.mubr.bf16.mxu0 %v6665_v4  ;;  %2443 = vmatprep.mubr.bf16.mxu1 %v6665_v4 }
  0xf1   :  { %1179 = vmatmul.mubr.bf16.gmra.mxu0 %v6667_v5  ;;  %2444 = vmatmul.mubr.bf16.gmra.mxu1 %v6667_v5 }
  0xf2   :  { %1186 = vmatprep.mubr.bf16.mxu0 %v6668_v6  ;;  %2451 = vmatprep.mubr.bf16.mxu1 %v6668_v6 }
  0xf9   :  { %1187 = vmatmul.mubr.bf16.gmra.mxu0 %v6670_v7  ;;  %2452 = vmatmul.mubr.bf16.gmra.mxu1 %v6670_v7 }
  0xfa   :  { %1194 = vmatprep.mubr.bf16.mxu0 %v6671_v8  ;;  %2459 = vmatprep.mubr.bf16.mxu1 %v6671_v8 }
 0x101   :  { %1195 = vmatmul.mubr.bf16.gmra.mxu0 %v6673_v9  ;;  %2460 = vmatmul.mubr.bf16.gmra.mxu1 %v6673_v9 }
 0x102   :  { %1202 = vmatprep.mubr.bf16.mxu0 %v6674_v10  ;;  %2467 = vmatprep.mubr.bf16.mxu1 %v6674_v10  ;;  %v6697_v10 = vld [vmem:[%s8734_s1 + $0x1d0] ss:$8 sps:$4 sm:$0xff]  }
 0x109   :  { %1203 = vmatmul.mubr.bf16.gmra.mxu0 %v6676_v11  ;;  %2468 = vmatmul.mubr.bf16.gmra.mxu1 %v6676_v11 }
 0x10a   :  { %1210 = vmatprep.mubr.bf16.mxu0 %v6677_v12  ;;  %2475 = vmatprep.mubr.bf16.mxu1 %v6677_v12 }
 0x111   :  { %1211 = vmatmul.mubr.bf16.gmra.mxu0 %v6679_v13  ;;  %2476 = vmatmul.mubr.bf16.gmra.mxu1 %v6679_v13  ;;  %v6702_v13 = vld [vmem:[%s8734_s1 + $0x1e4] ss:$8 sps:$4 sm:$0xff]  }
 0x112   :  { %1218 = vmatprep.mubr.bf16.mxu0 %v6680_v14  ;;  %2483 = vmatprep.mubr.bf16.mxu1 %v6680_v14 }
 0x119   :  { %1219 = vmatmul.mubr.bf16.gmra.mxu0 %v6682_v15  ;;  %2484 = vmatmul.mubr.bf16.gmra.mxu1 %v6682_v15 }
 0x11a   :  { %1226 = vmatprep.mubr.bf16.mxu0 %v6683_v16  ;;  %2491 = vmatprep.mubr.bf16.mxu1 %v6683_v16 }
 0x121   :  { %1227 = vmatmul.mubr.bf16.gmra.mxu0 %v6685_v17  ;;  %2492 = vmatmul.mubr.bf16.gmra.mxu1 %v6685_v17 }
 0x122   :  { %1234 = vmatprep.mubr.bf16.mxu0 %v6686_v18  ;;  %2499 = vmatprep.mubr.bf16.mxu1 %v6686_v18 }
 0x129   :  { %v1044_v23 = vpop.f32.mrf.mxu0  ;;  %1235 = vmatmul.mubr.bf16.gmra.mxu0 %v5930_v21  ;;  %v2309_v24 = vpop.f32.mrf.mxu1  ;;  %2500 = vmatmul.mubr.bf16.gmra.mxu1 %v5930_v21 }
 0x12a   :  { %1556 = vst.msk [vmem:[#allocation2] sm:$0xff] %vm1555_vm0, %v1044_v23  ;;  %1242 = vmatprep.mubr.bf16.mxu0 %v6688_v22  ;;  %2820 = vst.msk [vmem:[#allocation2 + $0x40] sm:$0xff] %vm1555_vm0, %v2309_v24  ;;  %2507 = vmatprep.mubr.bf16.mxu1 %v6688_v22  ;;  %v6705_v23 = vld [vmem:[%s8734_s1 + $0x1f4] ss:$8 sps:$4 sm:$0xff]  }
 0x12b   :  { %v1046_v27 = vpop.f32.mrf.mxu0  ;;  %v2311_v28 = vpop.f32.mrf.mxu1 }
 0x12d   :  { %v1047_v29 = vpop.f32.mrf.mxu0  ;;  %v2312_v31 = vpop.f32.mrf.mxu1 }
 0x12e   :  { %1557 = vst.msk [vmem:[#allocation2 + $0x8] sm:$0xff] %vm1555_vm0, %v1047_v29  ;;  %2821 = vst.msk [vmem:[#allocation2 + $0x48] sm:$0xff] %vm1555_vm0, %v2312_v31 }
 0x12f   :  { %v1049_v33 = vpop.f32.mrf.mxu0  ;;  %v2314_v34 = vpop.f32.mrf.mxu1 }
 0x130   :  { %v6708_v33 = vld [vmem:[%s8734_s1 + $0x204] ss:$8 sps:$4 sm:$0xff]  }
 0x131   :  { %v1052_v35 = vpop.f32.mrf.mxu0  ;;  %1243 = vmatmul.mubr.bf16.gmra.mxu0 %v5932_v30  ;;  %v2317_v36 = vpop.f32.mrf.mxu1  ;;  %2508 = vmatmul.mubr.bf16.gmra.mxu1 %v5932_v30  ;;  %v6703_v30 = vld [vmem:[%s8734_s1 + $0x1f0] ss:$8 sps:$4 sm:$0xff]  }
 0x132   :  { %1558 = vst.msk [vmem:[#allocation2 + $0x10] sm:$0xff] %vm1555_vm0, %v1052_v35  ;;  %1250 = vmatprep.mubr.bf16.mxu0 %v6690_v32  ;;  %2822 = vst.msk [vmem:[#allocation2 + $0x50] sm:$0xff] %vm1555_vm0, %v2317_v36  ;;  %2515 = vmatprep.mubr.bf16.mxu1 %v6690_v32 }
 0x133   :  { %v1054_v39 = vpop.f32.mrf.mxu0  ;;  %v2319_v40 = vpop.f32.mrf.mxu1 }
 0x134   :  { %v6706_v40 = vld [vmem:[%s8734_s1 + $0x200] ss:$8 sps:$4 sm:$0xff]  }
 0x135   :  { %v1055_v41 = vpop.f32.mrf.mxu0  ;;  %v2320_v43 = vpop.f32.mrf.mxu1 }
 0x136   :  { %1559 = vst.msk [vmem:[#allocation2 + $0x18] sm:$0xff] %vm1555_vm0, %v1055_v41  ;;  %2823 = vst.msk [vmem:[#allocation2 + $0x58] sm:$0xff] %vm1555_vm0, %v2320_v43  ;;  %v6711_v43 = vld [vmem:[%s8734_s1 + $0x214] ss:$8 sps:$4 sm:$0xff]  }
 0x137   :  { %v1057_v45 = vpop.f32.mrf.mxu0  ;;  %v2322_v46 = vpop.f32.mrf.mxu1 }
 0x139   :  { %v1060_v47 = vpop.f32.mrf.mxu0  ;;  %1251 = vmatmul.mubr.bf16.gmra.mxu0 %v5934_v42  ;;  %v2325_v48 = vpop.f32.mrf.mxu1  ;;  %2516 = vmatmul.mubr.bf16.gmra.mxu1 %v5934_v42 }
 0x13a   :  { %1560 = vst.msk [vmem:[#allocation2 + $0x20] sm:$0xff] %vm1555_vm0, %v1060_v47  ;;  %1258 = vmatprep.mubr.bf16.mxu0 %v6692_v44  ;;  %2824 = vst.msk [vmem:[#allocation2 + $0x60] sm:$0xff] %vm1555_vm0, %v2325_v48  ;;  %2523 = vmatprep.mubr.bf16.mxu1 %v6692_v44 }
 0x13b   :  { %v1062_v51 = vpop.f32.mrf.mxu0  ;;  %v2327_v52 = vpop.f32.mrf.mxu1 }
 0x13d   :  { %v1063_v53 = vpop.f32.mrf.mxu0  ;;  %v2328_v55 = vpop.f32.mrf.mxu1 }
 0x13e   :  { %1561 = vst.msk [vmem:[#allocation2 + $0x28] sm:$0xff] %vm1555_vm0, %v1063_v53  ;;  %2825 = vst.msk [vmem:[#allocation2 + $0x68] sm:$0xff] %vm1555_vm0, %v2328_v55  ;;  %v6714_v53 = vld [vmem:[%s8734_s1 + $0x224] ss:$8 sps:$4 sm:$0xff]  }
 0x13f   :  { %v1065_v57 = vpop.f32.mrf.mxu0  ;;  %v2330_v58 = vpop.f32.mrf.mxu1 }
 0x141   :  { %v1068_v59 = vpop.f32.mrf.mxu0  ;;  %1259 = vmatmul.mubr.bf16.gmra.mxu0 %v5936_v54  ;;  %v2333_v60 = vpop.f32.mrf.mxu1  ;;  %2524 = vmatmul.mubr.bf16.gmra.mxu1 %v5936_v54 }
 0x142   :  { %1562 = vst.msk [vmem:[#allocation2 + $0x30] sm:$0xff] %vm1555_vm0, %v1068_v59  ;;  %1266 = vmatprep.mubr.bf16.mxu0 %v6696_v56  ;;  %2826 = vst.msk [vmem:[#allocation2 + $0x70] sm:$0xff] %vm1555_vm0, %v2333_v60  ;;  %2531 = vmatprep.mubr.bf16.mxu1 %v6696_v56  ;;  %v6712_v60 = vld [vmem:[%s8734_s1 + $0x220] ss:$8 sps:$4 sm:$0xff]  }
 0x143   :  { %v1070_v61 = vpop.f32.mrf.mxu0  ;;  %v2335_v62 = vpop.f32.mrf.mxu1 }
 0x145   :  { %v1071_v63 = vpop.f32.mrf.mxu0  ;;  %v2336_v1 = vpop.f32.mrf.mxu1 }
 0x146   :  { %1563 = vst.msk [vmem:[#allocation2 + $0x38] sm:$0xff] %vm1555_vm0, %v1071_v63  ;;  %2827 = vst.msk [vmem:[#allocation2 + $0x78] sm:$0xff] %vm1555_vm0, %v2336_v1  ;;  %v6717_v63 = vld [vmem:[%s8734_s1 + $0x234] ss:$8 sps:$4 sm:$0xff]  }
 0x147   :  { %v1073_v2 = vpop.f32.mrf.mxu0  ;;  %v2338_v4 = vpop.f32.mrf.mxu1 }
 0x149   :  { %v1076_v5 = vpop.f32.mrf.mxu0  ;;  %1267 = vmatmul.mubr.bf16.gmra.mxu0 %v6694_v0  ;;  %v2341_v6 = vpop.f32.mrf.mxu1  ;;  %2532 = vmatmul.mubr.bf16.gmra.mxu1 %v6694_v0 }
 0x14a   :  { %1572 = vrot.lane.b32.xlu0 %v1076_v5, %s6994_s21  ;;  %1274 = vmatprep.mubr.bf16.mxu0 %v6699_v3 }
 0x14b   :  { %v1078_v7 = vpop.f32.mrf.mxu0  ;;  %2539 = vmatprep.mubr.bf16.mxu1 %v6699_v3  ;;  %v2343_v8 = vpop.f32.mrf.mxu1 }
 0x14d   :  { %v1079_v9 = vpop.f32.mrf.mxu0  ;;  %v2344_v11 = vpop.f32.mrf.mxu1 }
 0x14e   :  { %2836 = vrot.lane.b32.xlu0 %v2341_v6, %s6994_s21  ;;  %2838 = vrot.lane.b32.xlu1 %v2344_v11, %s6994_s21  ;;  %v6715_v6 = vld [vmem:[%s8734_s1 + $0x230] ss:$8 sps:$4 sm:$0xff]  }
 0x14f   :  { %v1081_v12 = vpop.f32.mrf.mxu0  ;;  %v2346_v14 = vpop.f32.mrf.mxu1 }
 0x151   :  { %v1084_v15 = vpop.f32.mrf.mxu0  ;;  %1275 = vmatmul.mubr.bf16.gmra.mxu0 %v6697_v10  ;;  %v2349_v16 = vpop.f32.mrf.mxu1  ;;  %2540 = vmatmul.mubr.bf16.gmra.mxu1 %v6697_v10 }
 0x152   :  { %1574 = vrot.lane.b32.xlu0 %v1079_v9, %s6994_s21  ;;  %1576 = vrot.lane.b32.xlu1 %v1084_v15, %s6994_s21  ;;  %v6720_v9 = vld [vmem:[%s8734_s1 + $0x244] ss:$8 sps:$4 sm:$0xff]  }
 0x153   :  { %v1086_v17 = vpop.f32.mrf.mxu0  ;;  %1282 = vmatprep.mubr.bf16.mxu0 %v6702_v13  ;;  %v2351_v18 = vpop.f32.mrf.mxu1  ;;  %2547 = vmatprep.mubr.bf16.mxu1 %v6702_v13 }
 0x155   :  { %v1087_v19 = vpop.f32.mrf.mxu0  ;;  %v2352_v21 = vpop.f32.mrf.mxu1 }
 0x156   :  { %2840 = vrot.lane.b32.xlu0 %v2349_v16, %s6994_s21  ;;  %1578 = vrot.lane.b32.xlu1 %v1087_v19, %s6994_s21  ;;  %v6718_v16 = vld [vmem:[%s8734_s1 + $0x240] ss:$8 sps:$4 sm:$0xff]   ;;  %v6723_v19 = vld [vmem:[%s8734_s1 + $0x254] ss:$8 sps:$4 sm:$0xff]  }
 0x157   :  { %v1089_v22 = vpop.f32.mrf.mxu0  ;;  %v2354_v24 = vpop.f32.mrf.mxu1 }
 0x159   :  { %v1092_v25 = vpop.f32.mrf.mxu0  ;;  %1283 = vmatmul.mubr.bf16.gmra.mxu0 %v6700_v20  ;;  %v2357_v26 = vpop.f32.mrf.mxu1  ;;  %2548 = vmatmul.mubr.bf16.gmra.mxu1 %v6700_v20 }
 0x15a   :  { %1580 = vrot.lane.b32.xlu0 %v1092_v25, %s6994_s21  ;;  %2842 = vrot.lane.b32.xlu1 %v2352_v21, %s6994_s21 }
 0x15b   :  { %v1094_v27 = vpop.f32.mrf.mxu0  ;;  %1290 = vmatprep.mubr.bf16.mxu0 %v6705_v23  ;;  %v2359_v28 = vpop.f32.mrf.mxu1  ;;  %2555 = vmatprep.mubr.bf16.mxu1 %v6705_v23 }
 0x15d   :  { %v1095_v29 = vpop.f32.mrf.mxu0  ;;  %v2360_v31 = vpop.f32.mrf.mxu1 }
 0x15e   :  { %2844 = vrot.lane.b32.xlu0 %v2357_v26, %s6994_s21  ;;  %1582 = vrot.lane.b32.xlu1 %v1095_v29, %s6994_s21  ;;  %v6721_v26 = vld [vmem:[%s8734_s1 + $0x250] ss:$8 sps:$4 sm:$0xff]   ;;  %v6726_v29 = vld [vmem:[%s8734_s1 + $0x264] ss:$8 sps:$4 sm:$0xff]  }
 0x15f   :  { %v1097_v32 = vpop.f32.mrf.mxu0  ;;  %v2362_v34 = vpop.f32.mrf.mxu1 }
 0x161   :  { %v1100_v35 = vpop.f32.mrf.mxu0  ;;  %1291 = vmatmul.mubr.bf16.gmra.mxu0 %v6703_v30  ;;  %v2365_v36 = vpop.f32.mrf.mxu1  ;;  %2556 = vmatmul.mubr.bf16.gmra.mxu1 %v6703_v30 }
 0x162   :  { %1584 = vrot.lane.b32.xlu0 %v1100_v35, %s6994_s21  ;;  %2846 = vrot.lane.b32.xlu1 %v2360_v31, %s6994_s21 }
 0x163   :  { %v1102_v37 = vpop.f32.mrf.mxu0  ;;  %1298 = vmatprep.mubr.bf16.mxu0 %v6708_v33  ;;  %v2367_v38 = vpop.f32.mrf.mxu1  ;;  %2563 = vmatprep.mubr.bf16.mxu1 %v6708_v33 }
 0x165   :  { %v1103_v39 = vpop.f32.mrf.mxu0  ;;  %v2368_v41 = vpop.f32.mrf.mxu1 }
 0x166   :  { %2848 = vrot.lane.b32.xlu0 %v2365_v36, %s6994_s21  ;;  %1586 = vrot.lane.b32.xlu1 %v1103_v39, %s6994_s21  ;;  %v6724_v36 = vld [vmem:[%s8734_s1 + $0x260] ss:$8 sps:$4 sm:$0xff]   ;;  %v6729_v39 = vld [vmem:[%s8734_s1 + $0x274] ss:$8 sps:$4 sm:$0xff]  }
 0x167   :  { %v1105_v42 = vpop.f32.mrf.mxu0  ;;  %v2370_v44 = vpop.f32.mrf.mxu1 }
 0x169   :  { %v1108_v45 = vpop.f32.mrf.mxu0  ;;  %1299 = vmatmul.mubr.bf16.gmra.mxu0 %v6706_v40  ;;  %v2373_v46 = vpop.f32.mrf.mxu1  ;;  %2564 = vmatmul.mubr.bf16.gmra.mxu1 %v6706_v40 }
 0x16a   :  { %1613 = vrot.lane.b32.xlu0 %v1108_v45, %s6995_s17  ;;  %2850 = vrot.lane.b32.xlu1 %v2368_v41, %s6994_s21  ;;  %s7006_s21 = smov 104  }
 0x16b   :  { %v1110_v47 = vpop.f32.mrf.mxu0  ;;  %1306 = vmatprep.mubr.bf16.mxu0 %v6711_v43  ;;  %v2375_v48 = vpop.f32.mrf.mxu1  ;;  %2571 = vmatprep.mubr.bf16.mxu1 %v6711_v43 }
 0x16d   :  { %v1111_v49 = vpop.f32.mrf.mxu0  ;;  %v2376_v51 = vpop.f32.mrf.mxu1 }
 0x16e   :  { %2876 = vrot.lane.b32.xlu0 %v2373_v46, %s6995_s17  ;;  %1615 = vrot.lane.b32.xlu1 %v1111_v49, %s6995_s17  ;;  %v6727_v46 = vld [vmem:[%s8734_s1 + $0x270] ss:$8 sps:$4 sm:$0xff]   ;;  %v6732_v49 = vld [vmem:[%s8734_s1 + $0x284] ss:$8 sps:$4 sm:$0xff]  }
 0x16f   :  { %v1113_v52 = vpop.f32.mrf.mxu0  ;;  %v2378_v54 = vpop.f32.mrf.mxu1 }
 0x171   :  { %v1116_v55 = vpop.f32.mrf.mxu0  ;;  %1307 = vmatmul.mubr.bf16.gmra.mxu0 %v6709_v50  ;;  %v2381_v56 = vpop.f32.mrf.mxu1  ;;  %2572 = vmatmul.mubr.bf16.gmra.mxu1 %v6709_v50 }
 0x172   :  { %1617 = vrot.lane.b32.xlu0 %v1116_v55, %s6995_s17  ;;  %2878 = vrot.lane.b32.xlu1 %v2376_v51, %s6995_s17 }
 0x173   :  { %v1118_v57 = vpop.f32.mrf.mxu0  ;;  %1314 = vmatprep.mubr.bf16.mxu0 %v6714_v53  ;;  %v2383_v58 = vpop.f32.mrf.mxu1  ;;  %2579 = vmatprep.mubr.bf16.mxu1 %v6714_v53 }
 0x175   :  { %v1119_v59 = vpop.f32.mrf.mxu0  ;;  %v2384_v61 = vpop.f32.mrf.mxu1 }
 0x176   :  { %2880 = vrot.lane.b32.xlu0 %v2381_v56, %s6995_s17  ;;  %1619 = vrot.lane.b32.xlu1 %v1119_v59, %s6995_s17  ;;  %v6730_v56 = vld [vmem:[%s8734_s1 + $0x280] ss:$8 sps:$4 sm:$0xff]   ;;  %v6735_v59 = vld [vmem:[%s8734_s1 + $0x294] ss:$8 sps:$4 sm:$0xff]  }
 0x177   :  { %v1121_v62 = vpop.f32.mrf.mxu0  ;;  %v2386_v0 = vpop.f32.mrf.mxu1 }
 0x179   :  { %v1124_v1 = vpop.f32.mrf.mxu0  ;;  %1315 = vmatmul.mubr.bf16.gmra.mxu0 %v6712_v60  ;;  %v2389_v2 = vpop.f32.mrf.mxu1  ;;  %2580 = vmatmul.mubr.bf16.gmra.mxu1 %v6712_v60 }
 0x17a   :  { %1621 = vrot.lane.b32.xlu0 %v1124_v1, %s6995_s17  ;;  %2882 = vrot.lane.b32.xlu1 %v2384_v61, %s6995_s17 }
 0x17b   :  { %v1126_v3 = vpop.f32.mrf.mxu0  ;;  %1322 = vmatprep.mubr.bf16.mxu0 %v6717_v63  ;;  %v2391_v4 = vpop.f32.mrf.mxu1  ;;  %2587 = vmatprep.mubr.bf16.mxu1 %v6717_v63 }
 0x17d   :  { %v1127_v5 = vpop.f32.mrf.mxu0  ;;  %v2392_v7 = vpop.f32.mrf.mxu1 }
 0x17e   :  { %2884 = vrot.lane.b32.xlu0 %v2389_v2, %s6995_s17  ;;  %1623 = vrot.lane.b32.xlu1 %v1127_v5, %s6995_s17  ;;  %v6733_v2 = vld [vmem:[%s8734_s1 + $0x290] ss:$8 sps:$4 sm:$0xff]   ;;  %v6738_v5 = vld [vmem:[%s8734_s1 + $0x2a4] ss:$8 sps:$4 sm:$0xff]  }
 0x17f   :  { %v1129_v8 = vpop.f32.mrf.mxu0  ;;  %v2394_v10 = vpop.f32.mrf.mxu1 }
 0x181   :  { %v1132_v11 = vpop.f32.mrf.mxu0  ;;  %1323 = vmatmul.mubr.bf16.gmra.mxu0 %v6715_v6  ;;  %v2397_v12 = vpop.f32.mrf.mxu1  ;;  %2588 = vmatmul.mubr.bf16.gmra.mxu1 %v6715_v6 }
 0x182   :  { %1625 = vrot.lane.b32.xlu0 %v1132_v11, %s6995_s17  ;;  %2886 = vrot.lane.b32.xlu1 %v2392_v7, %s6995_s17 }
 0x183   :  { %v1134_v13 = vpop.f32.mrf.mxu0  ;;  %1330 = vmatprep.mubr.bf16.mxu0 %v6720_v9  ;;  %v2399_v14 = vpop.f32.mrf.mxu1  ;;  %2595 = vmatprep.mubr.bf16.mxu1 %v6720_v9 }
 0x185   :  { %v1135_v15 = vpop.f32.mrf.mxu0  ;;  %v2400_v17 = vpop.f32.mrf.mxu1 }
 0x186   :  { %2888 = vrot.lane.b32.xlu0 %v2397_v12, %s6995_s17  ;;  %1627 = vrot.lane.b32.xlu1 %v1135_v15, %s6995_s17  ;;  %v6736_v12 = vld [vmem:[%s8734_s1 + $0x2a0] ss:$8 sps:$4 sm:$0xff]   ;;  %v6741_v15 = vld [vmem:[%s8734_s1 + $0x2b4] ss:$8 sps:$4 sm:$0xff]  }
 0x187   :  { %v1137_v18 = vpop.f32.mrf.mxu0  ;;  %v2402_v20 = vpop.f32.mrf.mxu1 }
 0x189   :  { %v1140_v21 = vpop.f32.mrf.mxu0  ;;  %1331 = vmatmul.mubr.bf16.gmra.mxu0 %v6718_v16  ;;  %v2405_v22 = vpop.f32.mrf.mxu1  ;;  %2596 = vmatmul.mubr.bf16.gmra.mxu1 %v6718_v16 }
 0x18a   :  { %1654 = vrot.lane.b32.xlu0 %v1140_v21, %s6996_s0  ;;  %2890 = vrot.lane.b32.xlu1 %v2400_v17, %s6995_s17 }
 0x18b   :  { %v1142_v23 = vpop.f32.mrf.mxu0  ;;  %1338 = vmatprep.mubr.bf16.mxu0 %v6723_v19  ;;  %v2407_v24 = vpop.f32.mrf.mxu1  ;;  %2603 = vmatprep.mubr.bf16.mxu1 %v6723_v19 }
 0x18c   :  { %v6739_v23 = vld [vmem:[%s8734_s1 + $0x2b0] ss:$8 sps:$4 sm:$0xff]  }
 0x18d   :  { %v1143_v25 = vpop.f32.mrf.mxu0  ;;  %v2408_v27 = vpop.f32.mrf.mxu1 }
 0x18e   :  { %2916 = vrot.lane.b32.xlu0 %v2405_v22, %s6996_s0  ;;  %1656 = vrot.lane.b32.xlu1 %v1143_v25, %s6996_s0 }
 0x18f   :  { %v1145_v28 = vpop.f32.mrf.mxu0  ;;  %v2410_v30 = vpop.f32.mrf.mxu1 }
 0x191   :  { %v1148_v31 = vpop.f32.mrf.mxu0  ;;  %1339 = vmatmul.mubr.bf16.gmra.mxu0 %v6721_v26  ;;  %v2413_v32 = vpop.f32.mrf.mxu1  ;;  %2604 = vmatmul.mubr.bf16.gmra.mxu1 %v6721_v26  ;;  %v6744_v26 = vld [vmem:[%s8734_s1 + $0x2c4] ss:$8 sps:$4 sm:$0xff]  }
 0x192   :  { %1658 = vrot.lane.b32.xlu0 %v1148_v31, %s6996_s0  ;;  %2918 = vrot.lane.b32.xlu1 %v2408_v27, %s6996_s0 }
 0x193   :  { %v1150_v33 = vpop.f32.mrf.mxu0  ;;  %1346 = vmatprep.mubr.bf16.mxu0 %v6726_v29  ;;  %v2415_v34 = vpop.f32.mrf.mxu1  ;;  %2611 = vmatprep.mubr.bf16.mxu1 %v6726_v29 }
 0x195   :  { %v1151_v35 = vpop.f32.mrf.mxu0  ;;  %v2416_v37 = vpop.f32.mrf.mxu1 }
 0x196   :  { %2920 = vrot.lane.b32.xlu0 %v2413_v32, %s6996_s0  ;;  %1660 = vrot.lane.b32.xlu1 %v1151_v35, %s6996_s0 }
 0x197   :  { %v1153_v38 = vpop.f32.mrf.mxu0  ;;  %v2418_v40 = vpop.f32.mrf.mxu1 }
 0x198   :  { %v6747_v40 = vld [vmem:[%s8734_s1 + $0x2d4] ss:$8 sps:$4 sm:$0xff]  }
 0x199   :  { %v1156_v41 = vpop.f32.mrf.mxu0  ;;  %1347 = vmatmul.mubr.bf16.gmra.mxu0 %v6724_v36  ;;  %v2421_v42 = vpop.f32.mrf.mxu1  ;;  %2612 = vmatmul.mubr.bf16.gmra.mxu1 %v6724_v36 }
 0x19a   :  { %1662 = vrot.lane.b32.xlu0 %v1156_v41, %s6996_s0  ;;  %2922 = vrot.lane.b32.xlu1 %v2416_v37, %s6996_s0  ;;  %v6742_v37 = vld [vmem:[%s8734_s1 + $0x2c0] ss:$8 sps:$4 sm:$0xff]  }
 0x19b   :  { %v1158_v43 = vpop.f32.mrf.mxu0  ;;  %1354 = vmatprep.mubr.bf16.mxu0 %v6729_v39  ;;  %v2423_v44 = vpop.f32.mrf.mxu1  ;;  %2619 = vmatprep.mubr.bf16.mxu1 %v6729_v39 }
 0x19d   :  { %v1159_v45 = vpop.f32.mrf.mxu0  ;;  %v2424_v47 = vpop.f32.mrf.mxu1 }
 0x19e   :  { %2924 = vrot.lane.b32.xlu0 %v2421_v42, %s6996_s0  ;;  %1664 = vrot.lane.b32.xlu1 %v1159_v45, %s6996_s0 }
 0x19f   :  { %v1161_v48 = vpop.f32.mrf.mxu0  ;;  %v2426_v50 = vpop.f32.mrf.mxu1 }
 0x1a1   :  { %v1164_v51 = vpop.f32.mrf.mxu0  ;;  %1355 = vmatmul.mubr.bf16.gmra.mxu0 %v6727_v46  ;;  %v2429_v52 = vpop.f32.mrf.mxu1  ;;  %2620 = vmatmul.mubr.bf16.gmra.mxu1 %v6727_v46 }
 0x1a2   :  { %1666 = vrot.lane.b32.xlu0 %v1164_v51, %s6996_s0  ;;  %2926 = vrot.lane.b32.xlu1 %v2424_v47, %s6996_s0  ;;  %v6745_v51 = vld [vmem:[%s8734_s1 + $0x2d0] ss:$8 sps:$4 sm:$0xff]  }
 0x1a3   :  { %v1166_v53 = vpop.f32.mrf.mxu0  ;;  %1362 = vmatprep.mubr.bf16.mxu0 %v6732_v49  ;;  %v2431_v54 = vpop.f32.mrf.mxu1  ;;  %2627 = vmatprep.mubr.bf16.mxu1 %v6732_v49 }
 0x1a4   :  { %v6750_v54 = vld [vmem:[%s8734_s1 + $0x2e4] ss:$8 sps:$4 sm:$0xff]  }
 0x1a5   :  { %v1167_v55 = vpop.f32.mrf.mxu0  ;;  %v2432_v57 = vpop.f32.mrf.mxu1 }
 0x1a6   :  { %2928 = vrot.lane.b32.xlu0 %v2429_v52, %s6996_s0  ;;  %1668 = vrot.lane.b32.xlu1 %v1167_v55, %s6996_s0 }
 0x1a7   :  { %v1169_v58 = vpop.f32.mrf.mxu0  ;;  %v2434_v60 = vpop.f32.mrf.mxu1 }
 0x1a9   :  { %v1172_v61 = vpop.f32.mrf.mxu0  ;;  %1363 = vmatmul.mubr.bf16.gmra.mxu0 %v6730_v56  ;;  %v2437_v62 = vpop.f32.mrf.mxu1  ;;  %2628 = vmatmul.mubr.bf16.gmra.mxu1 %v6730_v56 }
 0x1aa   :  { %1695 = vrot.lane.b32.xlu0 %v1172_v61, %s6997_s26  ;;  %2930 = vrot.lane.b32.xlu1 %v2432_v57, %s6996_s0  ;;  %s7001_s0 = smov 64  }
 0x1ab   :  { %v1174_v63 = vpop.f32.mrf.mxu0  ;;  %1370 = vmatprep.mubr.bf16.mxu0 %v6735_v59  ;;  %v2439_v0 = vpop.f32.mrf.mxu1  ;;  %2635 = vmatprep.mubr.bf16.mxu1 %v6735_v59 }
 0x1ad   :  { %v1175_v1 = vpop.f32.mrf.mxu0  ;;  %v2440_v3 = vpop.f32.mrf.mxu1 }
 0x1ae   :  { %2956 = vrot.lane.b32.xlu0 %v2437_v62, %s6997_s26  ;;  %1697 = vrot.lane.b32.xlu1 %v1175_v1, %s6997_s26  ;;  %v6748_v1 = vld [vmem:[%s8734_s1 + $0x2e0] ss:$8 sps:$4 sm:$0xff]  }
 0x1af   :  { %v1177_v4 = vpop.f32.mrf.mxu0  ;;  %v2442_v6 = vpop.f32.mrf.mxu1 }
 0x1b0   :  { %v6753_v4 = vld [vmem:[%s8734_s1 + $0x2f4] ss:$8 sps:$4 sm:$0xff]  }
 0x1b1   :  { %v1180_v7 = vpop.f32.mrf.mxu0  ;;  %1371 = vmatmul.mubr.bf16.gmra.mxu0 %v6733_v2  ;;  %v2445_v8 = vpop.f32.mrf.mxu1  ;;  %2636 = vmatmul.mubr.bf16.gmra.mxu1 %v6733_v2 }
 0x1b2   :  { %1699 = vrot.lane.b32.xlu0 %v1180_v7, %s6997_s26  ;;  %2958 = vrot.lane.b32.xlu1 %v2440_v3, %s6997_s26 }
 0x1b3   :  { %v1182_v9 = vpop.f32.mrf.mxu0  ;;  %1378 = vmatprep.mubr.bf16.mxu0 %v6738_v5  ;;  %v2447_v10 = vpop.f32.mrf.mxu1  ;;  %2643 = vmatprep.mubr.bf16.mxu1 %v6738_v5 }
 0x1b5   :  { %v1183_v11 = vpop.f32.mrf.mxu0  ;;  %v2448_v13 = vpop.f32.mrf.mxu1 }
 0x1b6   :  { %2960 = vrot.lane.b32.xlu0 %v2445_v8, %s6997_s26  ;;  %1701 = vrot.lane.b32.xlu1 %v1183_v11, %s6997_s26 }
 0x1b7   :  { %v1185_v14 = vpop.f32.mrf.mxu0  ;;  %v2450_v16 = vpop.f32.mrf.mxu1 }
 0x1b9   :  { %v1188_v17 = vpop.f32.mrf.mxu0  ;;  %1379 = vmatmul.mubr.bf16.gmra.mxu0 %v6736_v12  ;;  %v2453_v18 = vpop.f32.mrf.mxu1  ;;  %2644 = vmatmul.mubr.bf16.gmra.mxu1 %v6736_v12 }
 0x1ba   :  { %1703 = vrot.lane.b32.xlu0 %v1188_v17, %s6997_s26  ;;  %2962 = vrot.lane.b32.xlu1 %v2448_v13, %s6997_s26 }
 0x1bb   :  { %v1190_v19 = vpop.f32.mrf.mxu0  ;;  %1386 = vmatprep.mubr.bf16.mxu0 %v6741_v15  ;;  %v2455_v21 = vpop.f32.mrf.mxu1  ;;  %2651 = vmatprep.mubr.bf16.mxu1 %v6741_v15  ;;  %v6751_v15 = vld [vmem:[%s8734_s1 + $0x2f0] ss:$8 sps:$4 sm:$0xff]  }
 0x1bc   :  { %v1573_v20 = vpop.permute.xlu0 %1572 }
 0x1bd   :  { %1597 = vst.msk [vmem:[#allocation2] sm:$0xff] %vm1596_vm1, %v1573_v20  ;;  %v1191_v22 = vpop.f32.mrf.mxu0  ;;  %v2456_v24 = vpop.f32.mrf.mxu1 }
 0x1be   :  { %2964 = vrot.lane.b32.xlu0 %v2453_v18, %s6997_s26  ;;  %1705 = vrot.lane.b32.xlu1 %v1191_v22, %s6997_s26  ;;  %v6756_v18 = vld [vmem:[%s8734_s1 + $0x304] ss:$8 sps:$4 sm:$0xff]  }
 0x1bf   :  { %v1193_v25 = vpop.f32.mrf.mxu0  ;;  %v2458_v28 = vpop.f32.mrf.mxu1 }
 0x1c0   :  { %v2837_v27 = vpop.permute.xlu0 %2836  ;;  %v2839_v29 = vpop.permute.xlu1 %2838 }
 0x1c1   :  { %2860 = vst.msk [vmem:[#allocation2 + $0x40] sm:$0xff] %vm1596_vm1, %v2837_v27  ;;  %v1196_v30 = vpop.f32.mrf.mxu0  ;;  %1387 = vmatmul.mubr.bf16.gmra.mxu0 %v6739_v23  ;;  %2861 = vst.msk [vmem:[#allocation2 + $0x48] sm:$0xff] %vm1596_vm1, %v2839_v29  ;;  %v2461_v31 = vpop.f32.mrf.mxu1  ;;  %2652 = vmatmul.mubr.bf16.gmra.mxu1 %v6739_v23  ;;  %v6754_v29 = vld [vmem:[%s8734_s1 + $0x300] ss:$8 sps:$4 sm:$0xff]  }
 0x1c2   :  { %1707 = vrot.lane.b32.xlu0 %v1196_v30, %s6997_s26  ;;  %2966 = vrot.lane.b32.xlu1 %v2456_v24, %s6997_s26 }
 0x1c3   :  { %v1198_v32 = vpop.f32.mrf.mxu0  ;;  %1394 = vmatprep.mubr.bf16.mxu0 %v6744_v26  ;;  %v2463_v34 = vpop.f32.mrf.mxu1  ;;  %2659 = vmatprep.mubr.bf16.mxu1 %v6744_v26 }
 0x1c4   :  { %v1575_v33 = vpop.permute.xlu0 %1574  ;;  %v1577_v35 = vpop.permute.xlu1 %1576  ;;  %v6759_v32 = vld [vmem:[%s8734_s1 + $0x314] ss:$8 sps:$4 sm:$0xff]  }
 0x1c5   :  { %1598 = vst.msk [vmem:[#allocation2 + $0x8] sm:$0xff] %vm1596_vm1, %v1575_v33  ;;  %v1199_v36 = vpop.f32.mrf.mxu0  ;;  %1599 = vst.msk [vmem:[#allocation2 + $0x10] sm:$0xff] %vm1596_vm1, %v1577_v35  ;;  %v2464_v38 = vpop.f32.mrf.mxu1 }
 0x1c6   :  { %2968 = vrot.lane.b32.xlu0 %v2461_v31, %s6997_s26  ;;  %1709 = vrot.lane.b32.xlu1 %v1199_v36, %s6997_s26 }
 0x1c7   :  { %v1201_v39 = vpop.f32.mrf.mxu0  ;;  %v2466_v42 = vpop.f32.mrf.mxu1 }
 0x1c8   :  { %v2841_v41 = vpop.permute.xlu0 %2840  ;;  %v1579_v43 = vpop.permute.xlu1 %1578 }
 0x1c9   :  { %2862 = vst.msk [vmem:[#allocation2 + $0x50] sm:$0xff] %vm1596_vm1, %v2841_v41  ;;  %v1204_v44 = vpop.f32.mrf.mxu0  ;;  %1395 = vmatmul.mubr.bf16.gmra.mxu0 %v6742_v37  ;;  %1600 = vst.msk [vmem:[#allocation2 + $0x18] sm:$0xff] %vm1596_vm1, %v1579_v43  ;;  %v2469_v45 = vpop.f32.mrf.mxu1  ;;  %2660 = vmatmul.mubr.bf16.gmra.mxu1 %v6742_v37  ;;  %v6757_v43 = vld [vmem:[%s8734_s1 + $0x310] ss:$8 sps:$4 sm:$0xff]  }
 0x1ca   :  { %1736 = vrot.lane.b32.xlu0 %v1204_v44, %s6998_s23  ;;  %2970 = vrot.lane.b32.xlu1 %v2464_v38, %s6997_s26 }
 0x1cb   :  { %v1206_v46 = vpop.f32.mrf.mxu0  ;;  %1402 = vmatprep.mubr.bf16.mxu0 %v6747_v40  ;;  %v2471_v48 = vpop.f32.mrf.mxu1  ;;  %2667 = vmatprep.mubr.bf16.mxu1 %v6747_v40 }
 0x1cc   :  { %v1581_v47 = vpop.permute.xlu0 %1580  ;;  %v2843_v49 = vpop.permute.xlu1 %2842  ;;  %v6762_v46 = vld [vmem:[%s8734_s1 + $0x324] ss:$8 sps:$4 sm:$0xff]  }
 0x1cd   :  { %1601 = vst.msk [vmem:[#allocation2 + $0x20] sm:$0xff] %vm1596_vm1, %v1581_v47  ;;  %v1207_v50 = vpop.f32.mrf.mxu0  ;;  %2863 = vst.msk [vmem:[#allocation2 + $0x58] sm:$0xff] %vm1596_vm1, %v2843_v49  ;;  %v2472_v52 = vpop.f32.mrf.mxu1 }
 0x1ce   :  { %2996 = vrot.lane.b32.xlu0 %v2469_v45, %s6998_s23  ;;  %1738 = vrot.lane.b32.xlu1 %v1207_v50, %s6998_s23 }
 0x1cf   :  { %v1209_v53 = vpop.f32.mrf.mxu0  ;;  %v2474_v56 = vpop.f32.mrf.mxu1 }
 0x1d0   :  { %v2845_v55 = vpop.permute.xlu0 %2844  ;;  %v1583_v57 = vpop.permute.xlu1 %1582 }
 0x1d1   :  { %2864 = vst.msk [vmem:[#allocation2 + $0x60] sm:$0xff] %vm1596_vm1, %v2845_v55  ;;  %v1212_v58 = vpop.f32.mrf.mxu0  ;;  %1403 = vmatmul.mubr.bf16.gmra.mxu0 %v6745_v51  ;;  %1602 = vst.msk [vmem:[#allocation2 + $0x28] sm:$0xff] %vm1596_vm1, %v1583_v57  ;;  %v2477_v59 = vpop.f32.mrf.mxu1  ;;  %2668 = vmatmul.mubr.bf16.gmra.mxu1 %v6745_v51  ;;  %v6760_v57 = vld [vmem:[%s8734_s1 + $0x320] ss:$8 sps:$4 sm:$0xff]  }
 0x1d2   :  { %1740 = vrot.lane.b32.xlu0 %v1212_v58, %s6998_s23  ;;  %2998 = vrot.lane.b32.xlu1 %v2472_v52, %s6998_s23 }
 0x1d3   :  { %v1214_v60 = vpop.f32.mrf.mxu0  ;;  %1410 = vmatprep.mubr.bf16.mxu0 %v6750_v54  ;;  %v2479_v62 = vpop.f32.mrf.mxu1  ;;  %2675 = vmatprep.mubr.bf16.mxu1 %v6750_v54 }
 0x1d4   :  { %v1585_v61 = vpop.permute.xlu0 %1584  ;;  %v2847_v63 = vpop.permute.xlu1 %2846  ;;  %v6765_v60 = vld [vmem:[%s8734_s1 + $0x334] ss:$8 sps:$4 sm:$0xff]  }
 0x1d5   :  { %1603 = vst.msk [vmem:[#allocation2 + $0x30] sm:$0xff] %vm1596_vm1, %v1585_v61  ;;  %v1215_v0 = vpop.f32.mrf.mxu0  ;;  %2865 = vst.msk [vmem:[#allocation2 + $0x68] sm:$0xff] %vm1596_vm1, %v2847_v63  ;;  %v2480_v2 = vpop.f32.mrf.mxu1 }
 0x1d6   :  { %3000 = vrot.lane.b32.xlu0 %v2477_v59, %s6998_s23  ;;  %1742 = vrot.lane.b32.xlu1 %v1215_v0, %s6998_s23 }
 0x1d7   :  { %v1217_v3 = vpop.f32.mrf.mxu0  ;;  %v2482_v6 = vpop.f32.mrf.mxu1 }
 0x1d8   :  { %v2849_v5 = vpop.permute.xlu0 %2848  ;;  %v1587_v7 = vpop.permute.xlu1 %1586 }
 0x1d9   :  { %2866 = vst.msk [vmem:[#allocation2 + $0x70] sm:$0xff] %vm1596_vm1, %v2849_v5  ;;  %v1220_v8 = vpop.f32.mrf.mxu0  ;;  %1411 = vmatmul.mubr.bf16.gmra.mxu0 %v6748_v1  ;;  %1604 = vst.msk [vmem:[#allocation2 + $0x38] sm:$0xff] %vm1596_vm1, %v1587_v7  ;;  %v2485_v9 = vpop.f32.mrf.mxu1  ;;  %2676 = vmatmul.mubr.bf16.gmra.mxu1 %v6748_v1  ;;  %v6763_v7 = vld [vmem:[%s8734_s1 + $0x330] ss:$8 sps:$4 sm:$0xff]  }
 0x1da   :  { %1744 = vrot.lane.b32.xlu0 %v1220_v8, %s6998_s23  ;;  %3002 = vrot.lane.b32.xlu1 %v2480_v2, %s6998_s23 }
 0x1db   :  { %v1222_v10 = vpop.f32.mrf.mxu0  ;;  %1418 = vmatprep.mubr.bf16.mxu0 %v6753_v4  ;;  %v2487_v12 = vpop.f32.mrf.mxu1  ;;  %2683 = vmatprep.mubr.bf16.mxu1 %v6753_v4 }
 0x1dc   :  { %v1614_v11 = vpop.permute.xlu0 %1613  ;;  %v2851_v13 = vpop.permute.xlu1 %2850  ;;  %v6768_v10 = vld [vmem:[%s8734_s1 + $0x344] ss:$8 sps:$4 sm:$0xff]  }
 0x1dd   :  { %1638 = vst.msk [vmem:[#allocation2] sm:$0xff] %vm1637_vm2, %v1614_v11  ;;  %v1223_v14 = vpop.f32.mrf.mxu0  ;;  %v2488_v16 = vpop.f32.mrf.mxu1 }
 0x1de   :  { %2867 = vst.msk [vmem:[#allocation2 + $0x78] sm:$0xff] %vm1596_vm1, %v2851_v13  ;;  %3004 = vrot.lane.b32.xlu0 %v2485_v9, %s6998_s23  ;;  %1746 = vrot.lane.b32.xlu1 %v1223_v14, %s6998_s23  ;;  %vm3788_vm1 = vcmask 523264  }
 0x1df   :  { %v1225_v17 = vpop.f32.mrf.mxu0  ;;  %v2490_v20 = vpop.f32.mrf.mxu1 }
 0x1e0   :  { %v2877_v19 = vpop.permute.xlu0 %2876  ;;  %v1616_v21 = vpop.permute.xlu1 %1615 }
 0x1e1   :  { %2900 = vst.msk [vmem:[#allocation2 + $0x40] sm:$0xff] %vm1637_vm2, %v2877_v19  ;;  %v1228_v22 = vpop.f32.mrf.mxu0  ;;  %1419 = vmatmul.mubr.bf16.gmra.mxu0 %v6751_v15  ;;  %1639 = vst.msk [vmem:[#allocation2 + $0x8] sm:$0xff] %vm1637_vm2, %v1616_v21  ;;  %v2493_v23 = vpop.f32.mrf.mxu1  ;;  %2684 = vmatmul.mubr.bf16.gmra.mxu1 %v6751_v15  ;;  %v6766_v21 = vld [vmem:[%s8734_s1 + $0x340] ss:$8 sps:$4 sm:$0xff]  }
 0x1e2   :  { %1748 = vrot.lane.b32.xlu0 %v1228_v22, %s6998_s23  ;;  %3006 = vrot.lane.b32.xlu1 %v2488_v16, %s6998_s23 }
 0x1e3   :  { %v1230_v24 = vpop.f32.mrf.mxu0  ;;  %1426 = vmatprep.mubr.bf16.mxu0 %v6756_v18  ;;  %v2495_v26 = vpop.f32.mrf.mxu1  ;;  %2691 = vmatprep.mubr.bf16.mxu1 %v6756_v18 }
 0x1e4   :  { %v1618_v25 = vpop.permute.xlu0 %1617  ;;  %v2879_v27 = vpop.permute.xlu1 %2878  ;;  %v6771_v24 = vld [vmem:[%s8734_s1 + $0x354] ss:$8 sps:$4 sm:$0xff]  }
 0x1e5   :  { %1640 = vst.msk [vmem:[#allocation2 + $0x10] sm:$0xff] %vm1637_vm2, %v1618_v25  ;;  %v1231_v28 = vpop.f32.mrf.mxu0  ;;  %2901 = vst.msk [vmem:[#allocation2 + $0x48] sm:$0xff] %vm1637_vm2, %v2879_v27  ;;  %v2496_v30 = vpop.f32.mrf.mxu1 }
 0x1e6   :  { %3008 = vrot.lane.b32.xlu0 %v2493_v23, %s6998_s23  ;;  %1750 = vrot.lane.b32.xlu1 %v1231_v28, %s6998_s23 }
 0x1e7   :  { %v1233_v31 = vpop.f32.mrf.mxu0  ;;  %v2498_v34 = vpop.f32.mrf.mxu1 }
 0x1e8   :  { %v2881_v33 = vpop.permute.xlu0 %2880  ;;  %v1620_v35 = vpop.permute.xlu1 %1619 }
 0x1e9   :  { %2902 = vst.msk [vmem:[#allocation2 + $0x50] sm:$0xff] %vm1637_vm2, %v2881_v33  ;;  %v1236_v36 = vpop.f32.mrf.mxu0  ;;  %1427 = vmatmul.mubr.bf16.gmra.mxu0 %v6754_v29  ;;  %1641 = vst.msk [vmem:[#allocation2 + $0x18] sm:$0xff] %vm1637_vm2, %v1620_v35  ;;  %v2501_v37 = vpop.f32.mrf.mxu1  ;;  %2692 = vmatmul.mubr.bf16.gmra.mxu1 %v6754_v29  ;;  %v6769_v35 = vld [vmem:[%s8734_s1 + $0x350] ss:$8 sps:$4 sm:$0xff]  }
 0x1ea   :  { %1777 = vrot.lane.b32.xlu0 %v1236_v36, %s6999_s19  ;;  %3010 = vrot.lane.b32.xlu1 %v2496_v30, %s6998_s23 }
 0x1eb   :  { %v1238_v38 = vpop.f32.mrf.mxu0  ;;  %1434 = vmatprep.mubr.bf16.mxu0 %v6759_v32  ;;  %v2503_v40 = vpop.f32.mrf.mxu1  ;;  %2699 = vmatprep.mubr.bf16.mxu1 %v6759_v32 }
 0x1ec   :  { %v1622_v39 = vpop.permute.xlu0 %1621  ;;  %v2883_v41 = vpop.permute.xlu1 %2882  ;;  %v6774_v38 = vld [vmem:[%s8734_s1 + $0x364] ss:$8 sps:$4 sm:$0xff]  }
 0x1ed   :  { %1642 = vst.msk [vmem:[#allocation2 + $0x20] sm:$0xff] %vm1637_vm2, %v1622_v39  ;;  %v1239_v42 = vpop.f32.mrf.mxu0  ;;  %2903 = vst.msk [vmem:[#allocation2 + $0x58] sm:$0xff] %vm1637_vm2, %v2883_v41  ;;  %v2504_v44 = vpop.f32.mrf.mxu1 }
 0x1ee   :  { %3036 = vrot.lane.b32.xlu0 %v2501_v37, %s6999_s19  ;;  %1779 = vrot.lane.b32.xlu1 %v1239_v42, %s6999_s19 }
 0x1ef   :  { %v1241_v45 = vpop.f32.mrf.mxu0  ;;  %v2506_v48 = vpop.f32.mrf.mxu1 }
 0x1f0   :  { %v2885_v47 = vpop.permute.xlu0 %2884  ;;  %v1624_v49 = vpop.permute.xlu1 %1623 }
 0x1f1   :  { %2904 = vst.msk [vmem:[#allocation2 + $0x60] sm:$0xff] %vm1637_vm2, %v2885_v47  ;;  %v1244_v50 = vpop.f32.mrf.mxu0  ;;  %1435 = vmatmul.mubr.bf16.gmra.mxu0 %v6757_v43  ;;  %1643 = vst.msk [vmem:[#allocation2 + $0x28] sm:$0xff] %vm1637_vm2, %v1624_v49  ;;  %v2509_v51 = vpop.f32.mrf.mxu1  ;;  %2700 = vmatmul.mubr.bf16.gmra.mxu1 %v6757_v43  ;;  %v6772_v49 = vld [vmem:[%s8734_s1 + $0x360] ss:$8 sps:$4 sm:$0xff]  }
 0x1f2   :  { %1781 = vrot.lane.b32.xlu0 %v1244_v50, %s6999_s19  ;;  %3038 = vrot.lane.b32.xlu1 %v2504_v44, %s6999_s19 }
 0x1f3   :  { %v1246_v52 = vpop.f32.mrf.mxu0  ;;  %1442 = vmatprep.mubr.bf16.mxu0 %v6762_v46  ;;  %v2511_v54 = vpop.f32.mrf.mxu1  ;;  %2707 = vmatprep.mubr.bf16.mxu1 %v6762_v46 }
 0x1f4   :  { %v1626_v53 = vpop.permute.xlu0 %1625  ;;  %v2887_v55 = vpop.permute.xlu1 %2886  ;;  %v6777_v52 = vld [vmem:[%s8734_s1 + $0x374] ss:$8 sps:$4 sm:$0xff]  }
 0x1f5   :  { %1644 = vst.msk [vmem:[#allocation2 + $0x30] sm:$0xff] %vm1637_vm2, %v1626_v53  ;;  %v1247_v56 = vpop.f32.mrf.mxu0  ;;  %2905 = vst.msk [vmem:[#allocation2 + $0x68] sm:$0xff] %vm1637_vm2, %v2887_v55  ;;  %v2512_v58 = vpop.f32.mrf.mxu1 }
 0x1f6   :  { %3040 = vrot.lane.b32.xlu0 %v2509_v51, %s6999_s19  ;;  %1783 = vrot.lane.b32.xlu1 %v1247_v56, %s6999_s19 }
 0x1f7   :  { %v1249_v59 = vpop.f32.mrf.mxu0  ;;  %v2514_v62 = vpop.f32.mrf.mxu1 }
 0x1f8   :  { %v2889_v61 = vpop.permute.xlu0 %2888  ;;  %v1628_v63 = vpop.permute.xlu1 %1627 }
 0x1f9   :  { %2906 = vst.msk [vmem:[#allocation2 + $0x70] sm:$0xff] %vm1637_vm2, %v2889_v61  ;;  %v1252_v0 = vpop.f32.mrf.mxu0  ;;  %1443 = vmatmul.mubr.bf16.gmra.mxu0 %v6760_v57  ;;  %1645 = vst.msk [vmem:[#allocation2 + $0x38] sm:$0xff] %vm1637_vm2, %v1628_v63  ;;  %v2517_v1 = vpop.f32.mrf.mxu1  ;;  %2708 = vmatmul.mubr.bf16.gmra.mxu1 %v6760_v57  ;;  %v6775_v63 = vld [vmem:[%s8734_s1 + $0x370] ss:$8 sps:$4 sm:$0xff]  }
 0x1fa   :  { %1785 = vrot.lane.b32.xlu0 %v1252_v0, %s6999_s19  ;;  %3042 = vrot.lane.b32.xlu1 %v2512_v58, %s6999_s19 }
 0x1fb   :  { %v1254_v2 = vpop.f32.mrf.mxu0  ;;  %1450 = vmatprep.mubr.bf16.mxu0 %v6765_v60  ;;  %v2519_v4 = vpop.f32.mrf.mxu1  ;;  %2715 = vmatprep.mubr.bf16.mxu1 %v6765_v60 }
 0x1fc   :  { %v1655_v3 = vpop.permute.xlu0 %1654  ;;  %v2891_v5 = vpop.permute.xlu1 %2890  ;;  %v6780_v2 = vld [vmem:[%s8734_s1 + $0x384] ss:$8 sps:$4 sm:$0xff]  }
 0x1fd   :  { %1679 = vst.msk [vmem:[#allocation2] sm:$0xff] %vm1678_vm3, %v1655_v3  ;;  %v1255_v6 = vpop.f32.mrf.mxu0  ;;  %v2520_v8 = vpop.f32.mrf.mxu1 }
 0x1fe   :  { %2907 = vst.msk [vmem:[#allocation2 + $0x78] sm:$0xff] %vm1637_vm2, %v2891_v5  ;;  %3044 = vrot.lane.b32.xlu0 %v2517_v1, %s6999_s19  ;;  %1787 = vrot.lane.b32.xlu1 %v1255_v6, %s6999_s19 }
 0x1ff   :  { %v1257_v9 = vpop.f32.mrf.mxu0  ;;  %v2522_v12 = vpop.f32.mrf.mxu1 }
 0x200   :  { %v2917_v11 = vpop.permute.xlu0 %2916  ;;  %v1657_v13 = vpop.permute.xlu1 %1656 }
 0x201   :  { %2940 = vst.msk [vmem:[#allocation2 + $0x40] sm:$0xff] %vm1678_vm3, %v2917_v11  ;;  %v1260_v14 = vpop.f32.mrf.mxu0  ;;  %1451 = vmatmul.mubr.bf16.gmra.mxu0 %v6763_v7  ;;  %1680 = vst.msk [vmem:[#allocation2 + $0x8] sm:$0xff] %vm1678_vm3, %v1657_v13  ;;  %v2525_v15 = vpop.f32.mrf.mxu1  ;;  %2716 = vmatmul.mubr.bf16.gmra.mxu1 %v6763_v7  ;;  %v6778_v13 = vld [vmem:[%s8734_s1 + $0x380] ss:$8 sps:$4 sm:$0xff]  }
 0x202   :  { %1789 = vrot.lane.b32.xlu0 %v1260_v14, %s6999_s19  ;;  %3046 = vrot.lane.b32.xlu1 %v2520_v8, %s6999_s19 }
 0x203   :  { %v1262_v16 = vpop.f32.mrf.mxu0  ;;  %1458 = vmatprep.mubr.bf16.mxu0 %v6768_v10  ;;  %v2527_v18 = vpop.f32.mrf.mxu1  ;;  %2723 = vmatprep.mubr.bf16.mxu1 %v6768_v10 }
 0x204   :  { %v1659_v17 = vpop.permute.xlu0 %1658  ;;  %v2919_v19 = vpop.permute.xlu1 %2918  ;;  %v6783_v16 = vld [vmem:[%s8734_s1 + $0x394] ss:$8 sps:$4 sm:$0xff]  }
 0x205   :  { %1681 = vst.msk [vmem:[#allocation2 + $0x10] sm:$0xff] %vm1678_vm3, %v1659_v17  ;;  %v1263_v20 = vpop.f32.mrf.mxu0  ;;  %2941 = vst.msk [vmem:[#allocation2 + $0x48] sm:$0xff] %vm1678_vm3, %v2919_v19  ;;  %v2528_v22 = vpop.f32.mrf.mxu1 }
 0x206   :  { %3048 = vrot.lane.b32.xlu0 %v2525_v15, %s6999_s19  ;;  %1791 = vrot.lane.b32.xlu1 %v1263_v20, %s6999_s19 }
 0x207   :  { %v1265_v23 = vpop.f32.mrf.mxu0  ;;  %v2530_v26 = vpop.f32.mrf.mxu1 }
 0x208   :  { %v2921_v25 = vpop.permute.xlu0 %2920  ;;  %v1661_v27 = vpop.permute.xlu1 %1660 }
 0x209   :  { %2942 = vst.msk [vmem:[#allocation2 + $0x50] sm:$0xff] %vm1678_vm3, %v2921_v25  ;;  %v1268_v28 = vpop.f32.mrf.mxu0  ;;  %1459 = vmatmul.mubr.bf16.gmra.mxu0 %v6766_v21  ;;  %1682 = vst.msk [vmem:[#allocation2 + $0x18] sm:$0xff] %vm1678_vm3, %v1661_v27  ;;  %v2533_v29 = vpop.f32.mrf.mxu1  ;;  %2724 = vmatmul.mubr.bf16.gmra.mxu1 %v6766_v21  ;;  %v6781_v27 = vld [vmem:[%s8734_s1 + $0x390] ss:$8 sps:$4 sm:$0xff]  }
 0x20a   :  { %1818 = vrot.lane.b32.xlu0 %v1268_v28, %s7000_s16  ;;  %3050 = vrot.lane.b32.xlu1 %v2528_v22, %s6999_s19  ;;  %s7004_s19 = smov 88  }
 0x20b   :  { %v1270_v30 = vpop.f32.mrf.mxu0  ;;  %1466 = vmatprep.mubr.bf16.mxu0 %v6771_v24  ;;  %v2535_v32 = vpop.f32.mrf.mxu1  ;;  %2731 = vmatprep.mubr.bf16.mxu1 %v6771_v24 }
 0x20c   :  { %v1663_v31 = vpop.permute.xlu0 %1662  ;;  %v2923_v33 = vpop.permute.xlu1 %2922  ;;  %v6786_v30 = vld [vmem:[%s8734_s1 + $0x3a4] ss:$8 sps:$4 sm:$0xff]  }
 0x20d   :  { %1683 = vst.msk [vmem:[#allocation2 + $0x20] sm:$0xff] %vm1678_vm3, %v1663_v31  ;;  %v1271_v34 = vpop.f32.mrf.mxu0  ;;  %2943 = vst.msk [vmem:[#allocation2 + $0x58] sm:$0xff] %vm1678_vm3, %v2923_v33  ;;  %v2536_v36 = vpop.f32.mrf.mxu1 }
 0x20e   :  { %3076 = vrot.lane.b32.xlu0 %v2533_v29, %s7000_s16  ;;  %1820 = vrot.lane.b32.xlu1 %v1271_v34, %s7000_s16 }
 0x20f   :  { %v1273_v37 = vpop.f32.mrf.mxu0  ;;  %v2538_v40 = vpop.f32.mrf.mxu1 }
 0x210   :  { %v2925_v39 = vpop.permute.xlu0 %2924  ;;  %v1665_v41 = vpop.permute.xlu1 %1664 }
 0x211   :  { %2944 = vst.msk [vmem:[#allocation2 + $0x60] sm:$0xff] %vm1678_vm3, %v2925_v39  ;;  %v1276_v42 = vpop.f32.mrf.mxu0  ;;  %1467 = vmatmul.mubr.bf16.gmra.mxu0 %v6769_v35  ;;  %1684 = vst.msk [vmem:[#allocation2 + $0x28] sm:$0xff] %vm1678_vm3, %v1665_v41  ;;  %v2541_v43 = vpop.f32.mrf.mxu1  ;;  %2732 = vmatmul.mubr.bf16.gmra.mxu1 %v6769_v35  ;;  %v6784_v41 = vld [vmem:[%s8734_s1 + $0x3a0] ss:$8 sps:$4 sm:$0xff]  }
 0x212   :  { %1822 = vrot.lane.b32.xlu0 %v1276_v42, %s7000_s16  ;;  %3078 = vrot.lane.b32.xlu1 %v2536_v36, %s7000_s16 }
 0x213   :  { %v1278_v44 = vpop.f32.mrf.mxu0  ;;  %1474 = vmatprep.mubr.bf16.mxu0 %v6774_v38  ;;  %v2543_v46 = vpop.f32.mrf.mxu1  ;;  %2739 = vmatprep.mubr.bf16.mxu1 %v6774_v38 }
 0x214   :  { %v1667_v45 = vpop.permute.xlu0 %1666  ;;  %v2927_v47 = vpop.permute.xlu1 %2926  ;;  %v6789_v44 = vld [vmem:[%s8734_s1 + $0x3b4] ss:$8 sps:$4 sm:$0xff]  }
 0x215   :  { %1685 = vst.msk [vmem:[#allocation2 + $0x30] sm:$0xff] %vm1678_vm3, %v1667_v45  ;;  %v1279_v48 = vpop.f32.mrf.mxu0  ;;  %2945 = vst.msk [vmem:[#allocation2 + $0x68] sm:$0xff] %vm1678_vm3, %v2927_v47  ;;  %v2544_v50 = vpop.f32.mrf.mxu1 }
 0x216   :  { %3080 = vrot.lane.b32.xlu0 %v2541_v43, %s7000_s16  ;;  %1824 = vrot.lane.b32.xlu1 %v1279_v48, %s7000_s16 }
 0x217   :  { %v1281_v51 = vpop.f32.mrf.mxu0  ;;  %v2546_v54 = vpop.f32.mrf.mxu1 }
 0x218   :  { %v2929_v53 = vpop.permute.xlu0 %2928  ;;  %v1669_v55 = vpop.permute.xlu1 %1668 }
 0x219   :  { %2946 = vst.msk [vmem:[#allocation2 + $0x70] sm:$0xff] %vm1678_vm3, %v2929_v53  ;;  %v1284_v56 = vpop.f32.mrf.mxu0  ;;  %1475 = vmatmul.mubr.bf16.gmra.mxu0 %v6772_v49  ;;  %1686 = vst.msk [vmem:[#allocation2 + $0x38] sm:$0xff] %vm1678_vm3, %v1669_v55  ;;  %v2549_v57 = vpop.f32.mrf.mxu1  ;;  %2740 = vmatmul.mubr.bf16.gmra.mxu1 %v6772_v49  ;;  %v6787_v55 = vld [vmem:[%s8734_s1 + $0x3b0] ss:$8 sps:$4 sm:$0xff]  }
 0x21a   :  { %1826 = vrot.lane.b32.xlu0 %v1284_v56, %s7000_s16  ;;  %3082 = vrot.lane.b32.xlu1 %v2544_v50, %s7000_s16 }
 0x21b   :  { %v1286_v58 = vpop.f32.mrf.mxu0  ;;  %1482 = vmatprep.mubr.bf16.mxu0 %v6777_v52  ;;  %v2551_v60 = vpop.f32.mrf.mxu1  ;;  %2747 = vmatprep.mubr.bf16.mxu1 %v6777_v52 }
 0x21c   :  { %v1696_v59 = vpop.permute.xlu0 %1695  ;;  %v2931_v61 = vpop.permute.xlu1 %2930  ;;  %v6792_v58 = vld [vmem:[%s8734_s1 + $0x3c4] ss:$8 sps:$4 sm:$0xff]  }
 0x21d   :  { %1720 = vst.msk [vmem:[#allocation2] sm:$0xff] %vm1719_vm4, %v1696_v59  ;;  %v1287_v62 = vpop.f32.mrf.mxu0  ;;  %v2552_v0 = vpop.f32.mrf.mxu1 }
 0x21e   :  { %2947 = vst.msk [vmem:[#allocation2 + $0x78] sm:$0xff] %vm1678_vm3, %v2931_v61  ;;  %3084 = vrot.lane.b32.xlu0 %v2549_v57, %s7000_s16  ;;  %1828 = vrot.lane.b32.xlu1 %v1287_v62, %s7000_s16 }
 0x21f   :  { %v1289_v1 = vpop.f32.mrf.mxu0  ;;  %v2554_v4 = vpop.f32.mrf.mxu1 }
 0x220   :  { %v2957_v3 = vpop.permute.xlu0 %2956  ;;  %v1698_v5 = vpop.permute.xlu1 %1697 }
 0x221   :  { %2980 = vst.msk [vmem:[#allocation2 + $0x40] sm:$0xff] %vm1719_vm4, %v2957_v3  ;;  %v1292_v6 = vpop.f32.mrf.mxu0  ;;  %1483 = vmatmul.mubr.bf16.gmra.mxu0 %v6775_v63  ;;  %1721 = vst.msk [vmem:[#allocation2 + $0x8] sm:$0xff] %vm1719_vm4, %v1698_v5  ;;  %v2557_v7 = vpop.f32.mrf.mxu1  ;;  %2748 = vmatmul.mubr.bf16.gmra.mxu1 %v6775_v63  ;;  %v6790_v5 = vld [vmem:[%s8734_s1 + $0x3c0] ss:$8 sps:$4 sm:$0xff]  }
 0x222   :  { %1830 = vrot.lane.b32.xlu0 %v1292_v6, %s7000_s16  ;;  %3086 = vrot.lane.b32.xlu1 %v2552_v0, %s7000_s16 }
 0x223   :  { %v1294_v8 = vpop.f32.mrf.mxu0  ;;  %1490 = vmatprep.mubr.bf16.mxu0 %v6780_v2  ;;  %v2559_v10 = vpop.f32.mrf.mxu1  ;;  %2755 = vmatprep.mubr.bf16.mxu1 %v6780_v2 }
 0x224   :  { %v1700_v9 = vpop.permute.xlu0 %1699  ;;  %v2959_v11 = vpop.permute.xlu1 %2958  ;;  %v6795_v8 = vld [vmem:[%s8734_s1 + $0x3d4] ss:$8 sps:$4 sm:$0xff]  }
 0x225   :  { %1722 = vst.msk [vmem:[#allocation2 + $0x10] sm:$0xff] %vm1719_vm4, %v1700_v9  ;;  %v1295_v12 = vpop.f32.mrf.mxu0  ;;  %2981 = vst.msk [vmem:[#allocation2 + $0x48] sm:$0xff] %vm1719_vm4, %v2959_v11  ;;  %v2560_v14 = vpop.f32.mrf.mxu1 }
 0x226   :  { %3088 = vrot.lane.b32.xlu0 %v2557_v7, %s7000_s16  ;;  %1832 = vrot.lane.b32.xlu1 %v1295_v12, %s7000_s16 }
 0x227   :  { %v1297_v15 = vpop.f32.mrf.mxu0  ;;  %v2562_v18 = vpop.f32.mrf.mxu1 }
 0x228   :  { %v2961_v17 = vpop.permute.xlu0 %2960  ;;  %v1702_v19 = vpop.permute.xlu1 %1701 }
 0x229   :  { %2982 = vst.msk [vmem:[#allocation2 + $0x50] sm:$0xff] %vm1719_vm4, %v2961_v17  ;;  %v1300_v20 = vpop.f32.mrf.mxu0  ;;  %1491 = vmatmul.mubr.bf16.gmra.mxu0 %v6778_v13  ;;  %1723 = vst.msk [vmem:[#allocation2 + $0x18] sm:$0xff] %vm1719_vm4, %v1702_v19  ;;  %v2565_v21 = vpop.f32.mrf.mxu1  ;;  %2756 = vmatmul.mubr.bf16.gmra.mxu1 %v6778_v13  ;;  %v6793_v19 = vld [vmem:[%s8734_s1 + $0x3d0] ss:$8 sps:$4 sm:$0xff]  }
 0x22a   :  { %1859 = vrot.lane.b32.xlu0 %v1300_v20, %s7001_s0  ;;  %3090 = vrot.lane.b32.xlu1 %v2560_v14, %s7000_s16 }
 0x22b   :  { %v1302_v22 = vpop.f32.mrf.mxu0  ;;  %1498 = vmatprep.mubr.bf16.mxu0 %v6783_v16  ;;  %v2567_v24 = vpop.f32.mrf.mxu1  ;;  %2763 = vmatprep.mubr.bf16.mxu1 %v6783_v16 }
 0x22c   :  { %v1704_v23 = vpop.permute.xlu0 %1703  ;;  %v2963_v25 = vpop.permute.xlu1 %2962  ;;  %v6798_v22 = vld [vmem:[%s8734_s1 + $0x3e4] ss:$8 sps:$4 sm:$0xff]  }
 0x22d   :  { %1724 = vst.msk [vmem:[#allocation2 + $0x20] sm:$0xff] %vm1719_vm4, %v1704_v23  ;;  %v1303_v26 = vpop.f32.mrf.mxu0  ;;  %2983 = vst.msk [vmem:[#allocation2 + $0x58] sm:$0xff] %vm1719_vm4, %v2963_v25  ;;  %v2568_v28 = vpop.f32.mrf.mxu1 }
 0x22e   :  { %3116 = vrot.lane.b32.xlu0 %v2565_v21, %s7001_s0  ;;  %1861 = vrot.lane.b32.xlu1 %v1303_v26, %s7001_s0 }
 0x22f   :  { %v1305_v29 = vpop.f32.mrf.mxu0  ;;  %v2570_v32 = vpop.f32.mrf.mxu1 }
 0x230   :  { %v2965_v31 = vpop.permute.xlu0 %2964  ;;  %v1706_v33 = vpop.permute.xlu1 %1705 }
 0x231   :  { %2984 = vst.msk [vmem:[#allocation2 + $0x60] sm:$0xff] %vm1719_vm4, %v2965_v31  ;;  %v1308_v34 = vpop.f32.mrf.mxu0  ;;  %1499 = vmatmul.mubr.bf16.gmra.mxu0 %v6781_v27  ;;  %1725 = vst.msk [vmem:[#allocation2 + $0x28] sm:$0xff] %vm1719_vm4, %v1706_v33  ;;  %v2573_v35 = vpop.f32.mrf.mxu1  ;;  %2764 = vmatmul.mubr.bf16.gmra.mxu1 %v6781_v27  ;;  %v6796_v33 = vld [vmem:[%s8734_s1 + $0x3e0] ss:$8 sps:$4 sm:$0xff]  }
 0x232   :  { %1863 = vrot.lane.b32.xlu0 %v1308_v34, %s7001_s0  ;;  %3118 = vrot.lane.b32.xlu1 %v2568_v28, %s7001_s0 }
 0x233   :  { %v1310_v36 = vpop.f32.mrf.mxu0  ;;  %1506 = vmatprep.mubr.bf16.mxu0 %v6786_v30  ;;  %v2575_v38 = vpop.f32.mrf.mxu1  ;;  %2771 = vmatprep.mubr.bf16.mxu1 %v6786_v30 }
 0x234   :  { %v1708_v37 = vpop.permute.xlu0 %1707  ;;  %v2967_v39 = vpop.permute.xlu1 %2966 }
 0x235   :  { %1726 = vst.msk [vmem:[#allocation2 + $0x30] sm:$0xff] %vm1719_vm4, %v1708_v37  ;;  %v1311_v40 = vpop.f32.mrf.mxu0  ;;  %2985 = vst.msk [vmem:[#allocation2 + $0x68] sm:$0xff] %vm1719_vm4, %v2967_v39  ;;  %v2576_v42 = vpop.f32.mrf.mxu1 }
 0x236   :  { %3120 = vrot.lane.b32.xlu0 %v2573_v35, %s7001_s0  ;;  %1865 = vrot.lane.b32.xlu1 %v1311_v40, %s7001_s0  ;;  %v6801_v35 = vld [vmem:[%s8734_s1 + $0x3f4] ss:$8 sps:$4 sm:$0xff]  }
 0x237   :  { %v1313_v43 = vpop.f32.mrf.mxu0  ;;  %v2578_v46 = vpop.f32.mrf.mxu1 }
 0x238   :  { %v2969_v45 = vpop.permute.xlu0 %2968  ;;  %v1710_v47 = vpop.permute.xlu1 %1709 }
 0x239   :  { %2986 = vst.msk [vmem:[#allocation2 + $0x70] sm:$0xff] %vm1719_vm4, %v2969_v45  ;;  %v1316_v48 = vpop.f32.mrf.mxu0  ;;  %1507 = vmatmul.mubr.bf16.gmra.mxu0 %v6784_v41  ;;  %1727 = vst.msk [vmem:[#allocation2 + $0x38] sm:$0xff] %vm1719_vm4, %v1710_v47  ;;  %v2581_v49 = vpop.f32.mrf.mxu1  ;;  %2772 = vmatmul.mubr.bf16.gmra.mxu1 %v6784_v41  ;;  %v6799_v47 = vld [vmem:[%s8734_s1 + $0x3f0] ss:$8 sps:$4 sm:$0xff]   ;;  %s7003_s1 = smov 80  }
 0x23a   :  { %1867 = vrot.lane.b32.xlu0 %v1316_v48, %s7001_s0  ;;  %3122 = vrot.lane.b32.xlu1 %v2576_v42, %s7001_s0 }
 0x23b   :  { %v1318_v50 = vpop.f32.mrf.mxu0  ;;  %1514 = vmatprep.mubr.bf16.mxu0 %v6789_v44  ;;  %v2583_v52 = vpop.f32.mrf.mxu1  ;;  %2779 = vmatprep.mubr.bf16.mxu1 %v6789_v44 }
 0x23c   :  { %v1737_v51 = vpop.permute.xlu0 %1736  ;;  %v2971_v53 = vpop.permute.xlu1 %2970 }
 0x23d   :  { %1761 = vst.msk [vmem:[#allocation2] sm:$0xff] %vm1760_vm5, %v1737_v51  ;;  %v1319_v54 = vpop.f32.mrf.mxu0  ;;  %v2584_v56 = vpop.f32.mrf.mxu1 }
 0x23e   :  { %2987 = vst.msk [vmem:[#allocation2 + $0x78] sm:$0xff] %vm1719_vm4, %v2971_v53  ;;  %3124 = vrot.lane.b32.xlu0 %v2581_v49, %s7001_s0  ;;  %1869 = vrot.lane.b32.xlu1 %v1319_v54, %s7001_s0 }
 0x23f   :  { %v1321_v57 = vpop.f32.mrf.mxu0  ;;  %v2586_v60 = vpop.f32.mrf.mxu1 }
 0x240   :  { %v2997_v59 = vpop.permute.xlu0 %2996  ;;  %v1739_v61 = vpop.permute.xlu1 %1738 }
 0x241   :  { %3020 = vst.msk [vmem:[#allocation2 + $0x40] sm:$0xff] %vm1760_vm5, %v2997_v59  ;;  %v1324_v62 = vpop.f32.mrf.mxu0  ;;  %1515 = vmatmul.mubr.bf16.gmra.mxu0 %v6787_v55  ;;  %1762 = vst.msk [vmem:[#allocation2 + $0x8] sm:$0xff] %vm1760_vm5, %v1739_v61  ;;  %v2589_v63 = vpop.f32.mrf.mxu1  ;;  %2780 = vmatmul.mubr.bf16.gmra.mxu1 %v6787_v55 }
 0x242   :  { %1871 = vrot.lane.b32.xlu0 %v1324_v62, %s7001_s0  ;;  %3126 = vrot.lane.b32.xlu1 %v2584_v56, %s7001_s0 }
 0x243   :  { %v1326_v0 = vpop.f32.mrf.mxu0  ;;  %1522 = vmatprep.mubr.bf16.mxu0 %v6792_v58  ;;  %v2591_v2 = vpop.f32.mrf.mxu1  ;;  %2787 = vmatprep.mubr.bf16.mxu1 %v6792_v58 }
 0x244   :  { %v1741_v1 = vpop.permute.xlu0 %1740  ;;  %v2999_v3 = vpop.permute.xlu1 %2998 }
 0x245   :  { %1763 = vst.msk [vmem:[#allocation2 + $0x10] sm:$0xff] %vm1760_vm5, %v1741_v1  ;;  %v1327_v4 = vpop.f32.mrf.mxu0  ;;  %3021 = vst.msk [vmem:[#allocation2 + $0x48] sm:$0xff] %vm1760_vm5, %v2999_v3  ;;  %v2592_v6 = vpop.f32.mrf.mxu1 }
 0x246   :  { %3128 = vrot.lane.b32.xlu0 %v2589_v63, %s7001_s0  ;;  %1873 = vrot.lane.b32.xlu1 %v1327_v4, %s7001_s0 }
 0x247   :  { %v1329_v7 = vpop.f32.mrf.mxu0  ;;  %v2594_v10 = vpop.f32.mrf.mxu1 }
 0x248   :  { %v3001_v9 = vpop.permute.xlu0 %3000  ;;  %v1743_v11 = vpop.permute.xlu1 %1742 }
 0x249   :  { %3022 = vst.msk [vmem:[#allocation2 + $0x50] sm:$0xff] %vm1760_vm5, %v3001_v9  ;;  %v1332_v12 = vpop.f32.mrf.mxu0  ;;  %1523 = vmatmul.mubr.bf16.gmra.mxu0 %v6790_v5  ;;  %1764 = vst.msk [vmem:[#allocation2 + $0x18] sm:$0xff] %vm1760_vm5, %v1743_v11  ;;  %v2597_v13 = vpop.f32.mrf.mxu1  ;;  %2788 = vmatmul.mubr.bf16.gmra.mxu1 %v6790_v5 }
 0x24a   :  { %1900 = vrot.lane.b32.xlu0 %v1332_v12, %s7002_s27  ;;  %3130 = vrot.lane.b32.xlu1 %v2592_v6, %s7001_s0 }
 0x24b   :  { %v1334_v14 = vpop.f32.mrf.mxu0  ;;  %1530 = vmatprep.mubr.bf16.mxu0 %v6795_v8  ;;  %v2599_v16 = vpop.f32.mrf.mxu1  ;;  %2795 = vmatprep.mubr.bf16.mxu1 %v6795_v8 }
 0x24c   :  { %v1745_v15 = vpop.permute.xlu0 %1744  ;;  %v3003_v17 = vpop.permute.xlu1 %3002 }
 0x24d   :  { %1765 = vst.msk [vmem:[#allocation2 + $0x20] sm:$0xff] %vm1760_vm5, %v1745_v15  ;;  %v1335_v18 = vpop.f32.mrf.mxu0  ;;  %3023 = vst.msk [vmem:[#allocation2 + $0x58] sm:$0xff] %vm1760_vm5, %v3003_v17  ;;  %v2600_v20 = vpop.f32.mrf.mxu1 }
 0x24e   :  { %3156 = vrot.lane.b32.xlu0 %v2597_v13, %s7002_s27  ;;  %1902 = vrot.lane.b32.xlu1 %v1335_v18, %s7002_s27 }
 0x24f   :  { %v1337_v21 = vpop.f32.mrf.mxu0  ;;  %v2602_v24 = vpop.f32.mrf.mxu1 }
 0x250   :  { %v3005_v23 = vpop.permute.xlu0 %3004  ;;  %v1747_v25 = vpop.permute.xlu1 %1746 }
 0x251   :  { %3024 = vst.msk [vmem:[#allocation2 + $0x60] sm:$0xff] %vm1760_vm5, %v3005_v23  ;;  %v1340_v26 = vpop.f32.mrf.mxu0  ;;  %1531 = vmatmul.mubr.bf16.gmra.mxu0 %v6793_v19  ;;  %1766 = vst.msk [vmem:[#allocation2 + $0x28] sm:$0xff] %vm1760_vm5, %v1747_v25  ;;  %v2605_v27 = vpop.f32.mrf.mxu1  ;;  %2796 = vmatmul.mubr.bf16.gmra.mxu1 %v6793_v19 }
 0x252   :  { %1904 = vrot.lane.b32.xlu0 %v1340_v26, %s7002_s27  ;;  %3158 = vrot.lane.b32.xlu1 %v2600_v20, %s7002_s27 }
 0x253   :  { %v1342_v28 = vpop.f32.mrf.mxu0  ;;  %1538 = vmatprep.mubr.bf16.mxu0 %v6798_v22  ;;  %v2607_v30 = vpop.f32.mrf.mxu1  ;;  %2803 = vmatprep.mubr.bf16.mxu1 %v6798_v22 }
 0x254   :  { %v1749_v29 = vpop.permute.xlu0 %1748  ;;  %v3007_v31 = vpop.permute.xlu1 %3006 }
 0x255   :  { %1767 = vst.msk [vmem:[#allocation2 + $0x30] sm:$0xff] %vm1760_vm5, %v1749_v29  ;;  %v1343_v32 = vpop.f32.mrf.mxu0  ;;  %3025 = vst.msk [vmem:[#allocation2 + $0x68] sm:$0xff] %vm1760_vm5, %v3007_v31  ;;  %v2608_v34 = vpop.f32.mrf.mxu1 }
 0x256   :  { %3160 = vrot.lane.b32.xlu0 %v2605_v27, %s7002_s27  ;;  %1906 = vrot.lane.b32.xlu1 %v1343_v32, %s7002_s27 }
 0x257   :  { %v1345_v36 = vpop.f32.mrf.mxu0  ;;  %v2610_v38 = vpop.f32.mrf.mxu1 }
 0x258   :  { %v3009_v37 = vpop.permute.xlu0 %3008  ;;  %v1751_v39 = vpop.permute.xlu1 %1750 }
 0x259   :  { %3026 = vst.msk [vmem:[#allocation2 + $0x70] sm:$0xff] %vm1760_vm5, %v3009_v37  ;;  %v1348_v40 = vpop.f32.mrf.mxu0  ;;  %1539 = vmatmul.mubr.bf16.gmra.mxu0 %v6796_v33  ;;  %1768 = vst.msk [vmem:[#allocation2 + $0x38] sm:$0xff] %vm1760_vm5, %v1751_v39  ;;  %v2613_v41 = vpop.f32.mrf.mxu1  ;;  %2804 = vmatmul.mubr.bf16.gmra.mxu1 %v6796_v33 }
 0x25a   :  { %1908 = vrot.lane.b32.xlu0 %v1348_v40, %s7002_s27  ;;  %1546 = vmatprep.mubr.bf16.mxu0 %v6801_v35 }
 0x25b   :  { %3162 = vrot.lane.b32.xlu1 %v2608_v34, %s7002_s27  ;;  %v1350_v42 = vpop.f32.mrf.mxu0  ;;  %v2615_v44 = vpop.f32.mrf.mxu1  ;;  %2811 = vmatprep.mubr.bf16.mxu1 %v6801_v35 }
 0x25c   :  { %v1778_v43 = vpop.permute.xlu0 %1777  ;;  %v3011_v45 = vpop.permute.xlu1 %3010 }
 0x25d   :  { %1802 = vst.msk [vmem:[#allocation2] sm:$0xff] %vm1801_vm6, %v1778_v43  ;;  %v1351_v46 = vpop.f32.mrf.mxu0  ;;  %v2616_v48 = vpop.f32.mrf.mxu1 }
 0x25e   :  { %3027 = vst.msk [vmem:[#allocation2 + $0x78] sm:$0xff] %vm1760_vm5, %v3011_v45  ;;  %3164 = vrot.lane.b32.xlu0 %v2613_v41, %s7002_s27 }
 0x25f   :  { %1910 = vrot.lane.b32.xlu1 %v1351_v46, %s7002_s27  ;;  %v1353_v49 = vpop.f32.mrf.mxu0  ;;  %v2618_v51 = vpop.f32.mrf.mxu1 }
 0x260   :  { %v3037_v50 = vpop.permute.xlu0 %3036  ;;  %v1780_v52 = vpop.permute.xlu1 %1779 }
 0x261   :  { %3060 = vst.msk [vmem:[#allocation2 + $0x40] sm:$0xff] %vm1801_vm6, %v3037_v50  ;;  %v1356_v53 = vpop.f32.mrf.mxu0  ;;  %1547 = vmatmul.mubr.bf16.gmra.mxu0 %v6799_v47  ;;  %1803 = vst.msk [vmem:[#allocation2 + $0x8] sm:$0xff] %vm1801_vm6, %v1780_v52  ;;  %v2621_v54 = vpop.f32.mrf.mxu1  ;;  %2812 = vmatmul.mubr.bf16.gmra.mxu1 %v6799_v47 }
 0x262   :  { %1912 = vrot.lane.b32.xlu0 %v1356_v53, %s7002_s27 }
 0x263   :  { %3166 = vrot.lane.b32.xlu1 %v2616_v48, %s7002_s27  ;;  %v1358_v55 = vpop.f32.mrf.mxu0  ;;  %v2623_v57 = vpop.f32.mrf.mxu1 }
 0x264   :  { %v1782_v56 = vpop.permute.xlu0 %1781  ;;  %v3039_v58 = vpop.permute.xlu1 %3038 }
 0x265   :  { %1804 = vst.msk [vmem:[#allocation2 + $0x10] sm:$0xff] %vm1801_vm6, %v1782_v56  ;;  %v1359_v59 = vpop.f32.mrf.mxu0  ;;  %3061 = vst.msk [vmem:[#allocation2 + $0x48] sm:$0xff] %vm1801_vm6, %v3039_v58  ;;  %v2624_v60 = vpop.f32.mrf.mxu1 }
 0x266   :  { %3168 = vrot.lane.b32.xlu0 %v2621_v54, %s7002_s27 }
 0x267   :  { %1914 = vrot.lane.b32.xlu1 %v1359_v59, %s7002_s27  ;;  %v1361_v61 = vpop.f32.mrf.mxu0  ;;  %v2626_v63 = vpop.f32.mrf.mxu1 }
 0x268   :  { %v3041_v62 = vpop.permute.xlu0 %3040  ;;  %v1784_v0 = vpop.permute.xlu1 %1783 }
 0x269   :  { %3062 = vst.msk [vmem:[#allocation2 + $0x50] sm:$0xff] %vm1801_vm6, %v3041_v62  ;;  %v1364_v1 = vpop.f32.mrf.mxu0  ;;  %1805 = vst.msk [vmem:[#allocation2 + $0x18] sm:$0xff] %vm1801_vm6, %v1784_v0  ;;  %v2629_v2 = vpop.f32.mrf.mxu1 }
 0x26a   :  { %1941 = vrot.lane.b32.xlu0 %v1364_v1, %s7003_s1 }
 0x26b   :  { %3170 = vrot.lane.b32.xlu1 %v2624_v60, %s7002_s27  ;;  %v1366_v3 = vpop.f32.mrf.mxu0  ;;  %v2631_v5 = vpop.f32.mrf.mxu1 }
 0x26c   :  { %v1786_v4 = vpop.permute.xlu0 %1785  ;;  %v3043_v6 = vpop.permute.xlu1 %3042 }
 0x26d   :  { %1806 = vst.msk [vmem:[#allocation2 + $0x20] sm:$0xff] %vm1801_vm6, %v1786_v4  ;;  %v1367_v7 = vpop.f32.mrf.mxu0  ;;  %3063 = vst.msk [vmem:[#allocation2 + $0x58] sm:$0xff] %vm1801_vm6, %v3043_v6  ;;  %v2632_v8 = vpop.f32.mrf.mxu1 }
 0x26e   :  { %3196 = vrot.lane.b32.xlu0 %v2629_v2, %s7003_s1 }
 0x26f   :  { %1943 = vrot.lane.b32.xlu1 %v1367_v7, %s7003_s1  ;;  %v1369_v9 = vpop.f32.mrf.mxu0  ;;  %v2634_v11 = vpop.f32.mrf.mxu1 }
 0x270   :  { %v3045_v10 = vpop.permute.xlu0 %3044  ;;  %v1788_v12 = vpop.permute.xlu1 %1787 }
 0x271   :  { %3064 = vst.msk [vmem:[#allocation2 + $0x60] sm:$0xff] %vm1801_vm6, %v3045_v10  ;;  %v1372_v13 = vpop.f32.mrf.mxu0  ;;  %1807 = vst.msk [vmem:[#allocation2 + $0x28] sm:$0xff] %vm1801_vm6, %v1788_v12  ;;  %v2637_v14 = vpop.f32.mrf.mxu1 }
 0x272   :  { %1945 = vrot.lane.b32.xlu0 %v1372_v13, %s7003_s1 }
 0x273   :  { %3198 = vrot.lane.b32.xlu1 %v2632_v8, %s7003_s1  ;;  %v1374_v15 = vpop.f32.mrf.mxu0  ;;  %v2639_v17 = vpop.f32.mrf.mxu1 }
 0x274   :  { %v1790_v16 = vpop.permute.xlu0 %1789  ;;  %v3047_v18 = vpop.permute.xlu1 %3046 }
 0x275   :  { %1808 = vst.msk [vmem:[#allocation2 + $0x30] sm:$0xff] %vm1801_vm6, %v1790_v16  ;;  %v1375_v19 = vpop.f32.mrf.mxu0  ;;  %3065 = vst.msk [vmem:[#allocation2 + $0x68] sm:$0xff] %vm1801_vm6, %v3047_v18  ;;  %v2640_v20 = vpop.f32.mrf.mxu1 }
 0x276   :  { %3200 = vrot.lane.b32.xlu0 %v2637_v14, %s7003_s1 }
 0x277   :  { %1947 = vrot.lane.b32.xlu1 %v1375_v19, %s7003_s1  ;;  %v1377_v21 = vpop.f32.mrf.mxu0  ;;  %v2642_v23 = vpop.f32.mrf.mxu1 }
 0x278   :  { %v3049_v22 = vpop.permute.xlu0 %3048  ;;  %v1792_v24 = vpop.permute.xlu1 %1791 }
 0x279   :  { %3066 = vst.msk [vmem:[#allocation2 + $0x70] sm:$0xff] %vm1801_vm6, %v3049_v22  ;;  %v1380_v25 = vpop.f32.mrf.mxu0  ;;  %1809 = vst.msk [vmem:[#allocation2 + $0x38] sm:$0xff] %vm1801_vm6, %v1792_v24  ;;  %v2645_v26 = vpop.f32.mrf.mxu1 }
 0x27a   :  { %1949 = vrot.lane.b32.xlu0 %v1380_v25, %s7003_s1 }
 0x27b   :  { %3202 = vrot.lane.b32.xlu1 %v2640_v20, %s7003_s1  ;;  %v1382_v27 = vpop.f32.mrf.mxu0  ;;  %v2647_v29 = vpop.f32.mrf.mxu1 }
 0x27c   :  { %v1819_v28 = vpop.permute.xlu0 %1818  ;;  %v3051_v30 = vpop.permute.xlu1 %3050 }
 0x27d   :  { %1843 = vst.msk [vmem:[#allocation2] sm:$0xff] %vm1842_vm7, %v1819_v28  ;;  %v1383_v31 = vpop.f32.mrf.mxu0  ;;  %v2648_v32 = vpop.f32.mrf.mxu1 }
 0x27e   :  { %3067 = vst.msk [vmem:[#allocation2 + $0x78] sm:$0xff] %vm1801_vm6, %v3051_v30  ;;  %3204 = vrot.lane.b32.xlu0 %v2645_v26, %s7003_s1 }
 0x27f   :  { %1951 = vrot.lane.b32.xlu1 %v1383_v31, %s7003_s1  ;;  %v1385_v33 = vpop.f32.mrf.mxu0  ;;  %v2650_v35 = vpop.f32.mrf.mxu1 }
 0x280   :  { %v3077_v34 = vpop.permute.xlu0 %3076  ;;  %v1821_v36 = vpop.permute.xlu1 %1820 }
 0x281   :  { %3100 = vst.msk [vmem:[#allocation2 + $0x40] sm:$0xff] %vm1842_vm7, %v3077_v34  ;;  %v1388_v37 = vpop.f32.mrf.mxu0  ;;  %1844 = vst.msk [vmem:[#allocation2 + $0x8] sm:$0xff] %vm1842_vm7, %v1821_v36  ;;  %v2653_v38 = vpop.f32.mrf.mxu1 }
 0x282   :  { %1953 = vrot.lane.b32.xlu0 %v1388_v37, %s7003_s1 }
 0x283   :  { %3206 = vrot.lane.b32.xlu1 %v2648_v32, %s7003_s1  ;;  %v1390_v39 = vpop.f32.mrf.mxu0  ;;  %v2655_v41 = vpop.f32.mrf.mxu1 }
 0x284   :  { %v1823_v40 = vpop.permute.xlu0 %1822  ;;  %v3079_v42 = vpop.permute.xlu1 %3078 }
 0x285   :  { %1845 = vst.msk [vmem:[#allocation2 + $0x10] sm:$0xff] %vm1842_vm7, %v1823_v40  ;;  %v1391_v43 = vpop.f32.mrf.mxu0  ;;  %3101 = vst.msk [vmem:[#allocation2 + $0x48] sm:$0xff] %vm1842_vm7, %v3079_v42  ;;  %v2656_v44 = vpop.f32.mrf.mxu1 }
 0x286   :  { %3208 = vrot.lane.b32.xlu0 %v2653_v38, %s7003_s1 }
 0x287   :  { %1955 = vrot.lane.b32.xlu1 %v1391_v43, %s7003_s1  ;;  %v1393_v45 = vpop.f32.mrf.mxu0  ;;  %v2658_v47 = vpop.f32.mrf.mxu1 }
 0x288   :  { %v3081_v46 = vpop.permute.xlu0 %3080  ;;  %v1825_v48 = vpop.permute.xlu1 %1824 }
 0x289   :  { %3102 = vst.msk [vmem:[#allocation2 + $0x50] sm:$0xff] %vm1842_vm7, %v3081_v46  ;;  %v1396_v49 = vpop.f32.mrf.mxu0  ;;  %1846 = vst.msk [vmem:[#allocation2 + $0x18] sm:$0xff] %vm1842_vm7, %v1825_v48  ;;  %v2661_v50 = vpop.f32.mrf.mxu1 }
 0x28a   :  { %1982 = vrot.lane.b32.xlu0 %v1396_v49, %s7004_s19 }
 0x28b   :  { %3210 = vrot.lane.b32.xlu1 %v2656_v44, %s7003_s1  ;;  %v1398_v51 = vpop.f32.mrf.mxu0  ;;  %v2663_v53 = vpop.f32.mrf.mxu1 }
 0x28c   :  { %v1827_v52 = vpop.permute.xlu0 %1826  ;;  %v3083_v54 = vpop.permute.xlu1 %3082 }
 0x28d   :  { %1847 = vst.msk [vmem:[#allocation2 + $0x20] sm:$0xff] %vm1842_vm7, %v1827_v52  ;;  %v1399_v55 = vpop.f32.mrf.mxu0  ;;  %3103 = vst.msk [vmem:[#allocation2 + $0x58] sm:$0xff] %vm1842_vm7, %v3083_v54  ;;  %v2664_v56 = vpop.f32.mrf.mxu1 }
 0x28e   :  { %3236 = vrot.lane.b32.xlu0 %v2661_v50, %s7004_s19 }
 0x28f   :  { %1984 = vrot.lane.b32.xlu1 %v1399_v55, %s7004_s19  ;;  %v1401_v57 = vpop.f32.mrf.mxu0  ;;  %v2666_v59 = vpop.f32.mrf.mxu1 }
 0x290   :  { %v3085_v58 = vpop.permute.xlu0 %3084  ;;  %v1829_v60 = vpop.permute.xlu1 %1828 }
 0x291   :  { %3104 = vst.msk [vmem:[#allocation2 + $0x60] sm:$0xff] %vm1842_vm7, %v3085_v58  ;;  %v1404_v61 = vpop.f32.mrf.mxu0  ;;  %1848 = vst.msk [vmem:[#allocation2 + $0x28] sm:$0xff] %vm1842_vm7, %v1829_v60  ;;  %v2669_v62 = vpop.f32.mrf.mxu1 }
 0x292   :  { %1986 = vrot.lane.b32.xlu0 %v1404_v61, %s7004_s19 }
 0x293   :  { %3238 = vrot.lane.b32.xlu1 %v2664_v56, %s7004_s19  ;;  %v1406_v63 = vpop.f32.mrf.mxu0  ;;  %v2671_v1 = vpop.f32.mrf.mxu1 }
 0x294   :  { %v1831_v0 = vpop.permute.xlu0 %1830  ;;  %v3087_v2 = vpop.permute.xlu1 %3086 }
 0x295   :  { %1849 = vst.msk [vmem:[#allocation2 + $0x30] sm:$0xff] %vm1842_vm7, %v1831_v0  ;;  %v1407_v3 = vpop.f32.mrf.mxu0  ;;  %3105 = vst.msk [vmem:[#allocation2 + $0x68] sm:$0xff] %vm1842_vm7, %v3087_v2  ;;  %v2672_v4 = vpop.f32.mrf.mxu1 }
 0x296   :  { %3240 = vrot.lane.b32.xlu0 %v2669_v62, %s7004_s19 }
 0x297   :  { %1988 = vrot.lane.b32.xlu1 %v1407_v3, %s7004_s19  ;;  %v1409_v5 = vpop.f32.mrf.mxu0  ;;  %v2674_v7 = vpop.f32.mrf.mxu1 }
 0x298   :  { %v3089_v6 = vpop.permute.xlu0 %3088  ;;  %v1833_v8 = vpop.permute.xlu1 %1832 }
 0x299   :  { %3106 = vst.msk [vmem:[#allocation2 + $0x70] sm:$0xff] %vm1842_vm7, %v3089_v6  ;;  %v1412_v9 = vpop.f32.mrf.mxu0  ;;  %1850 = vst.msk [vmem:[#allocation2 + $0x38] sm:$0xff] %vm1842_vm7, %v1833_v8  ;;  %v2677_v10 = vpop.f32.mrf.mxu1 }
 0x29a   :  { %1990 = vrot.lane.b32.xlu0 %v1412_v9, %s7004_s19 }
 0x29b   :  { %3242 = vrot.lane.b32.xlu1 %v2672_v4, %s7004_s19  ;;  %v1414_v11 = vpop.f32.mrf.mxu0  ;;  %v2679_v13 = vpop.f32.mrf.mxu1 }
 0x29c   :  { %v1860_v12 = vpop.permute.xlu0 %1859  ;;  %v3091_v14 = vpop.permute.xlu1 %3090 }
 0x29d   :  { %1884 = vst.msk [vmem:[#allocation2] sm:$0xff] %vm1883_vm8, %v1860_v12  ;;  %v1415_v15 = vpop.f32.mrf.mxu0  ;;  %v2680_v16 = vpop.f32.mrf.mxu1 }
 0x29e   :  { %3107 = vst.msk [vmem:[#allocation2 + $0x78] sm:$0xff] %vm1842_vm7, %v3091_v14  ;;  %3244 = vrot.lane.b32.xlu0 %v2677_v10, %s7004_s19 }
 0x29f   :  { %1992 = vrot.lane.b32.xlu1 %v1415_v15, %s7004_s19  ;;  %v1417_v17 = vpop.f32.mrf.mxu0  ;;  %v2682_v19 = vpop.f32.mrf.mxu1 }
 0x2a0   :  { %v3117_v18 = vpop.permute.xlu0 %3116  ;;  %v1862_v20 = vpop.permute.xlu1 %1861 }
 0x2a1   :  { %3140 = vst.msk [vmem:[#allocation2 + $0x40] sm:$0xff] %vm1883_vm8, %v3117_v18  ;;  %v1420_v21 = vpop.f32.mrf.mxu0  ;;  %1885 = vst.msk [vmem:[#allocation2 + $0x8] sm:$0xff] %vm1883_vm8, %v1862_v20  ;;  %v2685_v22 = vpop.f32.mrf.mxu1 }
 0x2a2   :  { %1994 = vrot.lane.b32.xlu0 %v1420_v21, %s7004_s19 }
 0x2a3   :  { %3246 = vrot.lane.b32.xlu1 %v2680_v16, %s7004_s19  ;;  %v1422_v23 = vpop.f32.mrf.mxu0  ;;  %v2687_v25 = vpop.f32.mrf.mxu1 }
 0x2a4   :  { %v1864_v24 = vpop.permute.xlu0 %1863  ;;  %v3119_v26 = vpop.permute.xlu1 %3118 }
 0x2a5   :  { %1886 = vst.msk [vmem:[#allocation2 + $0x10] sm:$0xff] %vm1883_vm8, %v1864_v24  ;;  %v1423_v27 = vpop.f32.mrf.mxu0  ;;  %3141 = vst.msk [vmem:[#allocation2 + $0x48] sm:$0xff] %vm1883_vm8, %v3119_v26  ;;  %v2688_v28 = vpop.f32.mrf.mxu1 }
 0x2a6   :  { %3248 = vrot.lane.b32.xlu0 %v2685_v22, %s7004_s19 }
 0x2a7   :  { %1996 = vrot.lane.b32.xlu1 %v1423_v27, %s7004_s19  ;;  %v1425_v29 = vpop.f32.mrf.mxu0  ;;  %v2690_v31 = vpop.f32.mrf.mxu1 }
 0x2a8   :  { %v3121_v30 = vpop.permute.xlu0 %3120  ;;  %v1866_v32 = vpop.permute.xlu1 %1865 }
 0x2a9   :  { %3142 = vst.msk [vmem:[#allocation2 + $0x50] sm:$0xff] %vm1883_vm8, %v3121_v30  ;;  %v1428_v33 = vpop.f32.mrf.mxu0  ;;  %1887 = vst.msk [vmem:[#allocation2 + $0x18] sm:$0xff] %vm1883_vm8, %v1866_v32  ;;  %v2693_v34 = vpop.f32.mrf.mxu1 }
 0x2aa   :  { %2023 = vrot.lane.b32.xlu0 %v1428_v33, %s7005_s20 }
 0x2ab   :  { %3250 = vrot.lane.b32.xlu1 %v2688_v28, %s7004_s19  ;;  %v1430_v35 = vpop.f32.mrf.mxu0  ;;  %v2695_v37 = vpop.f32.mrf.mxu1 }
 0x2ac   :  { %v1868_v36 = vpop.permute.xlu0 %1867  ;;  %v3123_v38 = vpop.permute.xlu1 %3122 }
 0x2ad   :  { %1888 = vst.msk [vmem:[#allocation2 + $0x20] sm:$0xff] %vm1883_vm8, %v1868_v36  ;;  %v1431_v39 = vpop.f32.mrf.mxu0  ;;  %3143 = vst.msk [vmem:[#allocation2 + $0x58] sm:$0xff] %vm1883_vm8, %v3123_v38  ;;  %v2696_v40 = vpop.f32.mrf.mxu1 }
 0x2ae   :  { %3276 = vrot.lane.b32.xlu0 %v2693_v34, %s7005_s20 }
 0x2af   :  { %2025 = vrot.lane.b32.xlu1 %v1431_v39, %s7005_s20  ;;  %v1433_v41 = vpop.f32.mrf.mxu0  ;;  %v2698_v43 = vpop.f32.mrf.mxu1 }
 0x2b0   :  { %v3125_v42 = vpop.permute.xlu0 %3124  ;;  %v1870_v44 = vpop.permute.xlu1 %1869 }
 0x2b1   :  { %3144 = vst.msk [vmem:[#allocation2 + $0x60] sm:$0xff] %vm1883_vm8, %v3125_v42  ;;  %v1436_v45 = vpop.f32.mrf.mxu0  ;;  %1889 = vst.msk [vmem:[#allocation2 + $0x28] sm:$0xff] %vm1883_vm8, %v1870_v44  ;;  %v2701_v46 = vpop.f32.mrf.mxu1 }
 0x2b2   :  { %2027 = vrot.lane.b32.xlu0 %v1436_v45, %s7005_s20 }
 0x2b3   :  { %3278 = vrot.lane.b32.xlu1 %v2696_v40, %s7005_s20  ;;  %v1438_v47 = vpop.f32.mrf.mxu0  ;;  %v2703_v49 = vpop.f32.mrf.mxu1 }
 0x2b4   :  { %v1872_v48 = vpop.permute.xlu0 %1871  ;;  %v3127_v50 = vpop.permute.xlu1 %3126 }
 0x2b5   :  { %1890 = vst.msk [vmem:[#allocation2 + $0x30] sm:$0xff] %vm1883_vm8, %v1872_v48  ;;  %v1439_v51 = vpop.f32.mrf.mxu0  ;;  %3145 = vst.msk [vmem:[#allocation2 + $0x68] sm:$0xff] %vm1883_vm8, %v3127_v50  ;;  %v2704_v52 = vpop.f32.mrf.mxu1 }
 0x2b6   :  { %3280 = vrot.lane.b32.xlu0 %v2701_v46, %s7005_s20 }
 0x2b7   :  { %2029 = vrot.lane.b32.xlu1 %v1439_v51, %s7005_s20  ;;  %v1441_v53 = vpop.f32.mrf.mxu0  ;;  %v2706_v55 = vpop.f32.mrf.mxu1 }
 0x2b8   :  { %v3129_v54 = vpop.permute.xlu0 %3128  ;;  %v1874_v56 = vpop.permute.xlu1 %1873 }
 0x2b9   :  { %3146 = vst.msk [vmem:[#allocation2 + $0x70] sm:$0xff] %vm1883_vm8, %v3129_v54  ;;  %v1444_v57 = vpop.f32.mrf.mxu0  ;;  %1891 = vst.msk [vmem:[#allocation2 + $0x38] sm:$0xff] %vm1883_vm8, %v1874_v56  ;;  %v2709_v58 = vpop.f32.mrf.mxu1 }
 0x2ba   :  { %2031 = vrot.lane.b32.xlu0 %v1444_v57, %s7005_s20 }
 0x2bb   :  { %3282 = vrot.lane.b32.xlu1 %v2704_v52, %s7005_s20  ;;  %v1446_v59 = vpop.f32.mrf.mxu0  ;;  %v2711_v61 = vpop.f32.mrf.mxu1 }
 0x2bc   :  { %v1901_v60 = vpop.permute.xlu0 %1900  ;;  %v3131_v62 = vpop.permute.xlu1 %3130 }
 0x2bd   :  { %1925 = vst.msk [vmem:[#allocation2] sm:$0xff] %vm1924_vm9, %v1901_v60  ;;  %v1447_v63 = vpop.f32.mrf.mxu0  ;;  %v2712_v0 = vpop.f32.mrf.mxu1 }
 0x2be   :  { %3147 = vst.msk [vmem:[#allocation2 + $0x78] sm:$0xff] %vm1883_vm8, %v3131_v62  ;;  %3284 = vrot.lane.b32.xlu0 %v2709_v58, %s7005_s20 }
 0x2bf   :  { %2033 = vrot.lane.b32.xlu1 %v1447_v63, %s7005_s20  ;;  %v1449_v1 = vpop.f32.mrf.mxu0  ;;  %v2714_v3 = vpop.f32.mrf.mxu1 }
 0x2c0   :  { %v3157_v2 = vpop.permute.xlu0 %3156  ;;  %v1903_v4 = vpop.permute.xlu1 %1902 }
 0x2c1   :  { %3180 = vst.msk [vmem:[#allocation2 + $0x40] sm:$0xff] %vm1924_vm9, %v3157_v2  ;;  %v1452_v5 = vpop.f32.mrf.mxu0  ;;  %1926 = vst.msk [vmem:[#allocation2 + $0x8] sm:$0xff] %vm1924_vm9, %v1903_v4  ;;  %v2717_v6 = vpop.f32.mrf.mxu1 }
 0x2c2   :  { %2035 = vrot.lane.b32.xlu0 %v1452_v5, %s7005_s20 }
 0x2c3   :  { %3286 = vrot.lane.b32.xlu1 %v2712_v0, %s7005_s20  ;;  %v1454_v7 = vpop.f32.mrf.mxu0  ;;  %v2719_v9 = vpop.f32.mrf.mxu1 }
 0x2c4   :  { %v1905_v8 = vpop.permute.xlu0 %1904  ;;  %v3159_v10 = vpop.permute.xlu1 %3158 }
 0x2c5   :  { %1927 = vst.msk [vmem:[#allocation2 + $0x10] sm:$0xff] %vm1924_vm9, %v1905_v8  ;;  %v1455_v11 = vpop.f32.mrf.mxu0  ;;  %3181 = vst.msk [vmem:[#allocation2 + $0x48] sm:$0xff] %vm1924_vm9, %v3159_v10  ;;  %v2720_v12 = vpop.f32.mrf.mxu1 }
 0x2c6   :  { %3288 = vrot.lane.b32.xlu0 %v2717_v6, %s7005_s20 }
 0x2c7   :  { %2037 = vrot.lane.b32.xlu1 %v1455_v11, %s7005_s20  ;;  %v1457_v13 = vpop.f32.mrf.mxu0  ;;  %v2722_v15 = vpop.f32.mrf.mxu1 }
 0x2c8   :  { %v3161_v14 = vpop.permute.xlu0 %3160  ;;  %v1907_v16 = vpop.permute.xlu1 %1906  ;;  %v6802_v15 = vld [vmem:[%s8735_s2 + $0x38] sm:$0xff]  }
 0x2c9   :  { %3182 = vst.msk [vmem:[#allocation2 + $0x50] sm:$0xff] %vm1924_vm9, %v3161_v14  ;;  %v1460_v17 = vpop.f32.mrf.mxu0  ;;  %1928 = vst.msk [vmem:[#allocation2 + $0x18] sm:$0xff] %vm1924_vm9, %v1907_v16  ;;  %v2725_v18 = vpop.f32.mrf.mxu1  ;;  %6423 = vmatprep.subr.bf16.mxu0 %v6802_v15 }
 0x2ca   :  { %2064 = vrot.lane.b32.xlu0 %v1460_v17, %s7006_s21  ;;  %6424 = vmatpush3.bf16.msra.mxu0 %v6802_v15 }
 0x2cb   :  { %3290 = vrot.lane.b32.xlu1 %v2720_v12, %s7005_s20  ;;  %v1462_v19 = vpop.f32.mrf.mxu0  ;;  %v2727_v21 = vpop.f32.mrf.mxu1 }
 0x2cc   :  { %v1909_v20 = vpop.permute.xlu0 %1908  ;;  %v6803_v21 = vld [vmem:[%s8735_s2 + $0x30] sm:$0xff]  }
 0x2cd   :  { %v3163_v22 = vpop.permute.xlu1 %3162  ;;  %1929 = vst.msk [vmem:[#allocation2 + $0x20] sm:$0xff] %vm1924_vm9, %v1909_v20  ;;  %v1463_v23 = vpop.f32.mrf.mxu0  ;;  %6425 = vmatprep.subr.bf16.mxu0 %v6803_v21 }
 0x2ce   :  { %3183 = vst.msk [vmem:[#allocation2 + $0x58] sm:$0xff] %vm1924_vm9, %v3163_v22  ;;  %3316 = vrot.lane.b32.xlu0 %v2725_v18, %s7006_s21  ;;  %v2728_v24 = vpop.f32.mrf.mxu1  ;;  %6426 = vmatpush3.bf16.msra.mxu0 %v6803_v21 }
 0x2cf   :  { %2066 = vrot.lane.b32.xlu1 %v1463_v23, %s7006_s21  ;;  %v1465_v25 = vpop.f32.mrf.mxu0 }
 0x2d0   :  { %v3165_v26 = vpop.permute.xlu0 %3164  ;;  %v2730_v27 = vpop.f32.mrf.mxu1 }
 0x2d1   :  { %3184 = vst.msk [vmem:[#allocation2 + $0x60] sm:$0xff] %vm1924_vm9, %v3165_v26  ;;  %v1911_v28 = vpop.permute.xlu1 %1910  ;;  %v1468_v29 = vpop.f32.mrf.mxu0 }
 0x2d2   :  { %1930 = vst.msk [vmem:[#allocation2 + $0x28] sm:$0xff] %vm1924_vm9, %v1911_v28  ;;  %2068 = vrot.lane.b32.xlu0 %v1468_v29, %s7006_s21  ;;  %v2733_v30 = vpop.f32.mrf.mxu1  ;;  %v6804_v28 = vld [vmem:[%s8735_s2 + $0x28] sm:$0xff]  }
 0x2d3   :  { %3318 = vrot.lane.b32.xlu1 %v2728_v24, %s7006_s21  ;;  %v1470_v31 = vpop.f32.mrf.mxu0  ;;  %6427 = vmatprep.subr.bf16.mxu0 %v6804_v28 }
 0x2d4   :  { %v1913_v32 = vpop.permute.xlu0 %1912  ;;  %v2735_v33 = vpop.f32.mrf.mxu1  ;;  %6428 = vmatpush3.bf16.msra.mxu0 %v6804_v28 }
 0x2d5   :  { %v3167_v34 = vpop.permute.xlu1 %3166  ;;  %1931 = vst.msk [vmem:[#allocation2 + $0x30] sm:$0xff] %vm1924_vm9, %v1913_v32  ;;  %v1471_v35 = vpop.f32.mrf.mxu0 }
 0x2d6   :  { %3185 = vst.msk [vmem:[#allocation2 + $0x68] sm:$0xff] %vm1924_vm9, %v3167_v34  ;;  %3320 = vrot.lane.b32.xlu0 %v2733_v30, %s7006_s21  ;;  %v2736_v36 = vpop.f32.mrf.mxu1 }
 0x2d7   :  { %2070 = vrot.lane.b32.xlu1 %v1471_v35, %s7006_s21  ;;  %v1473_v37 = vpop.f32.mrf.mxu0  ;;  %v6805_v35 = vld [vmem:[%s8735_s2 + $0x20] sm:$0xff]  }
 0x2d8   :  { %v3169_v38 = vpop.permute.xlu0 %3168  ;;  %v2738_v39 = vpop.f32.mrf.mxu1  ;;  %6429 = vmatprep.subr.bf16.mxu0 %v6805_v35 }
 0x2d9   :  { %3186 = vst.msk [vmem:[#allocation2 + $0x70] sm:$0xff] %vm1924_vm9, %v3169_v38  ;;  %v1915_v40 = vpop.permute.xlu1 %1914  ;;  %v1476_v41 = vpop.f32.mrf.mxu0  ;;  %6430 = vmatpush3.bf16.msra.mxu0 %v6805_v35 }
 0x2da   :  { %1932 = vst.msk [vmem:[#allocation2 + $0x38] sm:$0xff] %vm1924_vm9, %v1915_v40  ;;  %2072 = vrot.lane.b32.xlu0 %v1476_v41, %s7006_s21  ;;  %v2741_v42 = vpop.f32.mrf.mxu1 }
 0x2db   :  { %3322 = vrot.lane.b32.xlu1 %v2736_v36, %s7006_s21  ;;  %v1478_v43 = vpop.f32.mrf.mxu0 }
 0x2dc   :  { %v1942_v44 = vpop.permute.xlu0 %1941  ;;  %v2743_v45 = vpop.f32.mrf.mxu1 }
 0x2dd   :  { %v3171_v46 = vpop.permute.xlu1 %3170  ;;  %1966 = vst.msk [vmem:[#allocation2] sm:$0xff] %vm1965_vm10, %v1942_v44  ;;  %v1479_v47 = vpop.f32.mrf.mxu0 }
 0x2de   :  { %3187 = vst.msk [vmem:[#allocation2 + $0x78] sm:$0xff] %vm1924_vm9, %v3171_v46  ;;  %3324 = vrot.lane.b32.xlu0 %v2741_v42, %s7006_s21  ;;  %v2744_v48 = vpop.f32.mrf.mxu1  ;;  %v6806_v42 = vld [vmem:[%s8735_s2 + $0x18] sm:$0xff]  }
 0x2df   :  { %2074 = vrot.lane.b32.xlu1 %v1479_v47, %s7006_s21  ;;  %v1481_v49 = vpop.f32.mrf.mxu0  ;;  %6431 = vmatprep.subr.bf16.mxu0 %v6806_v42 }
 0x2e0   :  { %v3197_v50 = vpop.permute.xlu0 %3196  ;;  %v2746_v51 = vpop.f32.mrf.mxu1  ;;  %6432 = vmatpush3.bf16.msra.mxu0 %v6806_v42  ;;  %v6807_v49 = vld [vmem:[%s8735_s2 + $0x10] sm:$0xff]  }
 0x2e1   :  { %3220 = vst.msk [vmem:[#allocation2 + $0x40] sm:$0xff] %vm1965_vm10, %v3197_v50  ;;  %v1944_v52 = vpop.permute.xlu1 %1943  ;;  %v1484_v53 = vpop.f32.mrf.mxu0  ;;  %6433 = vmatprep.subr.bf16.mxu0 %v6807_v49 }
 0x2e2   :  { %1967 = vst.msk [vmem:[#allocation2 + $0x8] sm:$0xff] %vm1965_vm10, %v1944_v52  ;;  %2076 = vrot.lane.b32.xlu0 %v1484_v53, %s7006_s21  ;;  %v2749_v54 = vpop.f32.mrf.mxu1 }
 0x2e3   :  { %3326 = vrot.lane.b32.xlu1 %v2744_v48, %s7006_s21  ;;  %v1486_v55 = vpop.f32.mrf.mxu0 }
 0x2e4   :  { %v1946_v56 = vpop.permute.xlu0 %1945  ;;  %v2751_v57 = vpop.f32.mrf.mxu1  ;;  %6434 = vmatpush3.bf16.msra.mxu0 %v6807_v49 }
 0x2e5   :  { %v3199_v58 = vpop.permute.xlu1 %3198  ;;  %1968 = vst.msk [vmem:[#allocation2 + $0x10] sm:$0xff] %vm1965_vm10, %v1946_v56  ;;  %v1487_v59 = vpop.f32.mrf.mxu0  ;;  %v6808_v56 = vld [vmem:[%s8735_s2 + $0x8] sm:$0xff]  }
 0x2e6   :  { %3221 = vst.msk [vmem:[#allocation2 + $0x48] sm:$0xff] %vm1965_vm10, %v3199_v58  ;;  %3328 = vrot.lane.b32.xlu0 %v2749_v54, %s7006_s21  ;;  %v2752_v60 = vpop.f32.mrf.mxu1  ;;  %6435 = vmatprep.subr.bf16.mxu0 %v6808_v56 }
 0x2e7   :  { %2078 = vrot.lane.b32.xlu1 %v1487_v59, %s7006_s21  ;;  %v1489_v61 = vpop.f32.mrf.mxu0 }
 0x2e8   :  { %v3201_v62 = vpop.permute.xlu0 %3200  ;;  %v2754_v63 = vpop.f32.mrf.mxu1  ;;  %6436 = vmatpush3.bf16.msra.mxu0 %v6808_v56 }
 0x2e9   :  { %3222 = vst.msk [vmem:[#allocation2 + $0x50] sm:$0xff] %vm1965_vm10, %v3201_v62  ;;  %v1948_v0 = vpop.permute.xlu1 %1947  ;;  %v1492_v1 = vpop.f32.mrf.mxu0  ;;  %v6809_v63 = vld [vmem:[%s8735_s2] sm:$0xff]  }
 0x2ea   :  { %1969 = vst.msk [vmem:[#allocation2 + $0x18] sm:$0xff] %vm1965_vm10, %v1948_v0  ;;  %2105 = vrot.lane.b32.xlu0 %v1492_v1, %s7007_s22  ;;  %v2757_v2 = vpop.f32.mrf.mxu1  ;;  %6437 = vmatprep.subr.bf16.mxu0 %v6809_v63 }
 0x2eb   :  { %3330 = vrot.lane.b32.xlu1 %v2752_v60, %s7006_s21  ;;  %v1494_v3 = vpop.f32.mrf.mxu0 }
 0x2ec   :  { %v1950_v4 = vpop.permute.xlu0 %1949  ;;  %v2759_v5 = vpop.f32.mrf.mxu1  ;;  %6438 = vmatpush3.bf16.msra.mxu0 %v6809_v63 }
 0x2ed   :  { %v3203_v6 = vpop.permute.xlu1 %3202  ;;  %1970 = vst.msk [vmem:[#allocation2 + $0x20] sm:$0xff] %vm1965_vm10, %v1950_v4  ;;  %v1495_v7 = vpop.f32.mrf.mxu0 }
 0x2ee   :  { %3223 = vst.msk [vmem:[#allocation2 + $0x58] sm:$0xff] %vm1965_vm10, %v3203_v6  ;;  %3356 = vrot.lane.b32.xlu0 %v2757_v2, %s7007_s22  ;;  %v2760_v8 = vpop.f32.mrf.mxu1 }
 0x2ef   :  { %2107 = vrot.lane.b32.xlu1 %v1495_v7, %s7007_s22  ;;  %v1497_v9 = vpop.f32.mrf.mxu0 }
 0x2f0   :  { %v3205_v10 = vpop.permute.xlu0 %3204  ;;  %v2762_v11 = vpop.f32.mrf.mxu1 }
 0x2f1   :  { %3224 = vst.msk [vmem:[#allocation2 + $0x60] sm:$0xff] %vm1965_vm10, %v3205_v10  ;;  %v1952_v12 = vpop.permute.xlu1 %1951  ;;  %v1500_v13 = vpop.f32.mrf.mxu0 }
 0x2f2   :  { %1971 = vst.msk [vmem:[#allocation2 + $0x28] sm:$0xff] %vm1965_vm10, %v1952_v12  ;;  %2109 = vrot.lane.b32.xlu0 %v1500_v13, %s7007_s22  ;;  %v2765_v14 = vpop.f32.mrf.mxu1 }
 0x2f3   :  { %3358 = vrot.lane.b32.xlu1 %v2760_v8, %s7007_s22  ;;  %v1502_v16 = vpop.f32.mrf.mxu0 }
 0x2f4   :  { %v1954_v17 = vpop.permute.xlu0 %1953  ;;  %v2767_v18 = vpop.f32.mrf.mxu1 }
 0x2f5   :  { %v3207_v19 = vpop.permute.xlu1 %3206  ;;  %1972 = vst.msk [vmem:[#allocation2 + $0x30] sm:$0xff] %vm1965_vm10, %v1954_v17  ;;  %v1503_v20 = vpop.f32.mrf.mxu0 }
 0x2f6   :  { %3225 = vst.msk [vmem:[#allocation2 + $0x68] sm:$0xff] %vm1965_vm10, %v3207_v19  ;;  %3360 = vrot.lane.b32.xlu0 %v2765_v14, %s7007_s22  ;;  %v2768_v22 = vpop.f32.mrf.mxu1 }
 0x2f7   :  { %2111 = vrot.lane.b32.xlu1 %v1503_v20, %s7007_s22  ;;  %v1505_v23 = vpop.f32.mrf.mxu0 }
 0x2f8   :  { %v3209_v24 = vpop.permute.xlu0 %3208  ;;  %v2770_v25 = vpop.f32.mrf.mxu1 }
 0x2f9   :  { %3226 = vst.msk [vmem:[#allocation2 + $0x70] sm:$0xff] %vm1965_vm10, %v3209_v24  ;;  %v1956_v26 = vpop.permute.xlu1 %1955  ;;  %v1508_v27 = vpop.f32.mrf.mxu0 }
 0x2fa   :  { %1973 = vst.msk [vmem:[#allocation2 + $0x38] sm:$0xff] %vm1965_vm10, %v1956_v26  ;;  %2113 = vrot.lane.b32.xlu0 %v1508_v27, %s7007_s22  ;;  %v8017_v29 = vpop.f32.mrf.mxu1 }
 0x2fb   :  { %3362 = vrot.lane.b32.xlu1 %v2768_v22, %s7007_s22  ;;  %v1510_v30 = vpop.f32.mrf.mxu0 }
 0x2fc   :  { %v1983_v31 = vpop.permute.xlu0 %1982  ;;  %v2775_v32 = vpop.f32.mrf.mxu1 }
 0x2fd   :  { %v3211_v33 = vpop.permute.xlu1 %3210  ;;  %2007 = vst.msk [vmem:[#allocation2] sm:$0xff] %vm2006_vm11, %v1983_v31  ;;  %v1511_v34 = vpop.f32.mrf.mxu0 }
 0x2fe   :  { %3227 = vst.msk [vmem:[#allocation2 + $0x78] sm:$0xff] %vm1965_vm10, %v3211_v33  ;;  %v8025_v36 = vpop.f32.mrf.mxu1 }
 0x2ff   :  { %2115 = vrot.lane.b32.xlu1 %v1511_v34, %s7007_s22  ;;  %v1513_v37 = vpop.f32.mrf.mxu0 }
 0x300   :  { %v3237_v38 = vpop.permute.xlu0 %3236  ;;  %v2778_v39 = vpop.f32.mrf.mxu1 }
 0x301   :  { %3260 = vst.msk [vmem:[#allocation2 + $0x40] sm:$0xff] %vm2006_vm11, %v3237_v38  ;;  %v1985_v40 = vpop.permute.xlu1 %1984  ;;  %v1516_v41 = vpop.f32.mrf.mxu0 }
 0x302   :  { %2008 = vst.msk [vmem:[#allocation2 + $0x8] sm:$0xff] %vm2006_vm11, %v1985_v40  ;;  %2117 = vrot.lane.b32.xlu0 %v1516_v41, %s7007_s22  ;;  %v8034_v43 = vpop.f32.mrf.mxu1 }
 0x303   :  { %v1518_v44 = vpop.f32.mrf.mxu0 }
 0x304   :  { %v1987_v45 = vpop.permute.xlu0 %1986  ;;  %v2783_v46 = vpop.f32.mrf.mxu1 }
 0x305   :  { %v3239_v47 = vpop.permute.xlu1 %3238  ;;  %2009 = vst.msk [vmem:[#allocation2 + $0x10] sm:$0xff] %vm2006_vm11, %v1987_v45  ;;  %v1519_v48 = vpop.f32.mrf.mxu0 }
 0x306   :  { %3261 = vst.msk [vmem:[#allocation2 + $0x48] sm:$0xff] %vm2006_vm11, %v3239_v47  ;;  %2119 = vrot.lane.b32.xlu1 %v1519_v48, %s7007_s22  ;;  %v8042_v50 = vpop.f32.mrf.mxu1 }
 0x307   :  { %v1521_v51 = vpop.f32.mrf.mxu0 }
 0x308   :  { %v3241_v52 = vpop.permute.xlu0 %3240  ;;  %v2786_v53 = vpop.f32.mrf.mxu1 }
 0x309   :  { %3262 = vst.msk [vmem:[#allocation2 + $0x50] sm:$0xff] %vm2006_vm11, %v3241_v52  ;;  %v1989_v54 = vpop.permute.xlu1 %1988  ;;  %v1524_v55 = vpop.f32.mrf.mxu0 }
 0x30a   :  { %2010 = vst.msk [vmem:[#allocation2 + $0x18] sm:$0xff] %vm2006_vm11, %v1989_v54  ;;  %2146 = vrot.lane.b32.xlu0 %v1524_v55, %s7008_s12  ;;  %v2789_v57 = vpop.f32.mrf.mxu1 }
 0x30b   :  { %v1526_v58 = vpop.f32.mrf.mxu0 }
 0x30c   :  { %v1991_v59 = vpop.permute.xlu0 %1990  ;;  %v2791_v60 = vpop.f32.mrf.mxu1 }
 0x30d   :  { %v3243_v61 = vpop.permute.xlu1 %3242  ;;  %2011 = vst.msk [vmem:[#allocation2 + $0x20] sm:$0xff] %vm2006_vm11, %v1991_v59  ;;  %v1527_v62 = vpop.f32.mrf.mxu0 }
 0x30e   :  { %3263 = vst.msk [vmem:[#allocation2 + $0x58] sm:$0xff] %vm2006_vm11, %v3243_v61  ;;  %3396 = vrot.lane.b32.xlu0 %v2789_v57, %s7008_s12  ;;  %2148 = vrot.lane.b32.xlu1 %v1527_v62, %s7008_s12  ;;  %v2792_v0 = vpop.f32.mrf.mxu1 }
 0x30f   :  { %v1529_v1 = vpop.f32.mrf.mxu0 }
 0x310   :  { %v3245_v2 = vpop.permute.xlu0 %3244  ;;  %v2794_v3 = vpop.f32.mrf.mxu1 }
 0x311   :  { %3264 = vst.msk [vmem:[#allocation2 + $0x60] sm:$0xff] %vm2006_vm11, %v3245_v2  ;;  %v1993_v4 = vpop.permute.xlu1 %1992  ;;  %v1532_v5 = vpop.f32.mrf.mxu0 }
 0x312   :  { %2012 = vst.msk [vmem:[#allocation2 + $0x28] sm:$0xff] %vm2006_vm11, %v1993_v4  ;;  %3398 = vrot.lane.b32.xlu1 %v2792_v0, %s7008_s12  ;;  %2150 = vrot.lane.b32.xlu0 %v1532_v5, %s7008_s12  ;;  %v2797_v6 = vpop.f32.mrf.mxu1 }
 0x313   :  { %v1534_v7 = vpop.f32.mrf.mxu0 }
 0x314   :  { %v1995_v8 = vpop.permute.xlu0 %1994  ;;  %v2799_v9 = vpop.f32.mrf.mxu1 }
 0x315   :  { %v3247_v10 = vpop.permute.xlu1 %3246  ;;  %2013 = vst.msk [vmem:[#allocation2 + $0x30] sm:$0xff] %vm2006_vm11, %v1995_v8  ;;  %v1535_v11 = vpop.f32.mrf.mxu0 }
 0x316   :  { %3265 = vst.msk [vmem:[#allocation2 + $0x68] sm:$0xff] %vm2006_vm11, %v3247_v10  ;;  %3400 = vrot.lane.b32.xlu0 %v2797_v6, %s7008_s12  ;;  %2152 = vrot.lane.b32.xlu1 %v1535_v11, %s7008_s12  ;;  %v2800_v12 = vpop.f32.mrf.mxu1 }
 0x317   :  { %v1537_v13 = vpop.f32.mrf.mxu0 }
 0x318   :  { %v3249_v14 = vpop.permute.xlu0 %3248  ;;  %v2802_v15 = vpop.f32.mrf.mxu1 }
 0x319   :  { %3266 = vst.msk [vmem:[#allocation2 + $0x70] sm:$0xff] %vm2006_vm11, %v3249_v14  ;;  %v1997_v16 = vpop.permute.xlu1 %1996  ;;  %v1540_v17 = vpop.f32.mrf.mxu0 }
 0x31a   :  { %2014 = vst.msk [vmem:[#allocation2 + $0x38] sm:$0xff] %vm2006_vm11, %v1997_v16  ;;  %3402 = vrot.lane.b32.xlu1 %v2800_v12, %s7008_s12  ;;  %2154 = vrot.lane.b32.xlu0 %v1540_v17, %s7008_s12  ;;  %v2805_v19 = vpop.f32.mrf.mxu1 }
 0x31b   :  { %v1542_v18 = vpop.f32.mrf.mxu0 }
 0x31c   :  { %v2024_v20 = vpop.permute.xlu0 %2023  ;;  %v2807_v23 = vpop.f32.mrf.mxu1 }
 0x31d   :  { %v3251_v21 = vpop.permute.xlu1 %3250  ;;  %2048 = vst.msk [vmem:[#allocation2] sm:$0xff] %vm2047_vm12, %v2024_v20  ;;  %v1543_v22 = vpop.f32.mrf.mxu0 }
 0x31e   :  { %3267 = vst.msk [vmem:[#allocation2 + $0x78] sm:$0xff] %vm2006_vm11, %v3251_v21  ;;  %2156 = vrot.lane.b32.xlu1 %v1543_v22, %s7008_s12  ;;  %v2808_v26 = vpop.f32.mrf.mxu1 }
 0x31f   :  { %v1545_v24 = vpop.f32.mrf.mxu0 }
 0x320   :  { %v3277_v25 = vpop.permute.xlu0 %3276  ;;  %v2810_v30 = vpop.f32.mrf.mxu1 }
 0x321   :  { %3300 = vst.msk [vmem:[#allocation2 + $0x40] sm:$0xff] %vm2047_vm12, %v3277_v25  ;;  %v2026_v27 = vpop.permute.xlu1 %2025  ;;  %v1548_v28 = vpop.f32.mrf.mxu0 }
 0x322   :  { %2049 = vst.msk [vmem:[#allocation2 + $0x8] sm:$0xff] %vm2047_vm12, %v2026_v27  ;;  %2158 = vrot.lane.b32.xlu0 %v1548_v28, %s7008_s12  ;;  %v2813_v33 = vpop.f32.mrf.mxu1 }
 0x323   :  { %v1550_v31 = vpop.f32.mrf.mxu0 }
 0x324   :  { %v2028_v32 = vpop.permute.xlu0 %2027  ;;  %v2815_v37 = vpop.f32.mrf.mxu1 }
 0x325   :  { %v3279_v34 = vpop.permute.xlu1 %3278  ;;  %2050 = vst.msk [vmem:[#allocation2 + $0x10] sm:$0xff] %vm2047_vm12, %v2028_v32  ;;  %v1551_v35 = vpop.f32.mrf.mxu0 }
 0x326   :  { %3301 = vst.msk [vmem:[#allocation2 + $0x48] sm:$0xff] %vm2047_vm12, %v3279_v34  ;;  %3364 = vrot.lane.b32.xlu0 %v8017_v29, %s7007_s22  ;;  %2160 = vrot.lane.b32.xlu1 %v1551_v35, %s7008_s12  ;;  %v2816_v40 = vpop.f32.mrf.mxu1 }
 0x327   :  { %v1553_v38 = vpop.f32.mrf.mxu0 }
 0x328   :  { %v3281_v39 = vpop.permute.xlu0 %3280  ;;  %v2818_v42 = vpop.f32.mrf.mxu1 }
 0x329   :  { %3302 = vst.msk [vmem:[#allocation2 + $0x50] sm:$0xff] %vm2047_vm12, %v3281_v39  ;;  %v2030_v41 = vpop.permute.xlu1 %2029 }
 0x32a   :  { %2051 = vst.msk [vmem:[#allocation2 + $0x18] sm:$0xff] %vm2047_vm12, %v2030_v41  ;;  %3368 = vrot.lane.b32.xlu0 %v8034_v43, %s7007_s22  ;;  %3366 = vrot.lane.b32.xlu1 %v8025_v36, %s7007_s22 }
 0x32c   :  { %v2032_v44 = vpop.permute.xlu0 %2031 }
 0x32d   :  { %v3283_v29 = vpop.permute.xlu1 %3282  ;;  %2052 = vst.msk [vmem:[#allocation2 + $0x20] sm:$0xff] %vm2047_vm12, %v2032_v44 }
 0x32e   :  { %3303 = vst.msk [vmem:[#allocation2 + $0x58] sm:$0xff] %vm2047_vm12, %v3283_v29  ;;  %3370 = vrot.lane.b32.xlu1 %v8042_v50, %s7007_s22  ;;  %3404 = vrot.lane.b32.xlu0 %v2805_v19, %s7008_s12 }
 0x330   :  { %v3285_v45 = vpop.permute.xlu0 %3284 }
 0x331   :  { %3304 = vst.msk [vmem:[#allocation2 + $0x60] sm:$0xff] %vm2047_vm12, %v3285_v45  ;;  %v2034_v46 = vpop.permute.xlu1 %2033 }
 0x332   :  { %2053 = vst.msk [vmem:[#allocation2 + $0x28] sm:$0xff] %vm2047_vm12, %v2034_v46  ;;  %3406 = vrot.lane.b32.xlu1 %v2808_v26, %s7008_s12  ;;  %3408 = vrot.lane.b32.xlu0 %v2813_v33, %s7008_s12 }
 0x334   :  { %v2036_v36 = vpop.permute.xlu0 %2035 }
 0x335   :  { %v3287_v43 = vpop.permute.xlu1 %3286  ;;  %2054 = vst.msk [vmem:[#allocation2 + $0x30] sm:$0xff] %vm2047_vm12, %v2036_v36 }
 0x336   :  { %3305 = vst.msk [vmem:[#allocation2 + $0x68] sm:$0xff] %vm2047_vm12, %v3287_v43  ;;  %3410 = vrot.lane.b32.xlu1 %v2816_v40, %s7008_s12 }
 0x338   :  { %v3289_v47 = vpop.permute.xlu0 %3288 }
 0x339   :  { %3306 = vst.msk [vmem:[#allocation2 + $0x70] sm:$0xff] %vm2047_vm12, %v3289_v47  ;;  %v2038_v48 = vpop.permute.xlu1 %2037 }
 0x33a   :  { %2055 = vst.msk [vmem:[#allocation2 + $0x38] sm:$0xff] %vm2047_vm12, %v2038_v48 }
 0x33c   :  { %v2065_v49 = vpop.permute.xlu0 %2064 }
 0x33d   :  { %v3291_v50 = vpop.permute.xlu1 %3290  ;;  %2089 = vst.msk [vmem:[#allocation2] sm:$0xff] %vm2088_vm13, %v2065_v49 }
 0x33e   :  { %3307 = vst.msk [vmem:[#allocation2 + $0x78] sm:$0xff] %vm2047_vm12, %v3291_v50 }
 0x340   :  { %v3317_v51 = vpop.permute.xlu0 %3316 }
 0x341   :  { %3340 = vst.msk [vmem:[#allocation2 + $0x40] sm:$0xff] %vm2088_vm13, %v3317_v51  ;;  %v2067_v52 = vpop.permute.xlu1 %2066 }
 0x342   :  { %2090 = vst.msk [vmem:[#allocation2 + $0x8] sm:$0xff] %vm2088_vm13, %v2067_v52 }
 0x344   :  { %v2069_v53 = vpop.permute.xlu0 %2068 }
 0x345   :  { %v3319_v54 = vpop.permute.xlu1 %3318  ;;  %2091 = vst.msk [vmem:[#allocation2 + $0x10] sm:$0xff] %vm2088_vm13, %v2069_v53 }
 0x346   :  { %3341 = vst.msk [vmem:[#allocation2 + $0x48] sm:$0xff] %vm2088_vm13, %v3319_v54 }
 0x348   :  { %v3321_v55 = vpop.permute.xlu0 %3320 }
 0x349   :  { %3342 = vst.msk [vmem:[#allocation2 + $0x50] sm:$0xff] %vm2088_vm13, %v3321_v55  ;;  %v2071_v56 = vpop.permute.xlu1 %2070 }
 0x34a   :  { %2092 = vst.msk [vmem:[#allocation2 + $0x18] sm:$0xff] %vm2088_vm13, %v2071_v56 }
 0x34c   :  { %v2073_v57 = vpop.permute.xlu0 %2072 }
 0x34d   :  { %v3323_v58 = vpop.permute.xlu1 %3322  ;;  %2093 = vst.msk [vmem:[#allocation2 + $0x20] sm:$0xff] %vm2088_vm13, %v2073_v57 }
 0x34e   :  { %3343 = vst.msk [vmem:[#allocation2 + $0x58] sm:$0xff] %vm2088_vm13, %v3323_v58  ;;  %v6810_v58 = vld [vmem:[%s8737_s4] sm:$0xff]  }
 0x34f   :  { %6463 = vmatprep.mubr.msk.bf16.mxu1 %vm3788_vm1, %v6810_v58 }
 0x350   :  { %v3325_v59 = vpop.permute.xlu0 %3324 }
 0x351   :  { %3344 = vst.msk [vmem:[#allocation2 + $0x60] sm:$0xff] %vm2088_vm13, %v3325_v59  ;;  %v2075_v60 = vpop.permute.xlu1 %2074 }
 0x352   :  { %2094 = vst.msk [vmem:[#allocation2 + $0x28] sm:$0xff] %vm2088_vm13, %v2075_v60 }
 0x354   :  { %v2077_v61 = vpop.permute.xlu0 %2076 }
 0x355   :  { %v3327_v62 = vpop.permute.xlu1 %3326  ;;  %2095 = vst.msk [vmem:[#allocation2 + $0x30] sm:$0xff] %vm2088_vm13, %v2077_v61 }
 0x356   :  { %3345 = vst.msk [vmem:[#allocation2 + $0x68] sm:$0xff] %vm2088_vm13, %v3327_v62 }
 0x358   :  { %v3329_v63 = vpop.permute.xlu0 %3328 }
 0x359   :  { %3346 = vst.msk [vmem:[#allocation2 + $0x70] sm:$0xff] %vm2088_vm13, %v3329_v63  ;;  %v2079_v0 = vpop.permute.xlu1 %2078  ;;  %v8157_v63 = vld [vmem:[%s8736_s3] ss:$0 sm:$0xff] }
 0x35a   :  { %2096 = vst.msk [vmem:[#allocation2 + $0x38] sm:$0xff] %vm2088_vm13, %v2079_v0 }
 0x35c   :  { %v2106_v1 = vpop.permute.xlu0 %2105 }
 0x35d   :  { %v3331_v2 = vpop.permute.xlu1 %3330  ;;  %2130 = vst.msk [vmem:[#allocation2] sm:$0xff] %vm2129_vm14, %v2106_v1 }
 0x35e   :  { %3347 = vst.msk [vmem:[#allocation2 + $0x78] sm:$0xff] %vm2088_vm13, %v3331_v2 }
 0x360   :  { %v3357_v3 = vpop.permute.xlu0 %3356 }
 0x361   :  { %3380 = vst.msk [vmem:[#allocation2 + $0x40] sm:$0xff] %vm2129_vm14, %v3357_v3  ;;  %v2108_v4 = vpop.permute.xlu1 %2107 }
 0x362   :  { %2131 = vst.msk [vmem:[#allocation2 + $0x8] sm:$0xff] %vm2129_vm14, %v2108_v4 }
 0x364   :  { %v2110_v5 = vpop.permute.xlu0 %2109 }
 0x365   :  { %v3359_v6 = vpop.permute.xlu1 %3358  ;;  %2132 = vst.msk [vmem:[#allocation2 + $0x10] sm:$0xff] %vm2129_vm14, %v2110_v5 }
 0x366   :  { %3381 = vst.msk [vmem:[#allocation2 + $0x48] sm:$0xff] %vm2129_vm14, %v3359_v6 }
 0x368   :  { %v3361_v7 = vpop.permute.xlu0 %3360 }
 0x369   :  { %3382 = vst.msk [vmem:[#allocation2 + $0x50] sm:$0xff] %vm2129_vm14, %v3361_v7  ;;  %v2112_v8 = vpop.permute.xlu1 %2111 }
 0x36a   :  { %2133 = vst.msk [vmem:[#allocation2 + $0x18] sm:$0xff] %vm2129_vm14, %v2112_v8 }
 0x36c   :  { %v2114_v9 = vpop.permute.xlu0 %2113 }
 0x36d   :  { %v3363_v10 = vpop.permute.xlu1 %3362  ;;  %2134 = vst.msk [vmem:[#allocation2 + $0x20] sm:$0xff] %vm2129_vm14, %v2114_v9 }
 0x36e   :  { %3383 = vst.msk [vmem:[#allocation2 + $0x58] sm:$0xff] %vm2129_vm14, %v3363_v10 }
 0x371   :  { %v2116_v11 = vpop.permute.xlu1 %2115 }
 0x372   :  { %2135 = vst.msk [vmem:[#allocation2 + $0x28] sm:$0xff] %vm2129_vm14, %v2116_v11 }
 0x374   :  { %v2118_v12 = vpop.permute.xlu0 %2117 }
 0x375   :  { %2136 = vst.msk [vmem:[#allocation2 + $0x30] sm:$0xff] %vm2129_vm14, %v2118_v12 }
 0x378   :  { %v2120_v13 = vpop.permute.xlu1 %2119 }
 0x379   :  { %2137 = vst.msk [vmem:[#allocation2 + $0x38] sm:$0xff] %vm2129_vm14, %v2120_v13 }
 0x37c   :  { %v2147_v14 = vpop.permute.xlu0 %2146 }
 0x37d   :  { %2171 = vst.msk [vmem:[#allocation2] sm:$0xff] %vm2170_vm15, %v2147_v14 }
 0x380   :  { %v3397_v15 = vpop.permute.xlu0 %3396  ;;  %v2149_v16 = vpop.permute.xlu1 %2148 }
 0x381   :  { %3420 = vst.msk [vmem:[#allocation2 + $0x40] sm:$0xff] %vm2170_vm15, %v3397_v15  ;;  %2172 = vst.msk [vmem:[#allocation2 + $0x8] sm:$0xff] %vm2170_vm15, %v2149_v16 }
 0x384   :  { %v3399_v17 = vpop.permute.xlu1 %3398  ;;  %v2151_v18 = vpop.permute.xlu0 %2150  ;;  %v3428_v21 = vld [vmem:[#allocation2] sm:$0xff] }
 0x385   :  { %3421 = vst.msk [vmem:[#allocation2 + $0x48] sm:$0xff] %vm2170_vm15, %v3399_v17  ;;  %2173 = vst.msk [vmem:[#allocation2 + $0x10] sm:$0xff] %vm2170_vm15, %v2151_v18 }
 0x388   :  { %v3401_v19 = vpop.permute.xlu0 %3400  ;;  %v2153_v20 = vpop.permute.xlu1 %2152  ;;  %v3429_v22 = vld [vmem:[#allocation2 + $0x8] sm:$0xff]  ;;  %v3436_v40 = vld [vmem:[#allocation2 + $0x40] sm:$0xff] }
 0x389   :  { %3422 = vst.msk [vmem:[#allocation2 + $0x50] sm:$0xff] %vm2170_vm15, %v3401_v19  ;;  %2174 = vst.msk [vmem:[#allocation2 + $0x18] sm:$0xff] %vm2170_vm15, %v2153_v20  ;;  %v3444_v23 = vpack.c.bf16 %v3429_v22, %v3428_v21 }
 0x38b   :  { %6439 = vmatprep.mubr.bf16.mxu0 %v3444_v23 }
 0x38c   :  { %v3403_v24 = vpop.permute.xlu1 %3402  ;;  %v2155_v25 = vpop.permute.xlu0 %2154  ;;  %v3430_v27 = vld [vmem:[#allocation2 + $0x10] sm:$0xff]  ;;  %v3437_v41 = vld [vmem:[#allocation2 + $0x48] sm:$0xff] }
 0x38d   :  { %3423 = vst.msk [vmem:[#allocation2 + $0x58] sm:$0xff] %vm2170_vm15, %v3403_v24  ;;  %2175 = vst.msk [vmem:[#allocation2 + $0x20] sm:$0xff] %vm2170_vm15, %v2155_v25  ;;  %v3448_v36 = vpack.c.bf16 %v3437_v41, %v3436_v40 }
 0x390   :  { %v2157_v26 = vpop.permute.xlu1 %2156  ;;  %v3431_v28 = vld [vmem:[#allocation2 + $0x18] sm:$0xff]  ;;  %v3438_v48 = vld [vmem:[#allocation2 + $0x50] sm:$0xff] }
 0x391   :  { %2176 = vst.msk [vmem:[#allocation2 + $0x28] sm:$0xff] %vm2170_vm15, %v2157_v26  ;;  %v3445_v30 = vpack.c.bf16 %v3431_v28, %v3430_v27 }
 0x393   :  { %6440 = vmatmul.mubr.bf16.vlgmr.msra.gmra.mxu0 %v3445_v30 }
 0x394   :  { %v2159_v31 = vpop.permute.xlu0 %2158  ;;  %v3432_v34 = vld [vmem:[#allocation2 + $0x20] sm:$0xff]  ;;  %v3439_v49 = vld [vmem:[#allocation2 + $0x58] sm:$0xff] }
 0x395   :  { %2177 = vst.msk [vmem:[#allocation2 + $0x30] sm:$0xff] %vm2170_vm15, %v2159_v31  ;;  %v3449_v51 = vpack.c.bf16 %v3439_v49, %v3438_v48 }
 0x398   :  { %v3365_v32 = vpop.permute.xlu0 %3364  ;;  %v2161_v33 = vpop.permute.xlu1 %2160  ;;  %v3433_v35 = vld [vmem:[#allocation2 + $0x28] sm:$0xff] }
 0x399   :  { %3384 = vst.msk [vmem:[#allocation2 + $0x60] sm:$0xff] %vm2129_vm14, %v3365_v32  ;;  %v3446_v37 = vpack.c.bf16 %v3433_v35, %v3432_v34 }
 0x39a   :  { %2178 = vst.msk [vmem:[#allocation2 + $0x38] sm:$0xff] %vm2170_vm15, %v2161_v33 }
 0x39b   :  { %6443 = vmatprep.mubr.bf16.mxu0 %v3446_v37 }
 0x39c   :  { %v3369_v38 = vpop.permute.xlu0 %3368  ;;  %v3367_v39 = vpop.permute.xlu1 %3366  ;;  %v3434_v44 = vld [vmem:[#allocation2 + $0x30] sm:$0xff] }
 0x39d   :  { %3386 = vst.msk [vmem:[#allocation2 + $0x70] sm:$0xff] %vm2129_vm14, %v3369_v38  ;;  %3385 = vst.msk [vmem:[#allocation2 + $0x68] sm:$0xff] %vm2129_vm14, %v3367_v39 }
 0x3a0   :  { %v3371_v42 = vpop.permute.xlu1 %3370  ;;  %v3405_v45 = vpop.permute.xlu0 %3404 }
 0x3a1   :  { %v3435_v29 = vld [vmem:[#allocation2 + $0x38] sm:$0xff]  ;;  %3387 = vst.msk [vmem:[#allocation2 + $0x78] sm:$0xff] %vm2129_vm14, %v3371_v42 }
 0x3a2   :  { %v3447_v46 = vpack.c.bf16 %v3435_v29, %v3434_v44  ;;  %3424 = vst.msk [vmem:[#allocation2 + $0x60] sm:$0xff] %vm2170_vm15, %v3405_v45 }
 0x3a4   :  { %6444 = vmatmul.mubr.bf16.gmra.mxu0 %v3447_v46  ;;  %v3407_v43 = vpop.permute.xlu1 %3406  ;;  %v3409_v47 = vpop.permute.xlu0 %3408 }
 0x3a5   :  { %6447 = vmatprep.mubr.bf16.mxu0 %v3448_v36  ;;  %3425 = vst.msk [vmem:[#allocation2 + $0x68] sm:$0xff] %vm2170_vm15, %v3407_v43  ;;  %3426 = vst.msk [vmem:[#allocation2 + $0x70] sm:$0xff] %vm2170_vm15, %v3409_v47 }
 0x3a8   :  { %v3411_v50 = vpop.permute.xlu1 %3410 }
 0x3a9   :  { %3427 = vst.msk [vmem:[#allocation2 + $0x78] sm:$0xff] %vm2170_vm15, %v3411_v50  ;;  %v3440_v52 = vld [vmem:[#allocation2 + $0x60] sm:$0xff] }
 0x3ac   :  { %6448 = vmatmul.mubr.bf16.gmra.mxu0 %v3449_v51  ;;  %v3441_v53 = vld [vmem:[#allocation2 + $0x68] sm:$0xff]  ;;  %v3442_v55 = vld [vmem:[#allocation2 + $0x70] sm:$0xff] }
 0x3ad   :  { %v3450_v54 = vpack.c.bf16 %v3441_v53, %v3440_v52  ;;  %v6811_v51 = vld [vmem:[%s8737_s4 + $0x8] sm:$0xff]  }
 0x3af   :  { %6451 = vmatprep.mubr.bf16.mxu0 %v3450_v54 }
 0x3b0   :  { %v3443_v56 = vld [vmem:[#allocation2 + $0x78] sm:$0xff] }
 0x3b1   :  { %v3451_v57 = vpack.c.bf16 %v3443_v56, %v3442_v55  ;;  %v6812_v55 = vld [vmem:[%s8737_s4 + $0x10] sm:$0xff]  }
 0x3b4   :  { %6452 = vmatmul.mubr.bf16.gmra.mxu0 %v3451_v57 }
 0x3b5   :  { %6503 = vmatprep.mubr.msk.bf16.mxu0 %vm3788_vm1, %v6810_v58 }
 0x453   :  { %v6441_v59 = vpop.f32.mrf.mxu0 }
 0x454   :  { %v3566_v8 = vadd.f32 %v6441_v59, %v8157_v63 }
 0x455   :  { %v3557_v60 = vpop.f32.mrf.mxu0 }
 0x456   :  { %v3638_v21 = vmul.f32 0.1, %v3566_v8  ;;  %v3558_v22 = vadd.f32 %v8157_v63, %v3557_v60  ;;  %vm3622_vm7 = vcmp.ge.f32.partialorder %v3566_v8, 0.0 }
 0x457   :  { %v6442_v61 = vpop.f32.mrf.mxu0 }
 0x458   :  { %v3569_v4 = vadd.f32 %v6442_v61, %v8157_v63  ;;  %v3636_v31 = vmul.f32 0.1, %v3558_v22  ;;  %v3654_v32 = vsel %vm3622_vm7, %v3566_v8, %v3638_v21  ;;  %vm3620_vm9 = vcmp.ge.f32.partialorder %v3558_v22, 0.0  ;;  %v6815_v8 = vld [vmem:[%s8737_s4 + $0x28] sm:$0xff]   ;;  %v6826_v21 = vld [vmem:[%s8738_s5 + $0x78] sm:$0xff]  }
 0x459   :  { %v3560_v62 = vpop.f32.mrf.mxu0  ;;  %vm4846_vm7 = vcmask 130048  }
 0x45a   :  { %v3639_v13 = vmul.f32 0.1, %v3569_v4  ;;  %v3561_v14 = vadd.f32 %v8157_v63, %v3560_v62  ;;  %vm3623_vm6 = vcmp.ge.f32.partialorder %v3569_v4, 0.0  ;;  %v3652_v40 = vsel %vm3620_vm9, %v3558_v22, %v3636_v31 }
 0x45c   :  { %v3637_v27 = vmul.f32 0.1, %v3561_v14  ;;  %v3655_v28 = vsel %vm3623_vm6, %v3569_v4, %v3639_v13  ;;  %vm3621_vm8 = vcmp.ge.f32.partialorder %v3561_v14, 0.0  ;;  %v6820_v13 = vld [vmem:[%s8737_s4 + $0x50] sm:$0xff]   ;;  %vm4031_vm6 = vcmask 1048320  }
 0x45d   :  { %v3669_v34 = vpack.c.bf16 %v3655_v28, %v3654_v32  ;;  %v6835_v32 = vld [vmem:[%s8738_s5 + $0x28] sm:$0xff]  }
 0x45e   :  { %v3653_v37 = vsel %vm3621_vm8, %v3561_v14, %v3637_v27  ;;  %v6821_v14 = vld [vmem:[%s8737_s4 + $0x58] sm:$0xff]   ;;  %v6831_v27 = vld [vmem:[%s8738_s5 + $0x30] sm:$0xff]  }
 0x45f   :  { %v3668_v44 = vpack.c.bf16 %v3653_v37, %v3652_v40 }
 0x464   :  { %v6445_v0 = vpop.f32.mrf.mxu0 }
 0x465   :  { %v3582_v1 = vadd.f32 %v6445_v0, %v8157_v63 }
 0x466   :  { %v3573_v2 = vpop.f32.mrf.mxu0 }
 0x467   :  { %v3574_v3 = vadd.f32 %v8157_v63, %v3573_v2  ;;  %v3642_v6 = vmul.f32 0.1, %v3582_v1  ;;  %vm3626_vm2 = vcmp.ge.f32.partialorder %v3582_v1, 0.0 }
 0x468   :  { %v6446_v5 = vpop.f32.mrf.mxu0 }
 0x469   :  { %v3585_v7 = vadd.f32 %v6446_v5, %v8157_v63  ;;  %v3640_v10 = vmul.f32 0.1, %v3574_v3  ;;  %vm3624_vm4 = vcmp.ge.f32.partialorder %v3574_v3, 0.0  ;;  %v3658_v17 = vsel %vm3626_vm2, %v3582_v1, %v3642_v6  ;;  %v6814_v5 = vld [vmem:[%s8737_s4 + $0x20] sm:$0xff]  }
 0x46a   :  { %v3576_v9 = vpop.f32.mrf.mxu0 }
 0x46b   :  { %vm3627_vm3 = vcmp.ge.f32.partialorder %v3585_v7, 0.0  ;;  %v3643_v11 = vmul.f32 0.1, %v3585_v7  ;;  %v3577_v12 = vadd.f32 %v8157_v63, %v3576_v9  ;;  %v3656_v23 = vsel %vm3624_vm4, %v3574_v3, %v3640_v10  ;;  %v6816_v9 = vld [vmem:[%s8737_s4 + $0x30] sm:$0xff]   ;;  %v6817_v10 = vld [vmem:[%s8737_s4 + $0x38] sm:$0xff]  }
 0x46c   :  { %v6449_v15 = vpop.f32.mrf.mxu0  ;;  %vm3998_vm4 = vcmask 261120  }
 0x46d   :  { %vm3625_vm5 = vcmp.ge.f32.partialorder %v3577_v12, 0.0  ;;  %v3641_v16 = vmul.f32 0.1, %v3577_v12  ;;  %v3659_v18 = vsel %vm3627_vm3, %v3585_v7, %v3643_v11  ;;  %v3598_v46 = vadd.f32 %v6449_v15, %v8157_v63  ;;  %v6818_v11 = vld [vmem:[%s8737_s4 + $0x40] sm:$0xff]  }
 0x46e   :  { %v3589_v19 = vpop.f32.mrf.mxu0  ;;  %v3671_v20 = vpack.c.bf16 %v3659_v18, %v3658_v17  ;;  %v6822_v15 = vld [vmem:[%s8737_s4 + $0x60] sm:$0xff]   ;;  %v6824_v17 = vld [vmem:[%s8737_s4 + $0x70] sm:$0xff]   ;;  %v6825_v18 = vld [vmem:[%s8737_s4 + $0x78] sm:$0xff]  }
 0x46f   :  { %v3657_v24 = vsel %vm3625_vm5, %v3577_v12, %v3641_v16  ;;  %v3646_v57 = vmul.f32 0.1, %v3598_v46  ;;  %v3590_v58 = vadd.f32 %v8157_v63, %v3589_v19  ;;  %vm3630_vm15 = vcmp.ge.f32.partialorder %v3598_v46, 0.0  ;;  %v6819_v12 = vld [vmem:[%s8737_s4 + $0x48] sm:$0xff]  }
 0x470   :  { %v6450_v25 = vpop.f32.mrf.mxu0  ;;  %6455 = vmatprep.subr.bf16.mxu1 %v3671_v20  ;;  %v3670_v26 = vpack.c.bf16 %v3657_v24, %v3656_v23  ;;  %v6823_v16 = vld [vmem:[%s8737_s4 + $0x68] sm:$0xff]   ;;  %v6827_v23 = vld [vmem:[%s8738_s5 + $0x38] sm:$0xff]   ;;  %vm4020_vm5 = vcmask 785920  }
 0x471   :  { %6456 = vmatpush3.bf16.msra.mxu1 %v3671_v20  ;;  %v3601_v41 = vadd.f32 %v6450_v25, %v8157_v63  ;;  %v3644_v1 = vmul.f32 0.1, %v3590_v58  ;;  %v3662_v2 = vsel %vm3630_vm15, %v3598_v46, %v3646_v57  ;;  %vm3628_vm3 = vcmp.ge.f32.partialorder %v3590_v58, 0.0  ;;  %v6830_v25 = vld [vmem:[%s8738_s5 + $0x70] sm:$0xff]   ;;  %v6854_v57 = vld [vmem:[%s8738_s5 + $0x40] sm:$0xff]  }
 0x472   :  { %v3592_v30 = vpop.f32.mrf.mxu0  ;;  %6457 = vmatprep.subr.bf16.mxu1 %v3670_v26  ;;  %vm5055_vm15 = vcmask 1048068  }
 0x473   :  { %v3647_v49 = vmul.f32 0.1, %v3601_v41  ;;  %v3593_v50 = vadd.f32 %v8157_v63, %v3592_v30  ;;  %vm3631_vm14 = vcmp.ge.f32.partialorder %v3601_v41, 0.0  ;;  %v3660_v6 = vsel %vm3628_vm3, %v3590_v58, %v3644_v1  ;;  %v6834_v30 = vld [vmem:[%s8738_s5 + $0x68] sm:$0xff]  }
 0x474   :  { %v6453_v33 = vpop.f32.mrf.mxu0 }
 0x475   :  { %v3614_v35 = vadd.f32 %v6453_v33, %v8157_v63  ;;  %6458 = vmatpush3.bf16.msra.mxu1 %v3670_v26  ;;  %v3645_v62 = vmul.f32 0.1, %v3593_v50  ;;  %v3663_v0 = vsel %vm3631_vm14, %v3601_v41, %v3647_v49  ;;  %vm3629_vm2 = vcmp.ge.f32.partialorder %v3593_v50, 0.0  ;;  %v6842_v41 = vld [vmem:[%s8738_s5 + $0x58] sm:$0xff]  }
 0x476   :  { %v3605_v38 = vpop.f32.mrf.mxu0  ;;  %6459 = vmatprep.subr.bf16.mxu1 %v3669_v34  ;;  %v3673_v3 = vpack.c.bf16 %v3663_v0, %v3662_v2  ;;  %vm4931_vm14 = vcmask 1043968  }
 0x477   :  { %v3606_v39 = vadd.f32 %v8157_v63, %v3605_v38  ;;  %v3650_v29 = vmul.f32 0.1, %v3614_v35  ;;  %vm3634_vm10 = vcmp.ge.f32.partialorder %v3614_v35, 0.0  ;;  %v3661_v4 = vsel %vm3629_vm2, %v3593_v50, %v3645_v62  ;;  %v6839_v38 = vld [vmem:[%s8738_s5 + $0x20] sm:$0xff]  }
 0x478   :  { %v6454_v42 = vpop.f32.mrf.mxu0  ;;  %v3672_v7 = vpack.c.bf16 %v3661_v4, %v3660_v6  ;;  %vm7010_vm2 = vmmov 0  }
 0x479   :  { %v3617_v45 = vadd.f32 %v6454_v42, %v8157_v63  ;;  %6460 = vmatpush3.bf16.msra.mxu1 %v3669_v34  ;;  %v3648_v43 = vmul.f32 0.1, %v3606_v39  ;;  %vm3632_vm12 = vcmp.ge.f32.partialorder %v3606_v39, 0.0  ;;  %v3666_v53 = vsel %vm3634_vm10, %v3614_v35, %v3650_v29  ;;  %v6838_v34 = vld [vmem:[%s8738_s5 + $0x60] sm:$0xff]   ;;  %v6843_v29 = vld [vmem:[%s8738_s5 + $0x18] sm:$0xff]  }
 0x47a   :  { %6461 = vmatprep.subr.bf16.mxu1 %v3668_v44  ;;  %v3608_v36 = vpop.f32.mrf.mxu0 }
 0x47b   :  { %vm3635_vm11 = vcmp.ge.f32.partialorder %v3617_v45, 0.0  ;;  %v3651_v47 = vmul.f32 0.1, %v3617_v45  ;;  %v3609_v48 = vadd.f32 %v8157_v63, %v3608_v36  ;;  %v3664_v59 = vsel %vm3632_vm12, %v3606_v39, %v3648_v43  ;;  %v6813_v63 = vld [vmem:[%s8737_s4 + $0x18] sm:$0xff]   ;;  %v6846_v36 = vld [vmem:[%s8738_s5 + $0x50] sm:$0xff]  }
 0x47c   :  { %vm4924_vm12 = vcmask 519168  }
 0x47d   :  { %vm3633_vm13 = vcmp.ge.f32.partialorder %v3609_v48, 0.0  ;;  %v3649_v52 = vmul.f32 0.1, %v3609_v48  ;;  %6462 = vmatpush3.bf16.msra.mxu1 %v3668_v44  ;;  %v3667_v54 = vsel %vm3635_vm11, %v3617_v45, %v3651_v47 }
 0x47e   :  { %v3675_v56 = vpack.c.bf16 %v3667_v54, %v3666_v53  ;;  %6267 = vmatprep.subr.bf16.mxu1 %v6826_v21  ;;  %v6851_v54 = vld [vmem:[%s8738_s5 + $0x8] sm:$0xff]  }
 0x47f   :  { %v3665_v60 = vsel %vm3633_vm13, %v3609_v48, %v3649_v52  ;;  %v6847_v48 = vld [vmem:[%s8738_s5 + $0x10] sm:$0xff]   ;;  %vm5050_vm13 = vcmask 523268  }
 0x480   :  { %6495 = vmatprep.subr.bf16.mxu0 %v3675_v56  ;;  %v3674_v61 = vpack.c.bf16 %v3665_v60, %v3664_v59  ;;  %6464 = vmatmul.mubr.msk.bf16.vlgmr.msra.gmra.mxu1 %vm3788_vm1, %v6811_v51  ;;  %v6855_v60 = vld [vmem:[%s8738_s5] sm:$0xff]  }
 0x481   :  { %6496 = vmatpush3.bf16.msra.mxu0 %v3675_v56  ;;  %6467 = vmatprep.mubr.msk.bf16.mxu1 %vm3788_vm1, %v6812_v55 }
 0x482   :  { %6497 = vmatprep.subr.bf16.mxu0 %v3674_v61  ;;  %6268 = vmatpush3.bf16.msra.mxu1 %v6827_v23  ;;  %v6836_v23 = vld [vmem:[%s8738_s5 + $0xe8] sm:$0xff]  }
 0x483   :  { %6269 = vmatprep.subr.bf16.mxu1 %v6830_v25  ;;  %v6837_v25 = vld [vmem:[%s8738_s5 + $0xa8] sm:$0xff]  }
 0x485   :  { %6498 = vmatpush3.bf16.msra.mxu0 %v3674_v61 }
 0x486   :  { %6499 = vmatprep.subr.bf16.mxu0 %v3673_v3  ;;  %6270 = vmatpush3.bf16.msra.mxu1 %v6831_v27  ;;  %v6840_v27 = vld [vmem:[%s8738_s5 + $0xe0] sm:$0xff]  }
 0x487   :  { %6271 = vmatprep.subr.bf16.mxu1 %v6834_v30  ;;  %v6841_v30 = vld [vmem:[%s8738_s5 + $0xa0] sm:$0xff]  }
 0x488   :  { %6468 = vmatmul.mubr.msk.bf16.gmra.mxu1 %vm3788_vm1, %v6813_v63 }
 0x489   :  { %6500 = vmatpush3.bf16.msra.mxu0 %v3673_v3  ;;  %6471 = vmatprep.mubr.msk.bf16.mxu1 %vm3788_vm1, %v6814_v5 }
 0x48a   :  { %6501 = vmatprep.subr.bf16.mxu0 %v3672_v7  ;;  %6272 = vmatpush3.bf16.msra.mxu1 %v6835_v32  ;;  %v6844_v32 = vld [vmem:[%s8738_s5 + $0xd8] sm:$0xff]  }
 0x48b   :  { %6273 = vmatprep.subr.bf16.mxu1 %v6838_v34 }
 0x48d   :  { %6502 = vmatpush3.bf16.msra.mxu0 %v3672_v7 }
 0x48e   :  { %6274 = vmatpush3.bf16.msra.mxu1 %v6839_v38 }
 0x48f   :  { %6275 = vmatprep.subr.bf16.mxu1 %v6842_v41  ;;  %v6852_v41 = vld [vmem:[%s8738_s5 + $0xc8] sm:$0xff]  }
 0x490   :  { %6472 = vmatmul.mubr.msk.bf16.gmra.mxu1 %vm3788_vm1, %v6815_v8  ;;  %6504 = vmatmul.mubr.msk.bf16.vlgmr.msra.gmra.mxu0 %vm3788_vm1, %v6811_v51  ;;  %v6850_v51 = vld [vmem:[%s8738_s5 + $0x48] sm:$0xff]  }
 0x491   :  { %6475 = vmatprep.mubr.msk.bf16.mxu1 %vm3788_vm1, %v6816_v9  ;;  %6507 = vmatprep.mubr.msk.bf16.mxu0 %vm3788_vm1, %v6812_v55 }
 0x492   :  { %6276 = vmatpush3.bf16.msra.mxu1 %v6843_v29 }
 0x493   :  { %6277 = vmatprep.subr.bf16.mxu1 %v6846_v36 }
 0x496   :  { %6278 = vmatpush3.bf16.msra.mxu1 %v6847_v48 }
 0x497   :  { %6279 = vmatprep.subr.bf16.mxu1 %v6850_v51 }
 0x498   :  { %6476 = vmatmul.mubr.msk.bf16.gmra.mxu1 %vm3788_vm1, %v6817_v10  ;;  %6508 = vmatmul.mubr.msk.bf16.gmra.mxu0 %vm3788_vm1, %v6813_v63 }
 0x499   :  { %6479 = vmatprep.mubr.msk.bf16.mxu1 %vm3788_vm1, %v6818_v11  ;;  %6511 = vmatprep.mubr.msk.bf16.mxu0 %vm3788_vm1, %v6814_v5 }
 0x49a   :  { %6280 = vmatpush3.bf16.msra.mxu1 %v6851_v54 }
 0x49b   :  { %6281 = vmatprep.subr.bf16.mxu1 %v6854_v57 }
 0x49e   :  { %6282 = vmatpush3.bf16.msra.mxu1 %v6855_v60 }
 0x4a0   :  { %6480 = vmatmul.mubr.msk.bf16.gmra.mxu1 %vm3788_vm1, %v6819_v12  ;;  %6512 = vmatmul.mubr.msk.bf16.gmra.mxu0 %vm3788_vm1, %v6815_v8 }
 0x4a1   :  { %6483 = vmatprep.mubr.msk.bf16.mxu1 %vm3788_vm1, %v6820_v13  ;;  %6515 = vmatprep.mubr.msk.bf16.mxu0 %vm3788_vm1, %v6816_v9 }
 0x4a8   :  { %6484 = vmatmul.mubr.msk.bf16.gmra.mxu1 %vm3788_vm1, %v6821_v14  ;;  %6516 = vmatmul.mubr.msk.bf16.gmra.mxu0 %vm3788_vm1, %v6817_v10 }
 0x4a9   :  { %6487 = vmatprep.mubr.msk.bf16.mxu1 %vm3788_vm1, %v6822_v15  ;;  %6519 = vmatprep.mubr.msk.bf16.mxu0 %vm3788_vm1, %v6818_v11  ;;  %v6828_v11 = vld [vmem:[%s8738_s5 + $0xf8] sm:$0xff]  }
 0x4aa   :  { %6295 = vmatprep.subr.bf16.mxu0 %v6828_v11 }
 0x4b0   :  { %6488 = vmatmul.mubr.msk.bf16.gmra.mxu1 %vm3788_vm1, %v6823_v16  ;;  %6520 = vmatmul.mubr.msk.bf16.gmra.mxu0 %vm3788_vm1, %v6819_v12 }
 0x4b1   :  { %6491 = vmatprep.mubr.msk.bf16.mxu1 %vm3788_vm1, %v6824_v17  ;;  %6523 = vmatprep.mubr.msk.bf16.mxu0 %vm3788_vm1, %v6820_v13 }
 0x4b8   :  { %6492 = vmatmul.mubr.msk.bf16.gmra.mxu1 %vm3788_vm1, %v6825_v18  ;;  %6524 = vmatmul.mubr.msk.bf16.gmra.mxu0 %vm3788_vm1, %v6821_v14  ;;  %v6829_v14 = vld [vmem:[%s8738_s5 + $0xb8] sm:$0xff]  }
 0x4b9   :  { %6527 = vmatprep.mubr.msk.bf16.mxu0 %vm3788_vm1, %v6822_v15  ;;  %6296 = vmatpush3.bf16.msra.mxu0 %v6829_v14 }
 0x4c0   :  { %6528 = vmatmul.mubr.msk.bf16.gmra.mxu0 %vm3788_vm1, %v6823_v16 }
 0x4c1   :  { %6531 = vmatprep.mubr.msk.bf16.mxu0 %vm3788_vm1, %v6824_v17  ;;  %v6832_v17 = vld [vmem:[%s8738_s5 + $0xf0] sm:$0xff]  }
 0x4c2   :  { %6297 = vmatprep.subr.bf16.mxu0 %v6832_v17 }
 0x4c8   :  { %6532 = vmatmul.mubr.msk.bf16.gmra.mxu0 %vm3788_vm1, %v6825_v18  ;;  %vm4009_vm1 = vcmask 523520  }
 0x540   :  { %v6465_v19 = vpop.f32.mrf.mxu1 }
 0x541   :  { %4003 = vrot.lane.b32.xlu0 %v6465_v19, %s6997_s26 }
 0x542   :  { %v3871_v20 = vpop.f32.mrf.mxu1 }
 0x543   :  { %3999 = vst.msk [vmem:[#allocation3] sm:$0xff] %vm3998_vm4, %v3871_v20  ;;  %v6833_v20 = vld [vmem:[%s8738_s5 + $0xb0] sm:$0xff]  }
 0x544   :  { %v6466_v22 = vpop.f32.mrf.mxu1  ;;  %6298 = vmatpush3.bf16.msra.mxu0 %v6833_v20 }
 0x545   :  { %4005 = vrot.lane.b32.xlu1 %v6466_v22, %s6997_s26  ;;  %6299 = vmatprep.subr.bf16.mxu0 %v6836_v23 }
 0x546   :  { %v3874_v24 = vpop.f32.mrf.mxu1 }
 0x547   :  { %4000 = vst.msk [vmem:[#allocation3 + $0x20] sm:$0xff] %vm3998_vm4, %v3874_v24 }
 0x548   :  { %v6469_v26 = vpop.f32.mrf.mxu1  ;;  %6300 = vmatpush3.bf16.msra.mxu0 %v6837_v25 }
 0x549   :  { %4025 = vrot.lane.b32.xlu0 %v6469_v26, %s7005_s20  ;;  %6301 = vmatprep.subr.bf16.mxu0 %v6840_v27 }
 0x54a   :  { %v3887_v28 = vpop.f32.mrf.mxu1 }
 0x54c   :  { %v6470_v31 = vpop.f32.mrf.mxu1  ;;  %6302 = vmatpush3.bf16.msra.mxu0 %v6841_v30 }
 0x54d   :  { %4027 = vrot.lane.b32.xlu1 %v6470_v31, %s7005_s20  ;;  %4014 = vrot.lane.b32.xlu0 %v3887_v28, %s7001_s0 }
 0x54e   :  { %v3890_v33 = vpop.f32.mrf.mxu1  ;;  %6303 = vmatprep.subr.bf16.mxu0 %v6844_v32 }
 0x550   :  { %v6473_v35 = vpop.f32.mrf.mxu1  ;;  %v6505_v37 = vpop.f32.mrf.mxu0 }
 0x551   :  { %4016 = vrot.lane.b32.xlu1 %v3890_v33, %s7001_s0  ;;  %4038 = vrot.lane.b32.xlu0 %v6473_v35, %s6997_s26  ;;  %v6845_v33 = vld [vmem:[%s8738_s5 + $0x98] sm:$0xff]  }
 0x552   :  { %v3903_v39 = vpop.f32.mrf.mxu1  ;;  %v4164_v40 = vpop.f32.mrf.mxu0  ;;  %6304 = vmatpush3.bf16.msra.mxu0 %v6845_v33 }
 0x553   :  { %4034 = vst.msk [vmem:[#allocation3 + $0x8] sm:$0xff] %vm3998_vm4, %v3903_v39  ;;  %4291 = vst.msk [vmem:[#allocation3 + $0x40] sm:$0xff] %vm3998_vm4, %v4164_v40  ;;  %v6849_v40 = vld [vmem:[%s8738_s5 + $0x90] sm:$0xff]  }
 0x554   :  { %v6474_v42 = vpop.f32.mrf.mxu1  ;;  %v6506_v44 = vpop.f32.mrf.mxu0 }
 0x555   :  { %4040 = vrot.lane.b32.xlu1 %v6474_v42, %s6997_s26  ;;  %4295 = vrot.lane.b32.xlu0 %v6505_v37, %s6997_s26  ;;  %v6848_v37 = vld [vmem:[%s8738_s5 + $0xd0] sm:$0xff]  }
 0x556   :  { %v3906_v45 = vpop.f32.mrf.mxu1  ;;  %v4167_v46 = vpop.f32.mrf.mxu0  ;;  %6305 = vmatprep.subr.bf16.mxu0 %v6848_v37 }
 0x557   :  { %4035 = vst.msk [vmem:[#allocation3 + $0x28] sm:$0xff] %vm3998_vm4, %v3906_v45  ;;  %4292 = vst.msk [vmem:[#allocation3 + $0x60] sm:$0xff] %vm3998_vm4, %v4167_v46  ;;  %6306 = vmatpush3.bf16.msra.mxu0 %v6849_v40  ;;  %v6856_v45 = vld [vmem:[%s8738_s5 + $0xc0] sm:$0xff]  }
 0x558   :  { %v6477_v43 = vpop.f32.mrf.mxu1  ;;  %v6509_v47 = vpop.f32.mrf.mxu0  ;;  %6307 = vmatprep.subr.bf16.mxu0 %v6852_v41  ;;  %v6857_v46 = vld [vmem:[%s8738_s5 + $0x80] sm:$0xff]  }
 0x559   :  { %4297 = vrot.lane.b32.xlu1 %v6506_v44, %s6997_s26  ;;  %4058 = vrot.lane.b32.xlu0 %v6477_v43, %s7005_s20  ;;  %v6853_v44 = vld [vmem:[%s8738_s5 + $0x88] sm:$0xff]  }
 0x55a   :  { %v3919_v49 = vpop.f32.mrf.mxu1  ;;  %v4180_v50 = vpop.f32.mrf.mxu0 }
 0x55b   :  { %6308 = vmatpush3.bf16.msra.mxu0 %v6853_v44 }
 0x55c   :  { %v6478_v52 = vpop.f32.mrf.mxu1  ;;  %v6510_v53 = vpop.f32.mrf.mxu0  ;;  %6309 = vmatprep.subr.bf16.mxu0 %v6856_v45 }
 0x55d   :  { %4060 = vrot.lane.b32.xlu1 %v6478_v52, %s7005_s20  ;;  %4315 = vrot.lane.b32.xlu0 %v6509_v47, %s7005_s20 }
 0x55e   :  { %v3922_v55 = vpop.f32.mrf.mxu1  ;;  %v4183_v56 = vpop.f32.mrf.mxu0 }
 0x55f   :  { %6310 = vmatpush3.bf16.msra.mxu0 %v6857_v46 }
 0x560   :  { %v6481_v58 = vpop.f32.mrf.mxu1  ;;  %v6513_v59 = vpop.f32.mrf.mxu0 }
 0x561   :  { %4317 = vrot.lane.b32.xlu1 %v6510_v53, %s7005_s20  ;;  %4048 = vrot.lane.b32.xlu0 %v3919_v49, %s7001_s0 }
 0x562   :  { %v3935_v61 = vpop.f32.mrf.mxu1  ;;  %v4196_v62 = vpop.f32.mrf.mxu0 }
 0x563   :  { %4066 = vst.msk [vmem:[#allocation3 + $0x10] sm:$0xff] %vm3998_vm4, %v3935_v61  ;;  %4323 = vst.msk [vmem:[#allocation3 + $0x48] sm:$0xff] %vm3998_vm4, %v4196_v62 }
 0x564   :  { %v6482_v0 = vpop.f32.mrf.mxu1  ;;  %v6514_v1 = vpop.f32.mrf.mxu0 }
 0x565   :  { %4050 = vrot.lane.b32.xlu1 %v3922_v55, %s7001_s0  ;;  %4305 = vrot.lane.b32.xlu0 %v4180_v50, %s7001_s0 }
 0x566   :  { %v3938_v2 = vpop.f32.mrf.mxu1  ;;  %v4199_v3 = vpop.f32.mrf.mxu0 }
 0x567   :  { %4067 = vst.msk [vmem:[#allocation3 + $0x30] sm:$0xff] %vm3998_vm4, %v3938_v2  ;;  %4324 = vst.msk [vmem:[#allocation3 + $0x68] sm:$0xff] %vm3998_vm4, %v4199_v3 }
 0x568   :  { %v6485_v63 = vpop.f32.mrf.mxu1  ;;  %v6517_v4 = vpop.f32.mrf.mxu0 }
 0x569   :  { %4307 = vrot.lane.b32.xlu1 %v4183_v56, %s7001_s0  ;;  %4070 = vrot.lane.b32.xlu0 %v6481_v58, %s6997_s26 }
 0x56a   :  { %v3951_v5 = vpop.f32.mrf.mxu1  ;;  %v4212_v6 = vpop.f32.mrf.mxu0 }
 0x56c   :  { %v6486_v7 = vpop.f32.mrf.mxu1  ;;  %v6518_v8 = vpop.f32.mrf.mxu0 }
 0x56d   :  { %4072 = vrot.lane.b32.xlu1 %v6482_v0, %s6997_s26  ;;  %4327 = vrot.lane.b32.xlu0 %v6513_v59, %s6997_s26 }
 0x56e   :  { %v3954_v9 = vpop.f32.mrf.mxu1  ;;  %v4215_v10 = vpop.f32.mrf.mxu0 }
 0x570   :  { %v6489_v12 = vpop.f32.mrf.mxu1  ;;  %v6521_v13 = vpop.f32.mrf.mxu0 }
 0x571   :  { %4329 = vrot.lane.b32.xlu1 %v6514_v1, %s6997_s26  ;;  %4090 = vrot.lane.b32.xlu0 %v6485_v63, %s7005_s20 }
 0x572   :  { %v3967_v15 = vpop.f32.mrf.mxu1  ;;  %v4228_v16 = vpop.f32.mrf.mxu0 }
 0x573   :  { %4098 = vst.msk [vmem:[#allocation3 + $0x18] sm:$0xff] %vm3998_vm4, %v3967_v15  ;;  %4355 = vst.msk [vmem:[#allocation3 + $0x50] sm:$0xff] %vm3998_vm4, %v4228_v16 }
 0x574   :  { %v6490_v18 = vpop.f32.mrf.mxu1  ;;  %v6522_v19 = vpop.f32.mrf.mxu0 }
 0x575   :  { %4092 = vrot.lane.b32.xlu1 %v6486_v7, %s7005_s20  ;;  %4347 = vrot.lane.b32.xlu0 %v6517_v4, %s7005_s20 }
 0x576   :  { %v3970_v21 = vpop.f32.mrf.mxu1  ;;  %v4231_v22 = vpop.f32.mrf.mxu0 }
 0x577   :  { %4099 = vst.msk [vmem:[#allocation3 + $0x38] sm:$0xff] %vm3998_vm4, %v3970_v21  ;;  %4356 = vst.msk [vmem:[#allocation3 + $0x70] sm:$0xff] %vm3998_vm4, %v4231_v22 }
 0x578   :  { %v6525_v24 = vpop.f32.mrf.mxu0  ;;  %v6493_v38 = vpop.f32.mrf.mxu1 }
 0x579   :  { %4349 = vrot.lane.b32.xlu1 %v6518_v8, %s7005_s20  ;;  %4080 = vrot.lane.b32.xlu0 %v3951_v5, %s7001_s0 }
 0x57a   :  { %v4244_v26 = vpop.f32.mrf.mxu0  ;;  %v3983_v29 = vpop.f32.mrf.mxu1 }
 0x57c   :  { %v6526_v28 = vpop.f32.mrf.mxu0  ;;  %v6494_v36 = vpop.f32.mrf.mxu1 }
 0x57d   :  { %4082 = vrot.lane.b32.xlu1 %v3954_v9, %s7001_s0  ;;  %4337 = vrot.lane.b32.xlu0 %v4212_v6, %s7001_s0 }
 0x57e   :  { %v4247_v31 = vpop.f32.mrf.mxu0  ;;  %v3986_v43 = vpop.f32.mrf.mxu1 }
 0x580   :  { %v6529_v34 = vpop.f32.mrf.mxu0 }
 0x581   :  { %4339 = vrot.lane.b32.xlu1 %v4215_v10, %s7001_s0  ;;  %4102 = vrot.lane.b32.xlu0 %v6489_v12, %s6997_s26 }
 0x582   :  { %v4260_v35 = vpop.f32.mrf.mxu0 }
 0x583   :  { %4387 = vst.msk [vmem:[#allocation3 + $0x58] sm:$0xff] %vm3998_vm4, %v4260_v35 }
 0x584   :  { %v6530_v39 = vpop.f32.mrf.mxu0 }
 0x585   :  { %4104 = vrot.lane.b32.xlu1 %v6490_v18, %s6997_s26  ;;  %4359 = vrot.lane.b32.xlu0 %v6521_v13, %s6997_s26 }
 0x586   :  { %v4263_v42 = vpop.f32.mrf.mxu0 }
 0x587   :  { %4388 = vst.msk [vmem:[#allocation3 + $0x78] sm:$0xff] %vm3998_vm4, %v4263_v42  ;;  %vm5818_vm4 = vcmask 1043456  }
 0x588   :  { %v6533_v47 = vpop.f32.mrf.mxu0 }
 0x589   :  { %4361 = vrot.lane.b32.xlu1 %v6522_v19, %s6997_s26  ;;  %4122 = vrot.lane.b32.xlu0 %v6493_v38, %s7005_s20 }
 0x58a   :  { %v4276_v48 = vpop.f32.mrf.mxu0 }
 0x58c   :  { %v6534_v49 = vpop.f32.mrf.mxu0 }
 0x58d   :  { %4124 = vrot.lane.b32.xlu1 %v6494_v36, %s7005_s20  ;;  %4112 = vrot.lane.b32.xlu0 %v3983_v29, %s7001_s0 }
 0x58e   :  { %v4279_v50 = vpop.f32.mrf.mxu0 }
 0x591   :  { %4114 = vrot.lane.b32.xlu1 %v3986_v43, %s7001_s0  ;;  %4369 = vrot.lane.b32.xlu0 %v4244_v26, %s7001_s0 }
 0x595   :  { %4371 = vrot.lane.b32.xlu1 %v4247_v31, %s7001_s0  ;;  %4391 = vrot.lane.b32.xlu0 %v6529_v34, %s6997_s26 }
 0x599   :  { %4393 = vrot.lane.b32.xlu1 %v6530_v39, %s6997_s26  ;;  %4411 = vrot.lane.b32.xlu0 %v6533_v47, %s7005_s20 }
 0x59d   :  { %4413 = vrot.lane.b32.xlu1 %v6534_v49, %s7005_s20  ;;  %4401 = vrot.lane.b32.xlu0 %v4276_v48, %s7001_s0 }
 0x5a1   :  { %4403 = vrot.lane.b32.xlu1 %v4279_v50, %s7001_s0  ;;  %4379 = vrot.lane.b32.xlu0 %v6525_v24, %s7005_s20 }
 0x5a5   :  { %4381 = vrot.lane.b32.xlu1 %v6526_v28, %s7005_s20 }
 0x5b3   :  { %v4004_v51 = vpop.permute.xlu0 %4003 }
 0x5b4   :  { %4010 = vst.msk [vmem:[#allocation3] sm:$0xff] %vm4009_vm1, %v4004_v51 }
 0x5b7   :  { %v4006_v52 = vpop.permute.xlu1 %4005 }
 0x5b8   :  { %4011 = vst.msk [vmem:[#allocation3 + $0x20] sm:$0xff] %vm4009_vm1, %v4006_v52 }
 0x5bb   :  { %v4026_v53 = vpop.permute.xlu0 %4025 }
 0x5bf   :  { %v4028_v54 = vpop.permute.xlu1 %4027  ;;  %v4015_v55 = vpop.permute.xlu0 %4014 }
 0x5c0   :  { %4021 = vst.msk [vmem:[#allocation3] sm:$0xff] %vm4020_vm5, %v4015_v55 }
 0x5c1   :  { %4032 = vst.msk [vmem:[#allocation3] sm:$0xff] %vm4031_vm6, %v4026_v53 }
 0x5c3   :  { %v4017_v56 = vpop.permute.xlu1 %4016  ;;  %v4039_v57 = vpop.permute.xlu0 %4038 }
 0x5c4   :  { %4022 = vst.msk [vmem:[#allocation3 + $0x20] sm:$0xff] %vm4020_vm5, %v4017_v56 }
 0x5c5   :  { %4044 = vst.msk [vmem:[#allocation3 + $0x8] sm:$0xff] %vm4009_vm1, %v4039_v57 }
 0x5c6   :  { %4033 = vst.msk [vmem:[#allocation3 + $0x20] sm:$0xff] %vm4031_vm6, %v4028_v54 }
 0x5c7   :  { %v4041_v58 = vpop.permute.xlu1 %4040  ;;  %v4296_v59 = vpop.permute.xlu0 %4295 }
 0x5c8   :  { %4045 = vst.msk [vmem:[#allocation3 + $0x28] sm:$0xff] %vm4009_vm1, %v4041_v58  ;;  %4301 = vst.msk [vmem:[#allocation3 + $0x40] sm:$0xff] %vm4009_vm1, %v4296_v59  ;;  %v4419_v12 = vld [vmem:[#allocation3] sm:$0xff] }
 0x5c9   :  { %v6858_v59 = vld [vmem:[%s8740_s7] sm:$0xff]  }
 0x5cb   :  { %v4298_v60 = vpop.permute.xlu1 %4297  ;;  %v4059_v61 = vpop.permute.xlu0 %4058 }
 0x5cc   :  { %4302 = vst.msk [vmem:[#allocation3 + $0x60] sm:$0xff] %vm4009_vm1, %v4298_v60 }
 0x5cd   :  { %v4423_v8 = vld [vmem:[#allocation3 + $0x20] sm:$0xff] }
 0x5ce   :  { %v4435_v13 = vpack.c.bf16 %v4423_v8, %v4419_v12 }
 0x5cf   :  { %v4061_v62 = vpop.permute.xlu1 %4060  ;;  %v4316_v0 = vpop.permute.xlu0 %4315 }
 0x5d3   :  { %v4318_v1 = vpop.permute.xlu1 %4317  ;;  %v4049_v2 = vpop.permute.xlu0 %4048 }
 0x5d4   :  { %4054 = vst.msk [vmem:[#allocation3 + $0x8] sm:$0xff] %vm4020_vm5, %v4049_v2 }
 0x5d5   :  { %4064 = vst.msk [vmem:[#allocation3 + $0x8] sm:$0xff] %vm4031_vm6, %v4059_v61 }
 0x5d7   :  { %v4051_v3 = vpop.permute.xlu1 %4050  ;;  %v4306_v63 = vpop.permute.xlu0 %4305 }
 0x5d8   :  { %4055 = vst.msk [vmem:[#allocation3 + $0x28] sm:$0xff] %vm4020_vm5, %v4051_v3  ;;  %4311 = vst.msk [vmem:[#allocation3 + $0x40] sm:$0xff] %vm4020_vm5, %v4306_v63 }
 0x5d9   :  { %4065 = vst.msk [vmem:[#allocation3 + $0x28] sm:$0xff] %vm4031_vm6, %v4061_v62  ;;  %4321 = vst.msk [vmem:[#allocation3 + $0x40] sm:$0xff] %vm4031_vm6, %v4316_v0 }
 0x5db   :  { %v4308_v4 = vpop.permute.xlu1 %4307  ;;  %v4071_v5 = vpop.permute.xlu0 %4070 }
 0x5dc   :  { %4312 = vst.msk [vmem:[#allocation3 + $0x60] sm:$0xff] %vm4020_vm5, %v4308_v4  ;;  %v4420_v9 = vld [vmem:[#allocation3 + $0x8] sm:$0xff] }
 0x5dd   :  { %4076 = vst.msk [vmem:[#allocation3 + $0x10] sm:$0xff] %vm4009_vm1, %v4071_v5 }
 0x5de   :  { %4322 = vst.msk [vmem:[#allocation3 + $0x60] sm:$0xff] %vm4031_vm6, %v4318_v1  ;;  %v6099_v1 = vld [vmem:[#allocation6] ss:$0 sm:$0xff] }
 0x5df   :  { %v4073_v6 = vpop.permute.xlu1 %4072  ;;  %v4328_v7 = vpop.permute.xlu0 %4327 }
 0x5e0   :  { %4077 = vst.msk [vmem:[#allocation3 + $0x30] sm:$0xff] %vm4009_vm1, %v4073_v6  ;;  %4333 = vst.msk [vmem:[#allocation3 + $0x48] sm:$0xff] %vm4009_vm1, %v4328_v7  ;;  %v4424_v10 = vld [vmem:[#allocation3 + $0x28] sm:$0xff]  ;;  %v4427_v33 = vld [vmem:[#allocation3 + $0x40] sm:$0xff] }
 0x5e1   :  { %v4436_v11 = vpack.c.bf16 %v4424_v10, %v4420_v9 }
 0x5e3   :  { %v4330_v14 = vpop.permute.xlu1 %4329  ;;  %v4091_v15 = vpop.permute.xlu0 %4090  ;;  %4738 = vmatprep.mubr.bf16.mxu1 %v4436_v11 }
 0x5e4   :  { %4334 = vst.msk [vmem:[#allocation3 + $0x68] sm:$0xff] %vm4009_vm1, %v4330_v14  ;;  %4739 = vmatmul.mubr.bf16.vlgmr.msra.gmra.mxu1 %v4435_v13 }
 0x5e5   :  { %v4431_v28 = vld [vmem:[#allocation3 + $0x60] sm:$0xff] }
 0x5e6   :  { %v4439_v34 = vpack.c.bf16 %v4431_v28, %v4427_v33 }
 0x5e7   :  { %v4093_v16 = vpop.permute.xlu1 %4092  ;;  %v4348_v17 = vpop.permute.xlu0 %4347 }
 0x5eb   :  { %v4350_v18 = vpop.permute.xlu1 %4349  ;;  %v4081_v19 = vpop.permute.xlu0 %4080 }
 0x5ec   :  { %4086 = vst.msk [vmem:[#allocation3 + $0x10] sm:$0xff] %vm4020_vm5, %v4081_v19 }
 0x5ed   :  { %4096 = vst.msk [vmem:[#allocation3 + $0x10] sm:$0xff] %vm4031_vm6, %v4091_v15 }
 0x5ef   :  { %v4083_v20 = vpop.permute.xlu1 %4082  ;;  %v4338_v21 = vpop.permute.xlu0 %4337 }
 0x5f0   :  { %4087 = vst.msk [vmem:[#allocation3 + $0x30] sm:$0xff] %vm4020_vm5, %v4083_v20  ;;  %4343 = vst.msk [vmem:[#allocation3 + $0x48] sm:$0xff] %vm4020_vm5, %v4338_v21  ;;  %v6859_v21 = vld [vmem:[%s8740_s7 + $0x8] sm:$0xff]  }
 0x5f1   :  { %4097 = vst.msk [vmem:[#allocation3 + $0x30] sm:$0xff] %vm4031_vm6, %v4093_v16  ;;  %4353 = vst.msk [vmem:[#allocation3 + $0x48] sm:$0xff] %vm4031_vm6, %v4348_v17 }
 0x5f3   :  { %v4340_v22 = vpop.permute.xlu1 %4339  ;;  %v4103_v23 = vpop.permute.xlu0 %4102 }
 0x5f4   :  { %4344 = vst.msk [vmem:[#allocation3 + $0x68] sm:$0xff] %vm4020_vm5, %v4340_v22  ;;  %v4421_v43 = vld [vmem:[#allocation3 + $0x10] sm:$0xff] }
 0x5f5   :  { %4108 = vst.msk [vmem:[#allocation3 + $0x18] sm:$0xff] %vm4009_vm1, %v4103_v23  ;;  %v6860_v23 = vld [vmem:[%s8740_s7 + $0x10] sm:$0xff]  }
 0x5f6   :  { %4354 = vst.msk [vmem:[#allocation3 + $0x68] sm:$0xff] %vm4031_vm6, %v4350_v18 }
 0x5f7   :  { %v4105_v24 = vpop.permute.xlu1 %4104  ;;  %v4360_v25 = vpop.permute.xlu0 %4359 }
 0x5f8   :  { %4109 = vst.msk [vmem:[#allocation3 + $0x38] sm:$0xff] %vm4009_vm1, %v4105_v24  ;;  %4365 = vst.msk [vmem:[#allocation3 + $0x50] sm:$0xff] %vm4009_vm1, %v4360_v25  ;;  %v4428_v30 = vld [vmem:[#allocation3 + $0x48] sm:$0xff]  ;;  %v4425_v44 = vld [vmem:[#allocation3 + $0x30] sm:$0xff] }
 0x5f9   :  { %v4437_v47 = vpack.c.bf16 %v4425_v44, %v4421_v43  ;;  %v6866_v43 = vld [vmem:[%s8741_s8 + $0x70] sm:$0xff]  }
 0x5fb   :  { %v4362_v26 = vpop.permute.xlu1 %4361  ;;  %v4123_v27 = vpop.permute.xlu0 %4122 }
 0x5fc   :  { %4366 = vst.msk [vmem:[#allocation3 + $0x70] sm:$0xff] %vm4009_vm1, %v4362_v26 }
 0x5fd   :  { %v4432_v31 = vld [vmem:[#allocation3 + $0x68] sm:$0xff] }
 0x5fe   :  { %v4440_v32 = vpack.c.bf16 %v4432_v31, %v4428_v30 }
 0x5ff   :  { %v4125_v35 = vpop.permute.xlu1 %4124  ;;  %v4113_v37 = vpop.permute.xlu0 %4112 }
 0x600   :  { %4746 = vmatprep.mubr.bf16.mxu1 %v4440_v32  ;;  %4118 = vst.msk [vmem:[#allocation3 + $0x18] sm:$0xff] %vm4020_vm5, %v4113_v37 }
 0x601   :  { %4747 = vmatmul.mubr.bf16.gmra.mxu1 %v4439_v34  ;;  %4128 = vst.msk [vmem:[#allocation3 + $0x18] sm:$0xff] %vm4031_vm6, %v4123_v27  ;;  %v6861_v34 = vld [vmem:[%s8740_s7 + $0x18] sm:$0xff]  }
 0x602   :  { %6537 = vmatprep.mubr.msk.bf16.mxu1 %vm4846_vm7, %v6858_v59 }
 0x603   :  { %v4115_v38 = vpop.permute.xlu1 %4114  ;;  %v4370_v39 = vpop.permute.xlu0 %4369 }
 0x604   :  { %4119 = vst.msk [vmem:[#allocation3 + $0x38] sm:$0xff] %vm4020_vm5, %v4115_v38  ;;  %4375 = vst.msk [vmem:[#allocation3 + $0x50] sm:$0xff] %vm4020_vm5, %v4370_v39 }
 0x605   :  { %4129 = vst.msk [vmem:[#allocation3 + $0x38] sm:$0xff] %vm4031_vm6, %v4125_v35 }
 0x607   :  { %v4372_v40 = vpop.permute.xlu1 %4371  ;;  %v4392_v41 = vpop.permute.xlu0 %4391 }
 0x608   :  { %4376 = vst.msk [vmem:[#allocation3 + $0x70] sm:$0xff] %vm4020_vm5, %v4372_v40  ;;  %v4422_v45 = vld [vmem:[#allocation3 + $0x18] sm:$0xff] }
 0x609   :  { %4397 = vst.msk [vmem:[#allocation3 + $0x58] sm:$0xff] %vm4009_vm1, %v4392_v41 }
 0x60b   :  { %v4394_v42 = vpop.permute.xlu1 %4393  ;;  %v4412_v29 = vpop.permute.xlu0 %4411 }
 0x60c   :  { %4398 = vst.msk [vmem:[#allocation3 + $0x78] sm:$0xff] %vm4009_vm1, %v4394_v42  ;;  %v4426_v46 = vld [vmem:[#allocation3 + $0x38] sm:$0xff]  ;;  %vm5862_vm1 = vcmask 1041408  }
 0x60d   :  { %v4438_v36 = vpack.c.bf16 %v4426_v46, %v4422_v45  ;;  %v6863_v45 = vld [vmem:[%s8741_s8 + $0x38] sm:$0xff]  }
 0x60e   :  { %v6864_v46 = vld [vmem:[%s8741_s8 + $0xf8] sm:$0xff]  }
 0x60f   :  { %4787 = vmatprep.mubr.bf16.mxu0 %v4438_v36  ;;  %v4414_v48 = vpop.permute.xlu1 %4413  ;;  %v4402_v49 = vpop.permute.xlu0 %4401  ;;  %v6865_v36 = vld [vmem:[%s8741_s8 + $0xb8] sm:$0xff]  }
 0x610   :  { %4788 = vmatmul.mubr.bf16.vlgmr.msra.gmra.mxu0 %v4437_v47  ;;  %4407 = vst.msk [vmem:[#allocation3 + $0x58] sm:$0xff] %vm4020_vm5, %v4402_v49  ;;  %v6868_v47 = vld [vmem:[%s8741_s8 + $0xf0] sm:$0xff]  }
 0x611   :  { %4417 = vst.msk [vmem:[#allocation3 + $0x58] sm:$0xff] %vm4031_vm6, %v4412_v29  ;;  %v6862_v29 = vld [vmem:[%s8741_s8 + $0x78] sm:$0xff]   ;;  %v6869_v49 = vld [vmem:[%s8741_s8 + $0xb0] sm:$0xff]  }
 0x612   :  { %6333 = vmatprep.subr.bf16.mxu0 %v6862_v29 }
 0x613   :  { %v4404_v50 = vpop.permute.xlu1 %4403  ;;  %v4380_v51 = vpop.permute.xlu0 %4379  ;;  %6334 = vmatpush3.bf16.msra.mxu0 %v6863_v45 }
 0x614   :  { %4408 = vst.msk [vmem:[#allocation3 + $0x78] sm:$0xff] %vm4020_vm5, %v4404_v50  ;;  %6335 = vmatprep.subr.bf16.mxu0 %v6866_v43  ;;  %v6870_v50 = vld [vmem:[%s8741_s8 + $0x68] sm:$0xff]   ;;  %vm5874_vm5 = vcmask 1024  }
 0x615   :  { %4385 = vst.msk [vmem:[#allocation3 + $0x50] sm:$0xff] %vm4031_vm6, %v4380_v51  ;;  %4418 = vst.msk [vmem:[#allocation3 + $0x78] sm:$0xff] %vm4031_vm6, %v4414_v48  ;;  %v6867_v48 = vld [vmem:[%s8741_s8 + $0x30] sm:$0xff]   ;;  %v6872_v51 = vld [vmem:[%s8741_s8 + $0xe8] sm:$0xff]  }
 0x617   :  { %v4382_v52 = vpop.permute.xlu1 %4381  ;;  %6336 = vmatpush3.bf16.msra.mxu0 %v6867_v48 }
 0x618   :  { %4386 = vst.msk [vmem:[#allocation3 + $0x70] sm:$0xff] %vm4031_vm6, %v4382_v52  ;;  %v4430_v53 = vld [vmem:[#allocation3 + $0x58] sm:$0xff]  ;;  %v6871_v52 = vld [vmem:[%s8741_s8 + $0x28] sm:$0xff]   ;;  %6337 = vmatprep.subr.bf16.mxu0 %v6870_v50 }
 0x61b   :  { %6338 = vmatpush3.bf16.msra.mxu0 %v6871_v52 }
 0x61c   :  { %v4434_v54 = vld [vmem:[#allocation3 + $0x78] sm:$0xff]  ;;  %v4429_v56 = vld [vmem:[#allocation3 + $0x50] sm:$0xff] }
 0x61d   :  { %v4442_v55 = vpack.c.bf16 %v4434_v54, %v4430_v53  ;;  %v6873_v53 = vld [vmem:[%s8741_s8 + $0xa8] sm:$0xff]   ;;  %v6874_v54 = vld [vmem:[%s8741_s8 + $0x60] sm:$0xff]  }
 0x61e   :  { %6339 = vmatprep.subr.bf16.mxu0 %v6874_v54 }
 0x61f   :  { %4795 = vmatprep.mubr.bf16.mxu0 %v4442_v55  ;;  %v4433_v57 = vld [vmem:[#allocation3 + $0x70] sm:$0xff] }
 0x620   :  { %v4441_v58 = vpack.c.bf16 %v4433_v57, %v4429_v56 }
 0x622   :  { %4796 = vmatmul.mubr.bf16.gmra.mxu0 %v4441_v58 }
 0x6a4   :  { %v6283_v60 = vpop.f32.mrf.mxu1 }
 0x6a6   :  { %v6284_v61 = vpop.f32.mrf.mxu1 }
 0x6a7   :  { %v6285_v0 = vadd.f32 %v6284_v61, %v6283_v60  ;;  %v6875_v60 = vld [vmem:[%s8741_s8 + $0x20] sm:$0xff]  }
 0x6a8   :  { %v6286_v62 = vpop.f32.mrf.mxu1  ;;  %6340 = vmatpush3.bf16.msra.mxu0 %v6875_v60 }
 0x6a9   :  { %v4741_v4 = vadd.f32 %v6285_v0, %v6099_v1  ;;  %v6876_v0 = vld [vmem:[%s8741_s8 + $0xe0] sm:$0xff]  }
 0x6aa   :  { %v6287_v3 = vpop.f32.mrf.mxu1 }
 0x6ab   :  { %v6288_v6 = vadd.f32 %v6287_v3, %v6286_v62 }
 0x6ad   :  { %v4744_v11 = vadd.f32 %v6288_v6, %v6099_v1  ;;  %v6880_v6 = vld [vmem:[%s8741_s8 + $0xd8] sm:$0xff]  }
 0x6c1   :  { %v6289_v10 = vpop.f32.mrf.mxu1 }
 0x6c3   :  { %v6290_v15 = vpop.f32.mrf.mxu1 }
 0x6c4   :  { %v6291_v22 = vadd.f32 %v6290_v15, %v6289_v10  ;;  %v6883_v10 = vld [vmem:[%s8741_s8 + $0x10] sm:$0xff]  }
 0x6c5   :  { %v6292_v20 = vpop.f32.mrf.mxu1 }
 0x6c6   :  { %v4749_v27 = vadd.f32 %v6291_v22, %v6099_v1  ;;  %v6890_v22 = vld [vmem:[%s8741_s8 + $0x40] sm:$0xff]  }
 0x6c7   :  { %v6293_v25 = vpop.f32.mrf.mxu1 }
 0x6c8   :  { %v6294_v30 = vadd.f32 %v6293_v25, %v6292_v20  ;;  %v6888_v20 = vld [vmem:[%s8741_s8 + $0xc8] sm:$0xff]   ;;  %v6892_v25 = vld [vmem:[%s8741_s8 + $0xc0] sm:$0xff]  }
 0x6ca   :  { %v4752_v35 = vadd.f32 %v6294_v30, %v6099_v1  ;;  %v6877_v1 = vld [vmem:[%s8741_s8 + $0xa0] sm:$0xff]  }
 0x6cb   :  { %v6893_v30 = vld [vmem:[%s8741_s8 + $0x80] sm:$0xff]  }
 0x6d0   :  { %v6311_v2 = vpop.f32.mrf.mxu0 }
 0x6d2   :  { %v6312_v63 = vpop.f32.mrf.mxu0 }
 0x6d3   :  { %v6313_v5 = vadd.f32 %v6312_v63, %v6311_v2  ;;  %v6878_v2 = vld [vmem:[%s8741_s8 + $0x58] sm:$0xff]  }
 0x6d4   :  { %v6314_v7 = vpop.f32.mrf.mxu0  ;;  %6341 = vmatprep.subr.bf16.mxu0 %v6878_v2  ;;  %v6879_v63 = vld [vmem:[%s8741_s8 + $0x18] sm:$0xff]  }
 0x6d5   :  { %v4790_v8 = vadd.f32 %v6313_v5, %v4741_v4  ;;  %6342 = vmatpush3.bf16.msra.mxu0 %v6879_v63 }
 0x6d6   :  { %v6315_v9 = vpop.f32.mrf.mxu0 }
 0x6d7   :  { %v6316_v12 = vadd.f32 %v6315_v9, %v6314_v7  ;;  %v4808_v13 = vmul.f32 0.1, %v4790_v8  ;;  %vm4804_vm8 = vcmp.ge.f32.partialorder %v4790_v8, 0.0  ;;  %v6881_v7 = vld [vmem:[%s8741_s8 + $0x98] sm:$0xff]  }
 0x6d9   :  { %v4793_v14 = vadd.f32 %v6316_v12, %v4744_v11  ;;  %v4812_v17 = vsel %vm4804_vm8, %v4790_v8, %v4808_v13  ;;  %v6882_v8 = vld [vmem:[%s8741_s8 + $0x50] sm:$0xff]  }
 0x6da   :  { %6343 = vmatprep.subr.bf16.mxu0 %v6882_v8  ;;  %v6884_v12 = vld [vmem:[%s8741_s8 + $0xd0] sm:$0xff]  }
 0x6db   :  { %vm4805_vm9 = vcmp.ge.f32.partialorder %v4793_v14, 0.0  ;;  %v4809_v16 = vmul.f32 0.1, %v4793_v14  ;;  %6344 = vmatpush3.bf16.msra.mxu0 %v6883_v10  ;;  %v6885_v13 = vld [vmem:[%s8741_s8 + $0x90] sm:$0xff]   ;;  %v6903_v10 = vld [vmem:[%s8741_s8 + $0x128] sm:$0xff]  }
 0x6dc   :  { %v6901_v8 = vld [vmem:[%s8741_s8 + $0x1b0] sm:$0xff]  }
 0x6dd   :  { %v4813_v18 = vsel %vm4805_vm9, %v4793_v14, %v4809_v16  ;;  %v6886_v14 = vld [vmem:[%s8741_s8 + $0x48] sm:$0xff]  }
 0x6de   :  { %v4816_v19 = vpack.c.bf16 %v4813_v18, %v4812_v17  ;;  %6345 = vmatprep.subr.bf16.mxu0 %v6886_v14  ;;  %v6887_v16 = vld [vmem:[%s8741_s8 + $0x8] sm:$0xff]  }
 0x6df   :  { %6346 = vmatpush3.bf16.msra.mxu0 %v6887_v16  ;;  %v6907_v16 = vld [vmem:[%s8741_s8 + $0x120] sm:$0xff]  }
 0x6e0   :  { %6535 = vmatprep.subr.bf16.mxu1 %v4816_v19  ;;  %6347 = vmatprep.subr.bf16.mxu0 %v6890_v22  ;;  %v6911_v22 = vld [vmem:[%s8741_s8 + $0x118] sm:$0xff]  }
 0x6e1   :  { %6536 = vmatpush3.bf16.msra.mxu1 %v4816_v19 }
 0x6e2   :  { %v6317_v24 = vpop.f32.mrf.mxu0 }
 0x6e4   :  { %v6318_v26 = vpop.f32.mrf.mxu0  ;;  %6538 = vmatmul.mubr.msk.bf16.vlgmr.msra.gmra.mxu1 %vm4846_vm7, %v6859_v21 }
 0x6e5   :  { %v6319_v28 = vadd.f32 %v6318_v26, %v6317_v24  ;;  %6541 = vmatprep.mubr.msk.bf16.mxu1 %vm4846_vm7, %v6860_v23  ;;  %v6891_v24 = vld [vmem:[%s8741_s8] sm:$0xff]  }
 0x6e6   :  { %v6320_v31 = vpop.f32.mrf.mxu0  ;;  %6348 = vmatpush3.bf16.msra.mxu0 %v6891_v24 }
 0x6e7   :  { %v4798_v32 = vadd.f32 %v6319_v28, %v4749_v27 }
 0x6e8   :  { %v6321_v33 = vpop.f32.mrf.mxu0 }
 0x6e9   :  { %v6322_v37 = vadd.f32 %v6321_v33, %v6320_v31  ;;  %v4810_v38 = vmul.f32 0.1, %v4798_v32  ;;  %vm4806_vm10 = vcmp.ge.f32.partialorder %v4798_v32, 0.0  ;;  %v6894_v33 = vld [vmem:[%s8741_s8 + $0x178] sm:$0xff]  }
 0x6ea   :  { %6377 = vmatprep.subr.bf16.mxu0 %v6894_v33  ;;  %v6920_v33 = vld [vmem:[%s8741_s8 + $0x1c8] sm:$0xff]  }
 0x6eb   :  { %v4801_v39 = vadd.f32 %v6322_v37, %v4752_v35  ;;  %v4814_v41 = vsel %vm4806_vm10, %v4798_v32, %v4810_v38 }
 0x6ec   :  { %6542 = vmatmul.mubr.msk.bf16.gmra.mxu1 %vm4846_vm7, %v6861_v34 }
 0x6ed   :  { %vm4807_vm11 = vcmp.ge.f32.partialorder %v4801_v39, 0.0  ;;  %v4811_v40 = vmul.f32 0.1, %v4801_v39  ;;  %6547 = vmatprep.mubr.msk.bf16.mxu1 %vm4846_vm7, %v6858_v59 }
 0x6ef   :  { %v4815_v42 = vsel %vm4807_vm11, %v4801_v39, %v4811_v40  ;;  %v6896_v39 = vld [vmem:[%s8741_s8 + $0x1f8] sm:$0xff]  }
 0x6f0   :  { %v4817_v44 = vpack.c.bf16 %v4815_v42, %v4814_v41 }
 0x6f2   :  { %6545 = vmatprep.subr.bf16.mxu1 %v4817_v44 }
 0x6f3   :  { %6546 = vmatpush3.bf16.msra.mxu1 %v4817_v44 }
 0x6f4   :  { %6355 = vmatprep.subr.bf16.mxu1 %v6864_v46 }
 0x6f6   :  { %6548 = vmatmul.mubr.msk.bf16.vlgmr.msra.gmra.mxu1 %vm4846_vm7, %v6859_v21  ;;  %v6889_v21 = vld [vmem:[%s8741_s8 + $0x88] sm:$0xff]  }
 0x6f7   :  { %6551 = vmatprep.mubr.msk.bf16.mxu1 %vm4846_vm7, %v6860_v23  ;;  %6356 = vmatpush3.bf16.msra.mxu1 %v6865_v36 }
 0x6f8   :  { %6357 = vmatprep.subr.bf16.mxu1 %v6868_v47 }
 0x6fb   :  { %6358 = vmatpush3.bf16.msra.mxu1 %v6869_v49 }
 0x6fc   :  { %6359 = vmatprep.subr.bf16.mxu1 %v6872_v51 }
 0x6fe   :  { %6552 = vmatmul.mubr.msk.bf16.gmra.mxu1 %vm4846_vm7, %v6861_v34 }
 0x6ff   :  { %6360 = vmatpush3.bf16.msra.mxu1 %v6873_v53 }
 0x700   :  { %6361 = vmatprep.subr.bf16.mxu1 %v6876_v0 }
 0x703   :  { %6362 = vmatpush3.bf16.msra.mxu1 %v6877_v1  ;;  %v6898_v1 = vld [vmem:[%s8741_s8 + $0x170] sm:$0xff]  }
 0x704   :  { %6363 = vmatprep.subr.bf16.mxu1 %v6880_v6  ;;  %v6900_v6 = vld [vmem:[%s8741_s8 + $0x1f0] sm:$0xff]  }
 0x707   :  { %6364 = vmatpush3.bf16.msra.mxu1 %v6881_v7  ;;  %v6902_v7 = vld [vmem:[%s8741_s8 + $0x168] sm:$0xff]  }
 0x708   :  { %6365 = vmatprep.subr.bf16.mxu1 %v6884_v12  ;;  %v6906_v12 = vld [vmem:[%s8741_s8 + $0x160] sm:$0xff]  }
 0x70b   :  { %6366 = vmatpush3.bf16.msra.mxu1 %v6885_v13  ;;  %v6905_v13 = vld [vmem:[%s8741_s8 + $0x1a8] sm:$0xff]  }
 0x70c   :  { %6367 = vmatprep.subr.bf16.mxu1 %v6888_v20  ;;  %v6909_v20 = vld [vmem:[%s8741_s8 + $0x1a0] sm:$0xff]  }
 0x70f   :  { %6368 = vmatpush3.bf16.msra.mxu1 %v6889_v21 }
 0x710   :  { %6369 = vmatprep.subr.bf16.mxu1 %v6892_v25  ;;  %v6914_v25 = vld [vmem:[%s8741_s8 + $0x150] sm:$0xff]  }
 0x713   :  { %6370 = vmatpush3.bf16.msra.mxu1 %v6893_v30  ;;  %v6918_v30 = vld [vmem:[%s8741_s8 + $0x148] sm:$0xff]  }
 0x714   :  { %6399 = vmatprep.subr.bf16.mxu1 %v6896_v39 }
 0x7a4   :  { %v6539_v55 = vpop.f32.mrf.mxu1 }
 0x7a5   :  { %4940 = vst.msk [vmem:[#allocation4 + $0x10] sm:$0xf] %vm4924_vm12, %v6539_v55  ;;  %v4942_v11 = vrot.slane %v6539_v55, 4 }
 0x7a6   :  { %v4893_v56 = vpop.f32.mrf.mxu1 }
 0x7a7   :  { %4925 = vst.msk [vmem:[#allocation4] sm:$0xf] %vm4924_vm12, %v4893_v56  ;;  %v4927_v57 = vrot.slane %v4893_v56, 4 }
 0x7a8   :  { %v6540_v58 = vpop.f32.mrf.mxu1 }
 0x7a9   :  { %4947 = vst.msk [vmem:[#allocation4 + $0x18] sm:$0xf] %vm4924_vm12, %v6540_v58  ;;  %4928 = vrot.lane.b32.xlu0 %v4927_v57, %s7001_s0  ;;  %v4949_v61 = vrot.slane %v6540_v58, 4 }
 0x7aa   :  { %v4896_v59 = vpop.f32.mrf.mxu1 }
 0x7ab   :  { %4933 = vst.msk [vmem:[#allocation4 + $0x8] sm:$0xf] %vm4924_vm12, %v4896_v59  ;;  %v4935_v4 = vrot.slane %v4896_v59, 4 }
 0x7ac   :  { %v8525_v62 = vpop.f32.mrf.mxu1 }
 0x7ad   :  { %4968 = vst.msk [vmem:[#allocation4 + $0x30] sm:$0xf] %vm4924_vm12, %v8525_v62  ;;  %4950 = vrot.lane.b32.xlu0 %v4949_v61, %s7001_s0  ;;  %v4970_v42 = vrot.slane %v8525_v62, 4  ;;  %v6895_v62 = vld [vmem:[%s8741_s8 + $0x138] sm:$0xff]  }
 0x7ae   :  { %v4909_v3 = vpop.f32.mrf.mxu1 }
 0x7af   :  { %4954 = vst.msk [vmem:[#allocation4 + $0x20] sm:$0xf] %vm4924_vm12, %v4909_v3  ;;  %v4956_v27 = vrot.slane %v4909_v3, 4  ;;  %v6897_v3 = vld [vmem:[%s8741_s8 + $0x1b8] sm:$0xff]  }
 0x7b0   :  { %v8543_v5 = vpop.f32.mrf.mxu1 }
 0x7b1   :  { %4975 = vst.msk [vmem:[#allocation4 + $0x38] sm:$0xf] %vm4924_vm12, %v8543_v5  ;;  %4936 = vrot.lane.b32.xlu0 %v4935_v4, %s7001_s0  ;;  %v4977_v35 = vrot.slane %v8543_v5, 4  ;;  %v6899_v5 = vld [vmem:[%s8741_s8 + $0x130] sm:$0xff]  }
 0x7b2   :  { %v4912_v9 = vpop.f32.mrf.mxu1 }
 0x7b3   :  { %4961 = vst.msk [vmem:[#allocation4 + $0x28] sm:$0xf] %vm4924_vm12, %v4912_v9  ;;  %v4963_v17 = vrot.slane %v4912_v9, 4 }
 0x7b5   :  { %4943 = vrot.lane.b32.xlu0 %v4942_v11, %s7001_s0  ;;  %v6904_v11 = vld [vmem:[%s8741_s8 + $0x1e8] sm:$0xff]  }
 0x7b6   :  { %v6549_v15 = vpop.f32.mrf.mxu1 }
 0x7b7   :  { %v5066_v18 = vrot.slane %v6549_v15, 4 }
 0x7b8   :  { %v5016_v19 = vpop.f32.mrf.mxu1 }
 0x7b9   :  { %5068 = vst.msk [vmem:[#allocation4 + $0x10] sm:$0xf0] %vm5050_vm13, %v5066_v18  ;;  %v5048_v23 = vrot.slane %v5016_v19, 4  ;;  %5052 = vrot.lane.b32.xlu1 %v5016_v19, %s7001_s0  ;;  %4964 = vrot.lane.b32.xlu0 %v4963_v17, %s7001_s0  ;;  %v6908_v17 = vld [vmem:[%s8741_s8 + $0x1e0] sm:$0xff]   ;;  %v6910_v19 = vld [vmem:[%s8741_s8 + $0x158] sm:$0xff]  }
 0x7ba   :  { %v6550_v26 = vpop.f32.mrf.mxu1 }
 0x7bb   :  { %5051 = vst.msk [vmem:[#allocation4] sm:$0xf0] %vm5050_vm13, %v5048_v23  ;;  %v5074_v28 = vrot.slane %v6550_v26, 4  ;;  %v6912_v23 = vld [vmem:[%s8741_s8 + $0x1d8] sm:$0xff]  }
 0x7bc   :  { %v5019_v31 = vpop.f32.mrf.mxu1 }
 0x7bd   :  { %5076 = vst.msk [vmem:[#allocation4 + $0x18] sm:$0xf0] %vm5050_vm13, %v5074_v28  ;;  %5077 = vrot.lane.b32.xlu1 %v6550_v26, %s7001_s0  ;;  %v5058_v32 = vrot.slane %v5019_v31, 4  ;;  %4957 = vrot.lane.b32.xlu0 %v4956_v27, %s7001_s0  ;;  %v6913_v26 = vld [vmem:[%s8741_s8 + $0x198] sm:$0xff]   ;;  %v6915_v27 = vld [vmem:[%s8741_s8 + $0x110] sm:$0xff]  }
 0x7be   :  { %v6553_v34 = vpop.f32.mrf.mxu1  ;;  %v6916_v28 = vld [vmem:[%s8741_s8 + $0x1d0] sm:$0xff]  }
 0x7bf   :  { %5060 = vst.msk [vmem:[#allocation4 + $0x8] sm:$0xf0] %vm5050_vm13, %v5058_v32  ;;  %v5098_v37 = vrot.slane %v6553_v34, 4  ;;  %v6919_v32 = vld [vmem:[%s8741_s8 + $0x108] sm:$0xff]  }
 0x7c0   :  { %v5032_v38 = vpop.f32.mrf.mxu1 }
 0x7c1   :  { %5061 = vrot.lane.b32.xlu1 %v5019_v31, %s7001_s0  ;;  %5100 = vst.msk [vmem:[#allocation4 + $0x30] sm:$0xf0] %vm5050_vm13, %v5098_v37  ;;  %v5082_v40 = vrot.slane %v5032_v38, 4  ;;  %4978 = vrot.lane.b32.xlu0 %v4977_v35, %s7001_s0  ;;  %v6917_v31 = vld [vmem:[%s8741_s8 + $0x190] sm:$0xff]   ;;  %v6921_v35 = vld [vmem:[%s8741_s8 + $0x188] sm:$0xff]  }
 0x7c2   :  { %v6554_v41 = vpop.f32.mrf.mxu1  ;;  %v6923_v37 = vld [vmem:[%s8741_s8 + $0x100] sm:$0xff]  }
 0x7c3   :  { %5084 = vst.msk [vmem:[#allocation4 + $0x20] sm:$0xf0] %vm5050_vm13, %v5082_v40  ;;  %v5106_v44 = vrot.slane %v6554_v41, 4  ;;  %v6925_v40 = vld [vmem:[%s8741_s8 + $0x180] sm:$0xff]  }
 0x7c4   :  { %v5035_v29 = vpop.f32.mrf.mxu1 }
 0x7c5   :  { %5069 = vrot.lane.b32.xlu1 %v6549_v15, %s7001_s0  ;;  %5108 = vst.msk [vmem:[#allocation4 + $0x38] sm:$0xf0] %vm5050_vm13, %v5106_v44  ;;  %v5090_v45 = vrot.slane %v5035_v29, 4  ;;  %4971 = vrot.lane.b32.xlu0 %v4970_v42, %s7001_s0 }
 0x7c7   :  { %5092 = vst.msk [vmem:[#allocation4 + $0x28] sm:$0xf0] %vm5050_vm13, %v5090_v45 }
 0x7c9   :  { %5085 = vrot.lane.b32.xlu1 %v5032_v38, %s7001_s0  ;;  %v6924_v38 = vld [vmem:[%s8741_s8 + $0x1c0] sm:$0xff]  }
 0x7cd   :  { %5109 = vrot.lane.b32.xlu1 %v6554_v41, %s7001_s0 }
 0x7d1   :  { %5093 = vrot.lane.b32.xlu1 %v5035_v29, %s7001_s0  ;;  %v7009_v29 = vmov 0.0  }
 0x7d5   :  { %5101 = vrot.lane.b32.xlu1 %v6553_v34, %s7001_s0  ;;  %v6922_v34 = vld [vmem:[%s8741_s8 + $0x140] sm:$0xff]  }
 0x81b   :  { %v4929_v46 = vpop.permute.xlu0 %4928 }
 0x81c   :  { %4932 = vst.msk [vmem:[#allocation4] sm:$0xf] %vm4931_vm14, %v4929_v46 }
 0x81f   :  { %v4951_v36 = vpop.permute.xlu0 %4950 }
 0x820   :  { %4953 = vst.msk [vmem:[#allocation4 + $0x18] sm:$0xf] %vm4931_vm14, %v4951_v36 }
 0x823   :  { %v4937_v43 = vpop.permute.xlu0 %4936 }
 0x824   :  { %4939 = vst.msk [vmem:[#allocation4 + $0x8] sm:$0xf] %vm4931_vm14, %v4937_v43 }
 0x827   :  { %v4944_v47 = vpop.permute.xlu0 %4943 }
 0x828   :  { %4946 = vst.msk [vmem:[#allocation4 + $0x10] sm:$0xf] %vm4931_vm14, %v4944_v47 }
 0x82b   :  { %v5053_v48 = vpop.permute.xlu1 %5052  ;;  %v4965_v49 = vpop.permute.xlu0 %4964 }
 0x82c   :  { %5056 = vst.msk [vmem:[#allocation4] sm:$0xf0] %vm5055_vm15, %v5053_v48 }
 0x82d   :  { %4967 = vst.msk [vmem:[#allocation4 + $0x28] sm:$0xf] %vm4931_vm14, %v4965_v49 }
 0x82f   :  { %v5078_v50 = vpop.permute.xlu1 %5077  ;;  %v4958_v51 = vpop.permute.xlu0 %4957 }
 0x830   :  { %5080 = vst.msk [vmem:[#allocation4 + $0x18] sm:$0xf0] %vm5055_vm15, %v5078_v50 }
 0x831   :  { %4960 = vst.msk [vmem:[#allocation4 + $0x20] sm:$0xf] %vm4931_vm14, %v4958_v51 }
 0x833   :  { %v5062_v52 = vpop.permute.xlu1 %5061  ;;  %v4979_v53 = vpop.permute.xlu0 %4978  ;;  %v5113_v58 = vld [vmem:[#allocation4] sm:$0xff] }
 0x834   :  { %5064 = vst.msk [vmem:[#allocation4 + $0x8] sm:$0xf0] %vm5055_vm15, %v5062_v52  ;;  %v5121_v0 = vpack.c.bf16 %v5113_v58, %v5113_v58  ;;  %v6144_v52 = vld [vmem:[#allocation8] ss:$0 sm:$0xff] }
 0x835   :  { %4981 = vst.msk [vmem:[#allocation4 + $0x38] sm:$0xf] %vm4931_vm14, %v4979_v53 }
 0x837   :  { %v5070_v54 = vpop.permute.xlu1 %5069  ;;  %v5116_v55 = vld [vmem:[#allocation4 + $0x18] sm:$0xff]  ;;  %v4972_v56 = vpop.permute.xlu0 %4971 }
 0x838   :  { %5072 = vst.msk [vmem:[#allocation4 + $0x10] sm:$0xf0] %vm5055_vm15, %v5070_v54  ;;  %v5124_v57 = vpack.c.bf16 %v5116_v55, %v5116_v55 }
 0x839   :  { %4974 = vst.msk [vmem:[#allocation4 + $0x30] sm:$0xf] %vm4931_vm14, %v4972_v56 }
 0x83a   :  { %5720 = vmatprep.mubr.bf16.mxu1 %v5124_v57 }
 0x83b   :  { %v5114_v59 = vld [vmem:[#allocation4 + $0x8] sm:$0xff]  ;;  %v5086_v60 = vpop.permute.xlu1 %5085 }
 0x83c   :  { %v5122_v61 = vpack.c.bf16 %v5114_v59, %v5114_v59  ;;  %5088 = vst.msk [vmem:[#allocation4 + $0x20] sm:$0xf0] %vm5055_vm15, %v5086_v60 }
 0x83e   :  { %5680 = vmatprep.mubr.bf16.mxu0 %v5122_v61 }
 0x83f   :  { %5681 = vmatmul.mubr.bf16.vlgmr.msra.gmra.mxu0 %v5121_v0  ;;  %v5115_v2 = vld [vmem:[#allocation4 + $0x10] sm:$0xff]  ;;  %v5110_v63 = vpop.permute.xlu1 %5109 }
 0x840   :  { %6378 = vmatpush3.bf16.msra.mxu0 %v6895_v62  ;;  %v5123_v4 = vpack.c.bf16 %v5115_v2, %v5115_v2  ;;  %5112 = vst.msk [vmem:[#allocation4 + $0x38] sm:$0xf0] %vm5055_vm15, %v5110_v63 }
 0x841   :  { %6379 = vmatprep.subr.bf16.mxu0 %v6898_v1 }
 0x842   :  { %5721 = vmatmul.mubr.bf16.vlgmr.msra.gmra.mxu1 %v5123_v4 }
 0x843   :  { %6400 = vmatpush3.bf16.msra.mxu1 %v6897_v3  ;;  %v5094_v9 = vpop.permute.xlu1 %5093  ;;  %v5117_v39 = vld [vmem:[#allocation4 + $0x20] sm:$0xff] }
 0x844   :  { %6380 = vmatpush3.bf16.msra.mxu0 %v6899_v5  ;;  %6401 = vmatprep.subr.bf16.mxu1 %v6900_v6  ;;  %5096 = vst.msk [vmem:[#allocation4 + $0x28] sm:$0xf0] %vm5055_vm15, %v5094_v9  ;;  %v5125_v41 = vpack.c.bf16 %v5117_v39, %v5117_v39  ;;  %v5811_v5 = vld [vmem:[#allocation10] sm:$0xff] }
 0x845   :  { %6381 = vmatprep.subr.bf16.mxu0 %v6902_v7 }
 0x847   :  { %6402 = vmatpush3.bf16.msra.mxu1 %v6901_v8  ;;  %v5102_v14 = vpop.permute.xlu1 %5101  ;;  %v5120_v15 = vld [vmem:[#allocation4 + $0x38] sm:$0xff] }
 0x848   :  { %6382 = vmatpush3.bf16.msra.mxu0 %v6903_v10  ;;  %6403 = vmatprep.subr.bf16.mxu1 %v6904_v11  ;;  %5104 = vst.msk [vmem:[#allocation4 + $0x30] sm:$0xf0] %vm5055_vm15, %v5102_v14  ;;  %v5128_v18 = vpack.c.bf16 %v5120_v15, %v5120_v15  ;;  %v5813_v10 = vld [vmem:[%s8744_s11] sm:$0x1] }
 0x849   :  { %6383 = vmatprep.subr.bf16.mxu0 %v6906_v12 }
 0x84a   :  { %5800 = vmatprep.mubr.bf16.mxu1 %v5128_v18 }
 0x84b   :  { %6404 = vmatpush3.bf16.msra.mxu1 %v6905_v13  ;;  %v5118_v21 = vld [vmem:[#allocation4 + $0x28] sm:$0xff] }
 0x84c   :  { %6384 = vmatpush3.bf16.msra.mxu0 %v6907_v16  ;;  %6405 = vmatprep.subr.bf16.mxu1 %v6908_v17  ;;  %v5126_v24 = vpack.c.bf16 %v5118_v21, %v5118_v21  ;;  %v6210_v16 = vld [vmem:[#allocation5] ss:$0 sm:$0xff] }
 0x84d   :  { %6385 = vmatprep.subr.bf16.mxu0 %v6910_v19 }
 0x84e   :  { %5760 = vmatprep.mubr.bf16.mxu0 %v5126_v24 }
 0x84f   :  { %6406 = vmatpush3.bf16.msra.mxu1 %v6909_v20  ;;  %v5119_v42 = vld [vmem:[#allocation4 + $0x30] sm:$0xff] }
 0x850   :  { %6386 = vmatpush3.bf16.msra.mxu0 %v6911_v22  ;;  %6407 = vmatprep.subr.bf16.mxu1 %v6912_v23  ;;  %v5127_v44 = vpack.c.bf16 %v5119_v42, %v5119_v42 }
 0x851   :  { %6387 = vmatprep.subr.bf16.mxu0 %v6914_v25 }
 0x853   :  { %6408 = vmatpush3.bf16.msra.mxu1 %v6913_v26 }
 0x854   :  { %6388 = vmatpush3.bf16.msra.mxu0 %v6915_v27  ;;  %6409 = vmatprep.subr.bf16.mxu1 %v6916_v28 }
 0x855   :  { %6389 = vmatprep.subr.bf16.mxu0 %v6918_v30 }
 0x857   :  { %6410 = vmatpush3.bf16.msra.mxu1 %v6917_v31 }
 0x858   :  { %6390 = vmatpush3.bf16.msra.mxu0 %v6919_v32  ;;  %6411 = vmatprep.subr.bf16.mxu1 %v6920_v33 }
 0x859   :  { %6391 = vmatprep.subr.bf16.mxu0 %v6922_v34 }
 0x85b   :  { %6412 = vmatpush3.bf16.msra.mxu1 %v6921_v35 }
 0x85c   :  { %6392 = vmatpush3.bf16.msra.mxu0 %v6923_v37  ;;  %6413 = vmatprep.subr.bf16.mxu1 %v6924_v38 }
 0x85d   :  { %6555 = vmatprep.subr.bf16.mxu0 %v7009_v29 }
 0x85f   :  { %6414 = vmatpush3.bf16.msra.mxu1 %v6925_v40  ;;  %5761 = vmatmul.mubr.bf16.vlgmr.msra.gmra.mxu0 %v5125_v41 }
 0x860   :  { %6557 = vmatprep.mubr.msk.bf16.mxu0 %vm7010_vm2, %v7009_v29 }
 0x862   :  { %5801 = vmatmul.mubr.bf16.vlgmr.msra.gmra.mxu1 %v5127_v44 }
 0x8ff   :  { %v6349_v45 = vpop.f32.mrf.mxu0 }
 0x901   :  { %v6350_v46 = vpop.f32.mrf.mxu0 }
 0x902   :  { %v6371_v36 = vpop.f32.mrf.mxu1  ;;  %v6351_v51 = vadd.f32 %v6350_v46, %v6349_v45 }
 0x903   :  { %v6352_v43 = vpop.f32.mrf.mxu0 }
 0x904   :  { %v6372_v47 = vpop.f32.mrf.mxu1  ;;  %v5683_v53 = vadd.f32 %v6351_v51, %v6144_v52 }
 0x905   :  { %v6353_v48 = vpop.f32.mrf.mxu0  ;;  %v6373_v54 = vadd.f32 %v6372_v47, %v6371_v36 }
 0x906   :  { %v6374_v49 = vpop.f32.mrf.mxu1 }
 0x907   :  { %v5723_v57 = vadd.f32 %v6373_v54, %v5683_v53 }
 0x908   :  { %v6375_v50 = vpop.f32.mrf.mxu1 }
 0x91f   :  { %v6393_v55 = vpop.f32.mrf.mxu0 }
 0x921   :  { %v6394_v56 = vpop.f32.mrf.mxu0 }
 0x922   :  { %v6395_v58 = vadd.f32 %v6394_v56, %v6393_v55  ;;  %v6415_v59 = vpop.f32.mrf.mxu1 }
 0x923   :  { %v6396_v60 = vpop.f32.mrf.mxu0 }
 0x924   :  { %v5763_v61 = vadd.f32 %v6395_v58, %v5723_v57  ;;  %v6416_v62 = vpop.f32.mrf.mxu1 }
 0x925   :  { %v6417_v0 = vadd.f32 %v6416_v62, %v6415_v59  ;;  %v6397_v1 = vpop.f32.mrf.mxu0 }
 0x926   :  { %v6418_v2 = vpop.f32.mrf.mxu1 }
 0x927   :  { %v5803_v3 = vadd.f32 %v6417_v0, %v5763_v61 }
 0x928   :  { %v6419_v63 = vpop.f32.mrf.mxu1 }
 0x929   :  { %vm5808_vm3 = vcmp.ge.f32.partialorder %v5803_v3, 0.0  ;;  %v5809_v4 = vmul.f32 0.1, %v5803_v3 }
 0x92b   :  { %v5810_v6 = vsel %vm5808_vm3, %v5803_v3, %v5809_v4 }
 0x92c   :  { %v5812_v7 = vmul.f32 %v5811_v5, %v5810_v6 }
 0x92e   :  { %v5814_v8 = vpack.c.bf16 %v5812_v7, %v5812_v7 }
 0x930   :  { %v5820_v9 = vsel %vm5818_vm4, %v5814_v8, 0 }
 0x931   :  { %6556 = vmatpush3.bf16.msra.mxu0 %v5820_v9 }
 0x934   :  { %6558 = vmatmul.mubr.msk.bf16.vlgmr.msra.gmra.mxu0 %vm1555_vm0, %v5813_v10 }
 0x9f4   :  { %v5856_v11 = vpop.f32.mrf.mxu0 }
 0x9f5   :  { %v5863_v12 = vsel %vm5862_vm1, %v5856_v11, 0.0 }
 0x9f6   :  { %v6559_v13 = vpop.f32.mrf.mxu0  ;;  %5864 = vadd.xlane.f32.xlu0 %v5863_v12 }
 0x9f8   :  { %v5859_v14 = vpop.f32.mrf.mxu0 }
 0x9fa   :  { %v6560_v15 = vpop.f32.mrf.mxu0 }
 0xa7f   :  { %v5865_v17 = vpop.xlane.xlu0 %5864 }
 0xa80   :  { %v5873_v18 = vadd.f32 %v6210_v16, %v5865_v17 }
 0xa82   :  { %5875 = vst.msk [vmem:[%s8746_s13] sm:$0x3] %vm5874_vm5, %v5873_v18 }
 0xa83   :  { %5880 = vsyncpa [#allocation7], 1 }
 0xa84   :  { %5881 = vsyncpa [#allocation9], 1 }

</bundles_post_ra>
